<compile_context>
chip_gen: v5e
topology: v5e:2x2
jax: 0.10.0
libtpu: 0.0.40
codegen_flags: <defaults>
</compile_context>

<pallas_src>
import functools

import numpy as np
import jax
import jax.numpy as jnp
from jax.experimental import pallas as pl
from jax.experimental.pallas import tpu as pltpu


# ----------------------------------------------------------------------------
# Static geometry shared by parameter packing, kernel construction and wrapper.
# ----------------------------------------------------------------------------
def _geometry(out_c, num_blocks, hidden_c, img_size, k_size):
    hs = img_size // (k_size ** num_blocks)
    assert hs >= 1 and hs * (k_size ** num_blocks) == img_size, "bad img_size / k_size"
    c0 = int(hidden_c * (2 ** (num_blocks - 1)))
    blocks = []
    cin, H = c0, hs
    for i in range(1, num_blocks + 1):
        cout = out_c if i == num_blocks else cin // 2
        blocks.append((cin, cout, H, H * k_size))   # (cin, cout, H_in, H_out)
        cin, H = cout, H * k_size
    return hs, c0, blocks


# ----------------------------------------------------------------------------
# Host-side constant builders.
# ----------------------------------------------------------------------------
def _convT_routing(H, Ho, k, kk, batch):
    """Stacked, batch-block-diagonal routing for ConvTranspose2d(kernel=kk,
    stride=k, padding=1, output_padding=1) on an HxH (square) input.

    Row index   : t*B*S_in  + b*S_in  + s_in     (t = ky*kk + kx)
    Column index:            b*S_out + s_out
    Entry is 1 iff input pixel s_in of batch b feeds output pixel s_out of the
    same batch through tap (ky, kx):  oy = k*iy - 1 + ky, ox = k*ix - 1 + kx.
    """
    S_in, S_out = H * H, Ho * Ho
    si = np.arange(S_in)
    iy, ix = si // H, si % H
    so = np.arange(S_out)
    oy, ox = so // Ho, so % Ho
    eye = np.eye(batch, dtype=np.float32)
    taps = []
    for ky in range(kk):
        for kx in range(kk):
            hit = ((oy[None, :] == (k * iy - 1 + ky)[:, None]) &
                   (ox[None, :] == (k * ix - 1 + kx)[:, None])).astype(np.float32)
            taps.append(np.kron(eye, hit))                 # (B*S_in, B*S_out)
    return jnp.asarray(np.concatenate(taps, axis=0))       # (kk^2*B*S_in, B*S_out)


def _conv3x3_masks(Ho, batch):
    """masks[t, 0, b*S + y*W + x] = 1 iff the source pixel (y+dy-1, x+dx-1) of
    tap t = dy*3 + dx lies inside the HoxHo image (zero padding elsewhere)."""
    S = Ho * Ho
    i = np.arange(batch * S)
    s = i % S
    y, x = s // Ho, s % Ho
    m = []
    for dy in range(3):
        for dx in range(3):
            ok = ((y + dy - 1 >= 0) & (y + dy - 1 < Ho) &
                  (x + dx - 1 >= 0) & (x + dx - 1 < Ho))
            m.append(ok)
    return jnp.asarray(np.stack(m).astype(np.float32).reshape(9, 1, batch * S))


# ----------------------------------------------------------------------------
# Deterministic synthetic parameters in PyTorch layouts (used by the reference)
# and a packer that produces the kernel-side layouts.
# ----------------------------------------------------------------------------
def init_raw_params(key, latent_dim, out_c, num_blocks, hidden_c, img_size, k_size):
    hs, c0, blocks = _geometry(out_c, num_blocks, hidden_c, img_size, k_size)
    kk = k_size + 1
    keys = iter(jax.random.split(key, 8 + 10 * num_blocks))

    def nrm(shape, fan_in):
        return jax.random.normal(next(keys), shape, jnp.float32) / jnp.sqrt(float(fan_in))

    raw = {
        # nn.Linear(latent, latent*hs*hs) stored as (in, out): y = z @ lin_w + lin_b
        "lin_w": nrm((latent_dim, latent_dim * hs * hs), latent_dim),
        "lin_b": nrm((latent_dim * hs * hs,), latent_dim),
        # nn.Conv2d(latent, c0, kernel_size=1): weight (out, in)
        "fl_w": nrm((c0, latent_dim), latent_dim),
        "fl_b": nrm((c0,), latent_dim),
        "blocks": [],
        # nn.Conv2d(out_c, out_c, kernel_size=1)
        "out_w": nrm((out_c, out_c), out_c),
        "out_b": nrm((out_c,), out_c),
    }
    for (cin, cout, H, Ho) in blocks:
        raw["blocks"].append({
            # nn.ConvTranspose2d(cin, cout, kk, stride=k, padding=1, output_padding=1)
            # torch weight layout (in, out, kk, kk)
            "up_w": nrm((cin, cout, kk, kk), cin * kk * kk),
            "up_b": nrm((cout,), cin * kk * kk),
            # ConvBlock: nn.Conv2d(cout, cout, 3, padding=1), weight (out, in, 3, 3)
            "cv_w": nrm((cout, cout, 3, 3), cout * 9),
            "cv_b": nrm((cout,), cout * 9),
            # BatchNorm2d(cout) eval-mode stats (non-trivial, so folding is exercised)
            "bn_gamma": 1.0 + 0.2 * jax.random.normal(next(keys), (cout,), jnp.float32),
            "bn_beta": 0.1 * jax.random.normal(next(keys), (cout,), jnp.float32),
            "bn_mean": 0.1 * jax.random.normal(next(keys), (cout,), jnp.float32),
            "bn_var": 1.0 + 0.5 * jax.random.uniform(next(keys), (cout,), jnp.float32),
        })
    return raw


def pack_params(raw, *, batch, latent_dim, out_c, num_blocks, hidden_c,
                img_size, k_size, eps=1e-5):
    hs, c0, blocks = _geometry(out_c, num_blocks, hidden_c, img_size, k_size)
    S0 = hs * hs
    kk = k_size + 1
    kk2 = kk * kk
    bf16 = jnp.bfloat16

    p = {}
    # from_latent: Linear + Unflatten + Conv1x1 folded into a per-latent basis.
    Wl3 = raw["lin_w"].reshape(latent_dim, latent_dim, S0)            # (d, c, j)
    bl2 = raw["lin_b"].reshape(latent_dim, S0)                        # (c, j)
    p["M"] = jnp.einsum("oc,dcj->doj", raw["fl_w"], Wl3)              # (d, c0, S0) f32
    p["b0"] = jnp.einsum("oc,cj->oj", raw["fl_w"], bl2) + raw["fl_b"][:, None]

    p["blocks"] = []
    for bi, (cin, cout, H, Ho) in enumerate(blocks):
        rb = raw["blocks"][bi]
        # ConvTranspose2d: taps stacked on M for stage 1 ...
        upw = (jnp.transpose(rb["up_w"], (2, 3, 1, 0))                # (ky,kx,co,ci)
               .reshape(kk2 * cout, cin).astype(bf16))
        # ... and on K for stage 2 (pre-concatenated routing).
        upR = _convT_routing(H, Ho, k_size, kk, batch).astype(bf16)
        upb = rb["up_b"].reshape(cout, 1)                             # f32
        # ConvBlock: 3x3 conv with the eval-mode BN scale folded into the weight.
        scale = rb["bn_gamma"] / jnp.sqrt(rb["bn_var"] + eps)
        cvw = rb["cv_w"] * scale[:, None, None, None]                 # (co, ci, 3, 3)
        cvw = jnp.transpose(cvw, (0, 2, 3, 1)).reshape(cout, 9 * cout).astype(bf16)
        cvb = ((rb["cv_b"] - rb["bn_mean"]) * scale + rb["bn_beta"]).reshape(cout, 1)
        msk = _conv3x3_masks(Ho, batch)                               # (9, 1, B*S_out)
        p["blocks"].append({"upw": upw, "upR": upR, "upb": upb,
                            "cvw": cvw, "cvb": cvb, "msk": msk})

    p["outw"] = raw["out_w"].astype(bf16)                             # (out_c, out_c)
    p["outb"] = raw["out_b"].reshape(out_c, 1)
    return p


# ----------------------------------------------------------------------------
# The fused kernel: activations are (channels, batch*H*W); bf16 MXU operands,
# f32 accumulation; one MXU push per conv stage.
# ----------------------------------------------------------------------------
def _make_decoder_kernel(batch, latent_dim, block_meta):
    num_blocks = len(block_meta)
    bf16 = jnp.bfloat16
    mm = lambda a, b: jnp.dot(a, b, preferred_element_type=jnp.float32)

    def kernel(*refs):
        z_ref, M_ref, b0_ref = refs[0], refs[1], refs[2]
        pos = 3
        blk_refs = []
        for _ in range(num_blocks):
            blk_refs.append(refs[pos:pos + 6])
            pos += 6
        outw_ref, outb_ref, o_ref = refs[pos], refs[pos + 1], refs[pos + 2]

        # ---- from_latent (Linear + Unflatten + 1x1 conv folded host-side) -----
        # z is read as scalars from SMEM; basis sum on the VPU in f32.
        slabs = []
        for b in range(batch):
            acc = b0_ref[...]                                    # (c0, hs*hs) f32
            for d in range(latent_dim):
                acc = acc + z_ref[b, d] * M_ref[d]
            slabs.append(acc)
        x = jnp.concatenate(slabs, axis=1)                       # (c0, B*hs*hs) f32

        # ---- decoder blocks ----------------------------------------------------
        for meta, (upw_ref, upR_ref, upb_ref, cvw_ref, cvb_ref, msk_ref) in zip(
                block_meta, blk_refs):
            cout, kk2, bs_out, offs = meta

            # ConvTranspose2d: two stacked MXU matmuls.
            y = mm(upw_ref[...], x.astype(bf16))                 # (kk2*cout, B*S_in)
            y2 = jnp.concatenate(
                [y[t * cout:(t + 1) * cout, :] for t in range(kk2)], axis=1)
            up = mm(y2.astype(bf16), upR_ref[...]) + upb_ref[...]   # (cout, B*S_out)

            # Conv2d(3x3, padding=1) + folded BN + ReLU: im2col via lane rolls,
            # edge masks on the VPU, then one MXU matmul.
            taps = []
            for t, off in enumerate(offs):
                if off == 0:
                    taps.append(up)
                else:
                    rolled = pltpu.roll(up, (-off) % bs_out, axis=1)
                    taps.append(rolled * msk_ref[t])
            xs = jnp.concatenate(taps, axis=0).astype(bf16)      # (9*cout, B*S_out)
            x = jnp.maximum(mm(cvw_ref[...], xs) + cvb_ref[...], 0.0)

        # ---- final Conv2d(out_c, out_c, 1) + Sigmoid, lane-dense store ---------
        logits = mm(outw_ref[...], x.astype(bf16)) + outb_ref[...]
        o_ref[...] = (1.0 / (1.0 + jnp.exp(-logits))).astype(o_ref.dtype)

    return kernel


# ----------------------------------------------------------------------------
# Wrapper: single gridless pallas_call; everything resident in VMEM (z in SMEM).
# ----------------------------------------------------------------------------
def conv_decoder_forward(z, packed, *, out_c, num_blocks, hidden_c, img_size, k_size):
    B, latent_dim = z.shape
    _, _, blocks = _geometry(out_c, num_blocks, hidden_c, img_size, k_size)
    kk2 = (k_size + 1) ** 2

    block_meta = []
    for (cin, cout, H, Ho) in blocks:
        offs = tuple((dy - 1) * Ho + (dx - 1) for dy in range(3) for dx in range(3))
        block_meta.append((cout, kk2, B * Ho * Ho, offs))

    inputs = [z.astype(jnp.float32), packed["M"], packed["b0"]]
    for bp in packed["blocks"]:
        inputs += [bp["upw"], bp["upR"], bp["upb"], bp["cvw"], bp["cvb"], bp["msk"]]
    inputs += [packed["outw"], packed["outb"]]

    in_specs = ([pl.BlockSpec(memory_space=pltpu.MemorySpace.SMEM)] +
                [pl.BlockSpec(memory_space=pltpu.MemorySpace.VMEM)] * (len(inputs) - 1))

    out_elems = out_c * B * img_size * img_size
    vmem_bytes = int(sum(a.size * a.dtype.itemsize for a in inputs[1:])
                     + 4 * out_elems) * 2 + (8 << 20)            # actual use + headroom

    out = pl.pallas_call(
        _make_decoder_kernel(B, latent_dim, tuple(block_meta)),
        out_shape=jax.ShapeDtypeStruct((out_c, B * img_size * img_size), jnp.float32),
        in_specs=in_specs,
        out_specs=pl.BlockSpec(memory_space=pltpu.MemorySpace.VMEM),
        compiler_params=pltpu.CompilerParams(vmem_limit_bytes=vmem_bytes),
    )(*inputs)

    # (out_c, B*H*W) -> (B, out_c, H, W): wrapper-side layout plumbing only.
    out = out.reshape(out_c, B, img_size, img_size)
    return jnp.transpose(out, (1, 0, 2, 3))


# ----------------------------------------------------------------------------
# Pure-JAX f32 reference (PyTorch semantics) for validation.
# ----------------------------------------------------------------------------
def reference_forward(z, raw, *, out_c, num_blocks, hidden_c, img_size, k_size, eps=1e-5):
    B, latent_dim = z.shape
    hs, _, blocks = _geometry(out_c, num_blocks, hidden_c, img_size, k_size)
    kk = k_size + 1

    a = z @ raw["lin_w"] + raw["lin_b"]
    x = a.reshape(B, latent_dim, hs, hs)
    x = jnp.einsum("oi,bihw->bohw", raw["fl_w"], x) + raw["fl_b"][None, :, None, None]
    for bi, (cin, cout, H, Ho) in enumerate(blocks):
        rb = raw["blocks"][bi]
        # ConvTranspose2d(stride=k, padding=1, output_padding=1) == input-dilated
        # conv with the spatially-flipped, channel-swapped kernel.
        wf = jnp.transpose(rb["up_w"][:, :, ::-1, ::-1], (1, 0, 2, 3))
        x = jax.lax.conv_general_dilated(
            x, wf, window_strides=(1, 1),
            padding=[(kk - 2, kk - 1), (kk - 2, kk - 1)],
            lhs_dilation=(k_size, k_size),
            dimension_numbers=("NCHW", "OIHW", "NCHW"))
        x = x + rb["up_b"][None, :, None, None]
        # Conv2d(3x3, padding=1) + BatchNorm2d (eval) + ReLU
        y = jax.lax.conv_general_dilated(
            x, rb["cv_w"], window_strides=(1, 1), padding=[(1, 1), (1, 1)],
            dimension_numbers=("NCHW", "OIHW", "NCHW"))
        y = y + rb["cv_b"][None, :, None, None]
        inv = rb["bn_gamma"] / jnp.sqrt(rb["bn_var"] + eps)
        y = ((y - rb["bn_mean"][None, :, None, None]) * inv[None, :, None, None]
             + rb["bn_beta"][None, :, None, None])
        x = jnp.maximum(y, 0.0)
    y = jnp.einsum("oi,bihw->bohw", raw["out_w"], x) + raw["out_b"][None, :, None, None]
    return jax.nn.sigmoid(y)


if __name__ == "__main__":
    # ConvDecoder(latent_dim=8, out_c=3, num_blocks=2, hidden_c=8, img_size=16, k_size=2)
    latent_dim, out_c, num_blocks, hidden_c, img_size, k_size = 8, 3, 2, 8, 16, 2
    batch = 2

    root = jax.random.PRNGKey(0)
    kz, kp = jax.random.split(root)
    z = jax.random.normal(kz, (batch, latent_dim), jnp.float32)
    raw = init_raw_params(kp, latent_dim, out_c, num_blocks, hidden_c, img_size, k_size)
    packed = pack_params(raw, batch=batch, latent_dim=latent_dim, out_c=out_c,
                         num_blocks=num_blocks, hidden_c=hidden_c,
                         img_size=img_size, k_size=k_size)

    fwd = jax.jit(functools.partial(
        conv_decoder_forward, out_c=out_c, num_blocks=num_blocks,
        hidden_c=hidden_c, img_size=img_size, k_size=k_size))
    y = jax.block_until_ready(fwd(z, packed))

    assert y.shape == (batch, out_c, img_size, img_size), y.shape
    assert bool(jnp.all(jnp.isfinite(y)))
    assert bool(jnp.all((y >= 0.0) & (y <= 1.0))), "sigmoid output out of range"

    y_ref = reference_forward(z, raw, out_c=out_c, num_blocks=num_blocks,
                              hidden_c=hidden_c, img_size=img_size, k_size=k_size)
    err = float(jnp.max(jnp.abs(y - y_ref)))
    assert err < 3e-2, f"kernel vs f32 reference: max abs err {err}"

    print("KERNEL_OK")
</pallas_src>

<mosaic_0001>
module attributes {stable_mosaic.version = 11 : i64} {
  func.func @kernel(%arg0: memref<2x8xf32, #tpu.memory_space<smem>>, %arg1: memref<8x16x16xf32, #tpu.memory_space<vmem>>, %arg2: memref<16x16xf32, #tpu.memory_space<vmem>>, %arg3: memref<72x16xbf16, #tpu.memory_space<vmem>>, %arg4: memref<288x128xbf16, #tpu.memory_space<vmem>>, %arg5: memref<8x1xf32, #tpu.memory_space<vmem>>, %arg6: memref<8x72xbf16, #tpu.memory_space<vmem>>, %arg7: memref<8x1xf32, #tpu.memory_space<vmem>>, %arg8: memref<9x1x128xf32, #tpu.memory_space<vmem>>, %arg9: memref<27x8xbf16, #tpu.memory_space<vmem>>, %arg10: memref<1152x512xbf16, #tpu.memory_space<vmem>>, %arg11: memref<3x1xf32, #tpu.memory_space<vmem>>, %arg12: memref<3x27xbf16, #tpu.memory_space<vmem>>, %arg13: memref<3x1xf32, #tpu.memory_space<vmem>>, %arg14: memref<9x1x512xf32, #tpu.memory_space<vmem>>, %arg15: memref<3x3xbf16, #tpu.memory_space<vmem>>, %arg16: memref<3x1xf32, #tpu.memory_space<vmem>>, %arg17: memref<3x512xf32, #tpu.memory_space<vmem>>) attributes {dimension_semantics = [], scalar_prefetch = 0 : i64, scratch_operands = 0 : i64, tpu.core_type = #tpu.core_type<tc>} {
    %c0 = arith.constant 0 : index
    %c0_0 = arith.constant 0 : index
    %0 = vector.load %arg2[%c0, %c0_0] : memref<16x16xf32, #tpu.memory_space<vmem>>, vector<16x16xf32>
    %c0_1 = arith.constant 0 : index
    %c0_2 = arith.constant 0 : index
    %1 = memref.load %arg0[%c0_1, %c0_2] : memref<2x8xf32, #tpu.memory_space<smem>>
    %c0_3 = arith.constant 0 : index
    %c0_4 = arith.constant 0 : index
    %c0_5 = arith.constant 0 : index
    %2 = vector.load %arg1[%c0_3, %c0_4, %c0_5] : memref<8x16x16xf32, #tpu.memory_space<vmem>>, vector<1x16x16xf32>
    %3 = vector.shape_cast %2 : vector<1x16x16xf32> to vector<16x16xf32>
    %4 = vector.broadcast %1 : f32 to vector<16x16xf32>
    %5 = arith.mulf %4, %3 : vector<16x16xf32>
    %6 = arith.addf %0, %5 : vector<16x16xf32>
    %c0_6 = arith.constant 0 : index
    %c1 = arith.constant 1 : index
    %7 = memref.load %arg0[%c0_6, %c1] : memref<2x8xf32, #tpu.memory_space<smem>>
    %c1_7 = arith.constant 1 : index
    %c0_8 = arith.constant 0 : index
    %c0_9 = arith.constant 0 : index
    %8 = vector.load %arg1[%c1_7, %c0_8, %c0_9] : memref<8x16x16xf32, #tpu.memory_space<vmem>>, vector<1x16x16xf32>
    %9 = vector.shape_cast %8 : vector<1x16x16xf32> to vector<16x16xf32>
    %10 = vector.broadcast %7 : f32 to vector<16x16xf32>
    %11 = arith.mulf %10, %9 : vector<16x16xf32>
    %12 = arith.addf %6, %11 : vector<16x16xf32>
    %c0_10 = arith.constant 0 : index
    %c2 = arith.constant 2 : index
    %13 = memref.load %arg0[%c0_10, %c2] : memref<2x8xf32, #tpu.memory_space<smem>>
    %c2_11 = arith.constant 2 : index
    %c0_12 = arith.constant 0 : index
    %c0_13 = arith.constant 0 : index
    %14 = vector.load %arg1[%c2_11, %c0_12, %c0_13] : memref<8x16x16xf32, #tpu.memory_space<vmem>>, vector<1x16x16xf32>
    %15 = vector.shape_cast %14 : vector<1x16x16xf32> to vector<16x16xf32>
    %16 = vector.broadcast %13 : f32 to vector<16x16xf32>
    %17 = arith.mulf %16, %15 : vector<16x16xf32>
    %18 = arith.addf %12, %17 : vector<16x16xf32>
    %c0_14 = arith.constant 0 : index
    %c3 = arith.constant 3 : index
    %19 = memref.load %arg0[%c0_14, %c3] : memref<2x8xf32, #tpu.memory_space<smem>>
    %c3_15 = arith.constant 3 : index
    %c0_16 = arith.constant 0 : index
    %c0_17 = arith.constant 0 : index
    %20 = vector.load %arg1[%c3_15, %c0_16, %c0_17] : memref<8x16x16xf32, #tpu.memory_space<vmem>>, vector<1x16x16xf32>
    %21 = vector.shape_cast %20 : vector<1x16x16xf32> to vector<16x16xf32>
    %22 = vector.broadcast %19 : f32 to vector<16x16xf32>
    %23 = arith.mulf %22, %21 : vector<16x16xf32>
    %24 = arith.addf %18, %23 : vector<16x16xf32>
    %c0_18 = arith.constant 0 : index
    %c4 = arith.constant 4 : index
    %25 = memref.load %arg0[%c0_18, %c4] : memref<2x8xf32, #tpu.memory_space<smem>>
    %c4_19 = arith.constant 4 : index
    %c0_20 = arith.constant 0 : index
    %c0_21 = arith.constant 0 : index
    %26 = vector.load %arg1[%c4_19, %c0_20, %c0_21] : memref<8x16x16xf32, #tpu.memory_space<vmem>>, vector<1x16x16xf32>
    %27 = vector.shape_cast %26 : vector<1x16x16xf32> to vector<16x16xf32>
    %28 = vector.broadcast %25 : f32 to vector<16x16xf32>
    %29 = arith.mulf %28, %27 : vector<16x16xf32>
    %30 = arith.addf %24, %29 : vector<16x16xf32>
    %c0_22 = arith.constant 0 : index
    %c5 = arith.constant 5 : index
    %31 = memref.load %arg0[%c0_22, %c5] : memref<2x8xf32, #tpu.memory_space<smem>>
    %c5_23 = arith.constant 5 : index
    %c0_24 = arith.constant 0 : index
    %c0_25 = arith.constant 0 : index
    %32 = vector.load %arg1[%c5_23, %c0_24, %c0_25] : memref<8x16x16xf32, #tpu.memory_space<vmem>>, vector<1x16x16xf32>
    %33 = vector.shape_cast %32 : vector<1x16x16xf32> to vector<16x16xf32>
    %34 = vector.broadcast %31 : f32 to vector<16x16xf32>
    %35 = arith.mulf %34, %33 : vector<16x16xf32>
    %36 = arith.addf %30, %35 : vector<16x16xf32>
    %c0_26 = arith.constant 0 : index
    %c6 = arith.constant 6 : index
    %37 = memref.load %arg0[%c0_26, %c6] : memref<2x8xf32, #tpu.memory_space<smem>>
    %c6_27 = arith.constant 6 : index
    %c0_28 = arith.constant 0 : index
    %c0_29 = arith.constant 0 : index
    %38 = vector.load %arg1[%c6_27, %c0_28, %c0_29] : memref<8x16x16xf32, #tpu.memory_space<vmem>>, vector<1x16x16xf32>
    %39 = vector.shape_cast %38 : vector<1x16x16xf32> to vector<16x16xf32>
    %40 = vector.broadcast %37 : f32 to vector<16x16xf32>
    %41 = arith.mulf %40, %39 : vector<16x16xf32>
    %42 = arith.addf %36, %41 : vector<16x16xf32>
    %c0_30 = arith.constant 0 : index
    %c7 = arith.constant 7 : index
    %43 = memref.load %arg0[%c0_30, %c7] : memref<2x8xf32, #tpu.memory_space<smem>>
    %c7_31 = arith.constant 7 : index
    %c0_32 = arith.constant 0 : index
    %c0_33 = arith.constant 0 : index
    %44 = vector.load %arg1[%c7_31, %c0_32, %c0_33] : memref<8x16x16xf32, #tpu.memory_space<vmem>>, vector<1x16x16xf32>
    %45 = vector.shape_cast %44 : vector<1x16x16xf32> to vector<16x16xf32>
    %46 = vector.broadcast %43 : f32 to vector<16x16xf32>
    %47 = arith.mulf %46, %45 : vector<16x16xf32>
    %48 = arith.addf %42, %47 : vector<16x16xf32>
    %c0_34 = arith.constant 0 : index
    %c0_35 = arith.constant 0 : index
    %49 = vector.load %arg2[%c0_34, %c0_35] : memref<16x16xf32, #tpu.memory_space<vmem>>, vector<16x16xf32>
    %c1_36 = arith.constant 1 : index
    %c0_37 = arith.constant 0 : index
    %50 = memref.load %arg0[%c1_36, %c0_37] : memref<2x8xf32, #tpu.memory_space<smem>>
    %c0_38 = arith.constant 0 : index
    %c0_39 = arith.constant 0 : index
    %c0_40 = arith.constant 0 : index
    %51 = vector.load %arg1[%c0_38, %c0_39, %c0_40] : memref<8x16x16xf32, #tpu.memory_space<vmem>>, vector<1x16x16xf32>
    %52 = vector.shape_cast %51 : vector<1x16x16xf32> to vector<16x16xf32>
    %53 = vector.broadcast %50 : f32 to vector<16x16xf32>
    %54 = arith.mulf %53, %52 : vector<16x16xf32>
    %55 = arith.addf %49, %54 : vector<16x16xf32>
    %c1_41 = arith.constant 1 : index
    %c1_42 = arith.constant 1 : index
    %56 = memref.load %arg0[%c1_41, %c1_42] : memref<2x8xf32, #tpu.memory_space<smem>>
    %c1_43 = arith.constant 1 : index
    %c0_44 = arith.constant 0 : index
    %c0_45 = arith.constant 0 : index
    %57 = vector.load %arg1[%c1_43, %c0_44, %c0_45] : memref<8x16x16xf32, #tpu.memory_space<vmem>>, vector<1x16x16xf32>
    %58 = vector.shape_cast %57 : vector<1x16x16xf32> to vector<16x16xf32>
    %59 = vector.broadcast %56 : f32 to vector<16x16xf32>
    %60 = arith.mulf %59, %58 : vector<16x16xf32>
    %61 = arith.addf %55, %60 : vector<16x16xf32>
    %c1_46 = arith.constant 1 : index
    %c2_47 = arith.constant 2 : index
    %62 = memref.load %arg0[%c1_46, %c2_47] : memref<2x8xf32, #tpu.memory_space<smem>>
    %c2_48 = arith.constant 2 : index
    %c0_49 = arith.constant 0 : index
    %c0_50 = arith.constant 0 : index
    %63 = vector.load %arg1[%c2_48, %c0_49, %c0_50] : memref<8x16x16xf32, #tpu.memory_space<vmem>>, vector<1x16x16xf32>
    %64 = vector.shape_cast %63 : vector<1x16x16xf32> to vector<16x16xf32>
    %65 = vector.broadcast %62 : f32 to vector<16x16xf32>
    %66 = arith.mulf %65, %64 : vector<16x16xf32>
    %67 = arith.addf %61, %66 : vector<16x16xf32>
    %c1_51 = arith.constant 1 : index
    %c3_52 = arith.constant 3 : index
    %68 = memref.load %arg0[%c1_51, %c3_52] : memref<2x8xf32, #tpu.memory_space<smem>>
    %c3_53 = arith.constant 3 : index
    %c0_54 = arith.constant 0 : index
    %c0_55 = arith.constant 0 : index
    %69 = vector.load %arg1[%c3_53, %c0_54, %c0_55] : memref<8x16x16xf32, #tpu.memory_space<vmem>>, vector<1x16x16xf32>
    %70 = vector.shape_cast %69 : vector<1x16x16xf32> to vector<16x16xf32>
    %71 = vector.broadcast %68 : f32 to vector<16x16xf32>
    %72 = arith.mulf %71, %70 : vector<16x16xf32>
    %73 = arith.addf %67, %72 : vector<16x16xf32>
    %c1_56 = arith.constant 1 : index
    %c4_57 = arith.constant 4 : index
    %74 = memref.load %arg0[%c1_56, %c4_57] : memref<2x8xf32, #tpu.memory_space<smem>>
    %c4_58 = arith.constant 4 : index
    %c0_59 = arith.constant 0 : index
    %c0_60 = arith.constant 0 : index
    %75 = vector.load %arg1[%c4_58, %c0_59, %c0_60] : memref<8x16x16xf32, #tpu.memory_space<vmem>>, vector<1x16x16xf32>
    %76 = vector.shape_cast %75 : vector<1x16x16xf32> to vector<16x16xf32>
    %77 = vector.broadcast %74 : f32 to vector<16x16xf32>
    %78 = arith.mulf %77, %76 : vector<16x16xf32>
    %79 = arith.addf %73, %78 : vector<16x16xf32>
    %c1_61 = arith.constant 1 : index
    %c5_62 = arith.constant 5 : index
    %80 = memref.load %arg0[%c1_61, %c5_62] : memref<2x8xf32, #tpu.memory_space<smem>>
    %c5_63 = arith.constant 5 : index
    %c0_64 = arith.constant 0 : index
    %c0_65 = arith.constant 0 : index
    %81 = vector.load %arg1[%c5_63, %c0_64, %c0_65] : memref<8x16x16xf32, #tpu.memory_space<vmem>>, vector<1x16x16xf32>
    %82 = vector.shape_cast %81 : vector<1x16x16xf32> to vector<16x16xf32>
    %83 = vector.broadcast %80 : f32 to vector<16x16xf32>
    %84 = arith.mulf %83, %82 : vector<16x16xf32>
    %85 = arith.addf %79, %84 : vector<16x16xf32>
    %c1_66 = arith.constant 1 : index
    %c6_67 = arith.constant 6 : index
    %86 = memref.load %arg0[%c1_66, %c6_67] : memref<2x8xf32, #tpu.memory_space<smem>>
    %c6_68 = arith.constant 6 : index
    %c0_69 = arith.constant 0 : index
    %c0_70 = arith.constant 0 : index
    %87 = vector.load %arg1[%c6_68, %c0_69, %c0_70] : memref<8x16x16xf32, #tpu.memory_space<vmem>>, vector<1x16x16xf32>
    %88 = vector.shape_cast %87 : vector<1x16x16xf32> to vector<16x16xf32>
    %89 = vector.broadcast %86 : f32 to vector<16x16xf32>
    %90 = arith.mulf %89, %88 : vector<16x16xf32>
    %91 = arith.addf %85, %90 : vector<16x16xf32>
    %c1_71 = arith.constant 1 : index
    %c7_72 = arith.constant 7 : index
    %92 = memref.load %arg0[%c1_71, %c7_72] : memref<2x8xf32, #tpu.memory_space<smem>>
    %c7_73 = arith.constant 7 : index
    %c0_74 = arith.constant 0 : index
    %c0_75 = arith.constant 0 : index
    %93 = vector.load %arg1[%c7_73, %c0_74, %c0_75] : memref<8x16x16xf32, #tpu.memory_space<vmem>>, vector<1x16x16xf32>
    %94 = vector.shape_cast %93 : vector<1x16x16xf32> to vector<16x16xf32>
    %95 = vector.broadcast %92 : f32 to vector<16x16xf32>
    %96 = arith.mulf %95, %94 : vector<16x16xf32>
    %97 = arith.addf %91, %96 : vector<16x16xf32>
    %98 = tpu.concatenate %48, %97 in 1 : vector<16x16xf32>, vector<16x16xf32> -> vector<16x32xf32>
    %c0_76 = arith.constant 0 : index
    %c0_77 = arith.constant 0 : index
    %99 = vector.load %arg3[%c0_76, %c0_77] : memref<72x16xbf16, #tpu.memory_space<vmem>>, vector<72x16xbf16>
    %100 = arith.truncf %98 : vector<16x32xf32> to vector<16x32xbf16>
    %cst = arith.constant dense<0.000000e+00> : vector<72x32xf32>
    %101 = tpu.matmul %99, %100, %cst {dimension_numbers = #tpu.dot_dimension_numbers<[1], [0], [0], [1], [0, 0, 1, 1], [], []>} : vector<72x16xbf16>, vector<16x32xbf16>, vector<72x32xf32> -> vector<72x32xf32>
    %102 = vector.extract_strided_slice %101 {offsets = [0, 0], sizes = [8, 32], strides = [1, 1]} : vector<72x32xf32> to vector<8x32xf32>
    %103 = vector.extract_strided_slice %101 {offsets = [8, 0], sizes = [8, 32], strides = [1, 1]} : vector<72x32xf32> to vector<8x32xf32>
    %104 = vector.extract_strided_slice %101 {offsets = [16, 0], sizes = [8, 32], strides = [1, 1]} : vector<72x32xf32> to vector<8x32xf32>
    %105 = vector.extract_strided_slice %101 {offsets = [24, 0], sizes = [8, 32], strides = [1, 1]} : vector<72x32xf32> to vector<8x32xf32>
    %106 = vector.extract_strided_slice %101 {offsets = [32, 0], sizes = [8, 32], strides = [1, 1]} : vector<72x32xf32> to vector<8x32xf32>
    %107 = vector.extract_strided_slice %101 {offsets = [40, 0], sizes = [8, 32], strides = [1, 1]} : vector<72x32xf32> to vector<8x32xf32>
    %108 = vector.extract_strided_slice %101 {offsets = [48, 0], sizes = [8, 32], strides = [1, 1]} : vector<72x32xf32> to vector<8x32xf32>
    %109 = vector.extract_strided_slice %101 {offsets = [56, 0], sizes = [8, 32], strides = [1, 1]} : vector<72x32xf32> to vector<8x32xf32>
    %110 = vector.extract_strided_slice %101 {offsets = [64, 0], sizes = [8, 32], strides = [1, 1]} : vector<72x32xf32> to vector<8x32xf32>
    %111 = tpu.concatenate %102, %103, %104, %105, %106, %107, %108, %109, %110 in 1 : vector<8x32xf32>, vector<8x32xf32>, vector<8x32xf32>, vector<8x32xf32>, vector<8x32xf32>, vector<8x32xf32>, vector<8x32xf32>, vector<8x32xf32>, vector<8x32xf32> -> vector<8x288xf32>
    %112 = arith.truncf %111 : vector<8x288xf32> to vector<8x288xbf16>
    %c0_78 = arith.constant 0 : index
    %c0_79 = arith.constant 0 : index
    %113 = vector.load %arg4[%c0_78, %c0_79] : memref<288x128xbf16, #tpu.memory_space<vmem>>, vector<288x128xbf16>
    %cst_80 = arith.constant dense<0.000000e+00> : vector<8x128xf32>
    %114 = tpu.matmul %112, %113, %cst_80 {dimension_numbers = #tpu.dot_dimension_numbers<[1], [0], [0], [1], [0, 0, 1, 1], [], []>} : vector<8x288xbf16>, vector<288x128xbf16>, vector<8x128xf32> -> vector<8x128xf32>
    %c0_81 = arith.constant 0 : index
    %c0_82 = arith.constant 0 : index
    %115 = vector.load %arg5[%c0_81, %c0_82] : memref<8x1xf32, #tpu.memory_space<vmem>>, vector<8x1xf32>
    %116 = vector.broadcast %115 : vector<8x1xf32> to vector<8x128xf32>
    %117 = arith.addf %114, %116 : vector<8x128xf32>
    %c9_i32 = arith.constant 9 : i32
    %118 = tpu.dynamic_rotate %117 by %c9_i32 dim 1 : vector<8x128xf32>, i32 -> vector<8x128xf32>
    %c0_83 = arith.constant 0 : index
    %c0_84 = arith.constant 0 : index
    %c0_85 = arith.constant 0 : index
    %119 = vector.load %arg8[%c0_83, %c0_84, %c0_85] : memref<9x1x128xf32, #tpu.memory_space<vmem>>, vector<1x1x128xf32>
    %120 = vector.shape_cast %119 : vector<1x1x128xf32> to vector<1x128xf32>
    %121 = vector.broadcast %120 : vector<1x128xf32> to vector<8x128xf32>
    %122 = arith.mulf %118, %121 : vector<8x128xf32>
    %c8_i32 = arith.constant 8 : i32
    %123 = tpu.dynamic_rotate %117 by %c8_i32 dim 1 : vector<8x128xf32>, i32 -> vector<8x128xf32>
    %c1_86 = arith.constant 1 : index
    %c0_87 = arith.constant 0 : index
    %c0_88 = arith.constant 0 : index
    %124 = vector.load %arg8[%c1_86, %c0_87, %c0_88] : memref<9x1x128xf32, #tpu.memory_space<vmem>>, vector<1x1x128xf32>
    %125 = vector.shape_cast %124 : vector<1x1x128xf32> to vector<1x128xf32>
    %126 = vector.broadcast %125 : vector<1x128xf32> to vector<8x128xf32>
    %127 = arith.mulf %123, %126 : vector<8x128xf32>
    %c7_i32 = arith.constant 7 : i32
    %128 = tpu.dynamic_rotate %117 by %c7_i32 dim 1 : vector<8x128xf32>, i32 -> vector<8x128xf32>
    %c2_89 = arith.constant 2 : index
    %c0_90 = arith.constant 0 : index
    %c0_91 = arith.constant 0 : index
    %129 = vector.load %arg8[%c2_89, %c0_90, %c0_91] : memref<9x1x128xf32, #tpu.memory_space<vmem>>, vector<1x1x128xf32>
    %130 = vector.shape_cast %129 : vector<1x1x128xf32> to vector<1x128xf32>
    %131 = vector.broadcast %130 : vector<1x128xf32> to vector<8x128xf32>
    %132 = arith.mulf %128, %131 : vector<8x128xf32>
    %c1_i32 = arith.constant 1 : i32
    %133 = tpu.dynamic_rotate %117 by %c1_i32 dim 1 : vector<8x128xf32>, i32 -> vector<8x128xf32>
    %c3_92 = arith.constant 3 : index
    %c0_93 = arith.constant 0 : index
    %c0_94 = arith.constant 0 : index
    %134 = vector.load %arg8[%c3_92, %c0_93, %c0_94] : memref<9x1x128xf32, #tpu.memory_space<vmem>>, vector<1x1x128xf32>
    %135 = vector.shape_cast %134 : vector<1x1x128xf32> to vector<1x128xf32>
    %136 = vector.broadcast %135 : vector<1x128xf32> to vector<8x128xf32>
    %137 = arith.mulf %133, %136 : vector<8x128xf32>
    %c127_i32 = arith.constant 127 : i32
    %138 = tpu.dynamic_rotate %117 by %c127_i32 dim 1 : vector<8x128xf32>, i32 -> vector<8x128xf32>
    %c5_95 = arith.constant 5 : index
    %c0_96 = arith.constant 0 : index
    %c0_97 = arith.constant 0 : index
    %139 = vector.load %arg8[%c5_95, %c0_96, %c0_97] : memref<9x1x128xf32, #tpu.memory_space<vmem>>, vector<1x1x128xf32>
    %140 = vector.shape_cast %139 : vector<1x1x128xf32> to vector<1x128xf32>
    %141 = vector.broadcast %140 : vector<1x128xf32> to vector<8x128xf32>
    %142 = arith.mulf %138, %141 : vector<8x128xf32>
    %c121_i32 = arith.constant 121 : i32
    %143 = tpu.dynamic_rotate %117 by %c121_i32 dim 1 : vector<8x128xf32>, i32 -> vector<8x128xf32>
    %c6_98 = arith.constant 6 : index
    %c0_99 = arith.constant 0 : index
    %c0_100 = arith.constant 0 : index
    %144 = vector.load %arg8[%c6_98, %c0_99, %c0_100] : memref<9x1x128xf32, #tpu.memory_space<vmem>>, vector<1x1x128xf32>
    %145 = vector.shape_cast %144 : vector<1x1x128xf32> to vector<1x128xf32>
    %146 = vector.broadcast %145 : vector<1x128xf32> to vector<8x128xf32>
    %147 = arith.mulf %143, %146 : vector<8x128xf32>
    %c120_i32 = arith.constant 120 : i32
    %148 = tpu.dynamic_rotate %117 by %c120_i32 dim 1 : vector<8x128xf32>, i32 -> vector<8x128xf32>
    %c7_101 = arith.constant 7 : index
    %c0_102 = arith.constant 0 : index
    %c0_103 = arith.constant 0 : index
    %149 = vector.load %arg8[%c7_101, %c0_102, %c0_103] : memref<9x1x128xf32, #tpu.memory_space<vmem>>, vector<1x1x128xf32>
    %150 = vector.shape_cast %149 : vector<1x1x128xf32> to vector<1x128xf32>
    %151 = vector.broadcast %150 : vector<1x128xf32> to vector<8x128xf32>
    %152 = arith.mulf %148, %151 : vector<8x128xf32>
    %c119_i32 = arith.constant 119 : i32
    %153 = tpu.dynamic_rotate %117 by %c119_i32 dim 1 : vector<8x128xf32>, i32 -> vector<8x128xf32>
    %c8 = arith.constant 8 : index
    %c0_104 = arith.constant 0 : index
    %c0_105 = arith.constant 0 : index
    %154 = vector.load %arg8[%c8, %c0_104, %c0_105] : memref<9x1x128xf32, #tpu.memory_space<vmem>>, vector<1x1x128xf32>
    %155 = vector.shape_cast %154 : vector<1x1x128xf32> to vector<1x128xf32>
    %156 = vector.broadcast %155 : vector<1x128xf32> to vector<8x128xf32>
    %157 = arith.mulf %153, %156 : vector<8x128xf32>
    %158 = tpu.concatenate %122, %127, %132, %137, %117, %142, %147, %152, %157 in 0 : vector<8x128xf32>, vector<8x128xf32>, vector<8x128xf32>, vector<8x128xf32>, vector<8x128xf32>, vector<8x128xf32>, vector<8x128xf32>, vector<8x128xf32>, vector<8x128xf32> -> vector<72x128xf32>
    %159 = arith.truncf %158 : vector<72x128xf32> to vector<72x128xbf16>
    %c0_106 = arith.constant 0 : index
    %c0_107 = arith.constant 0 : index
    %160 = vector.load %arg6[%c0_106, %c0_107] : memref<8x72xbf16, #tpu.memory_space<vmem>>, vector<8x72xbf16>
    %cst_108 = arith.constant dense<0.000000e+00> : vector<8x128xf32>
    %161 = tpu.matmul %160, %159, %cst_108 {dimension_numbers = #tpu.dot_dimension_numbers<[1], [0], [0], [1], [0, 0, 1, 1], [], []>} : vector<8x72xbf16>, vector<72x128xbf16>, vector<8x128xf32> -> vector<8x128xf32>
    %c0_109 = arith.constant 0 : index
    %c0_110 = arith.constant 0 : index
    %162 = vector.load %arg7[%c0_109, %c0_110] : memref<8x1xf32, #tpu.memory_space<vmem>>, vector<8x1xf32>
    %163 = vector.broadcast %162 : vector<8x1xf32> to vector<8x128xf32>
    %164 = arith.addf %161, %163 : vector<8x128xf32>
    %cst_111 = arith.constant 0.000000e+00 : f32
    %165 = vector.broadcast %cst_111 : f32 to vector<8x128xf32>
    %166 = arith.maximumf %164, %165 : vector<8x128xf32>
    %c0_112 = arith.constant 0 : index
    %c0_113 = arith.constant 0 : index
    %167 = vector.load %arg9[%c0_112, %c0_113] : memref<27x8xbf16, #tpu.memory_space<vmem>>, vector<27x8xbf16>
    %168 = arith.truncf %166 : vector<8x128xf32> to vector<8x128xbf16>
    %cst_114 = arith.constant dense<0.000000e+00> : vector<27x128xf32>
    %169 = tpu.matmul %167, %168, %cst_114 {dimension_numbers = #tpu.dot_dimension_numbers<[1], [0], [0], [1], [0, 0, 1, 1], [], []>} : vector<27x8xbf16>, vector<8x128xbf16>, vector<27x128xf32> -> vector<27x128xf32>
    %170 = vector.extract_strided_slice %169 {offsets = [0, 0], sizes = [3, 128], strides = [1, 1]} : vector<27x128xf32> to vector<3x128xf32>
    %171 = vector.extract_strided_slice %169 {offsets = [3, 0], sizes = [3, 128], strides = [1, 1]} : vector<27x128xf32> to vector<3x128xf32>
    %172 = vector.extract_strided_slice %169 {offsets = [6, 0], sizes = [3, 128], strides = [1, 1]} : vector<27x128xf32> to vector<3x128xf32>
    %173 = vector.extract_strided_slice %169 {offsets = [9, 0], sizes = [3, 128], strides = [1, 1]} : vector<27x128xf32> to vector<3x128xf32>
    %174 = vector.extract_strided_slice %169 {offsets = [12, 0], sizes = [3, 128], strides = [1, 1]} : vector<27x128xf32> to vector<3x128xf32>
    %175 = vector.extract_strided_slice %169 {offsets = [15, 0], sizes = [3, 128], strides = [1, 1]} : vector<27x128xf32> to vector<3x128xf32>
    %176 = vector.extract_strided_slice %169 {offsets = [18, 0], sizes = [3, 128], strides = [1, 1]} : vector<27x128xf32> to vector<3x128xf32>
    %177 = vector.extract_strided_slice %169 {offsets = [21, 0], sizes = [3, 128], strides = [1, 1]} : vector<27x128xf32> to vector<3x128xf32>
    %178 = vector.extract_strided_slice %169 {offsets = [24, 0], sizes = [3, 128], strides = [1, 1]} : vector<27x128xf32> to vector<3x128xf32>
    %179 = tpu.concatenate %170, %171, %172, %173, %174, %175, %176, %177, %178 in 1 : vector<3x128xf32>, vector<3x128xf32>, vector<3x128xf32>, vector<3x128xf32>, vector<3x128xf32>, vector<3x128xf32>, vector<3x128xf32>, vector<3x128xf32>, vector<3x128xf32> -> vector<3x1152xf32>
    %180 = arith.truncf %179 : vector<3x1152xf32> to vector<3x1152xbf16>
    %c0_115 = arith.constant 0 : index
    %c0_116 = arith.constant 0 : index
    %181 = vector.load %arg10[%c0_115, %c0_116] : memref<1152x512xbf16, #tpu.memory_space<vmem>>, vector<1152x512xbf16>
    %cst_117 = arith.constant dense<0.000000e+00> : vector<3x512xf32>
    %182 = tpu.matmul %180, %181, %cst_117 {dimension_numbers = #tpu.dot_dimension_numbers<[1], [0], [0], [1], [0, 0, 1, 1], [], []>} : vector<3x1152xbf16>, vector<1152x512xbf16>, vector<3x512xf32> -> vector<3x512xf32>
    %c0_118 = arith.constant 0 : index
    %c0_119 = arith.constant 0 : index
    %183 = vector.load %arg11[%c0_118, %c0_119] : memref<3x1xf32, #tpu.memory_space<vmem>>, vector<3x1xf32>
    %184 = vector.broadcast %183 : vector<3x1xf32> to vector<3x512xf32>
    %185 = arith.addf %182, %184 : vector<3x512xf32>
    %c17_i32 = arith.constant 17 : i32
    %186 = tpu.dynamic_rotate %185 by %c17_i32 dim 1 : vector<3x512xf32>, i32 -> vector<3x512xf32>
    %c0_120 = arith.constant 0 : index
    %c0_121 = arith.constant 0 : index
    %c0_122 = arith.constant 0 : index
    %187 = vector.load %arg14[%c0_120, %c0_121, %c0_122] : memref<9x1x512xf32, #tpu.memory_space<vmem>>, vector<1x1x512xf32>
    %188 = vector.shape_cast %187 : vector<1x1x512xf32> to vector<1x512xf32>
    %189 = vector.broadcast %188 : vector<1x512xf32> to vector<3x512xf32>
    %190 = arith.mulf %186, %189 : vector<3x512xf32>
    %c16_i32 = arith.constant 16 : i32
    %191 = tpu.dynamic_rotate %185 by %c16_i32 dim 1 : vector<3x512xf32>, i32 -> vector<3x512xf32>
    %c1_123 = arith.constant 1 : index
    %c0_124 = arith.constant 0 : index
    %c0_125 = arith.constant 0 : index
    %192 = vector.load %arg14[%c1_123, %c0_124, %c0_125] : memref<9x1x512xf32, #tpu.memory_space<vmem>>, vector<1x1x512xf32>
    %193 = vector.shape_cast %192 : vector<1x1x512xf32> to vector<1x512xf32>
    %194 = vector.broadcast %193 : vector<1x512xf32> to vector<3x512xf32>
    %195 = arith.mulf %191, %194 : vector<3x512xf32>
    %c15_i32 = arith.constant 15 : i32
    %196 = tpu.dynamic_rotate %185 by %c15_i32 dim 1 : vector<3x512xf32>, i32 -> vector<3x512xf32>
    %c2_126 = arith.constant 2 : index
    %c0_127 = arith.constant 0 : index
    %c0_128 = arith.constant 0 : index
    %197 = vector.load %arg14[%c2_126, %c0_127, %c0_128] : memref<9x1x512xf32, #tpu.memory_space<vmem>>, vector<1x1x512xf32>
    %198 = vector.shape_cast %197 : vector<1x1x512xf32> to vector<1x512xf32>
    %199 = vector.broadcast %198 : vector<1x512xf32> to vector<3x512xf32>
    %200 = arith.mulf %196, %199 : vector<3x512xf32>
    %c1_i32_129 = arith.constant 1 : i32
    %201 = tpu.dynamic_rotate %185 by %c1_i32_129 dim 1 : vector<3x512xf32>, i32 -> vector<3x512xf32>
    %c3_130 = arith.constant 3 : index
    %c0_131 = arith.constant 0 : index
    %c0_132 = arith.constant 0 : index
    %202 = vector.load %arg14[%c3_130, %c0_131, %c0_132] : memref<9x1x512xf32, #tpu.memory_space<vmem>>, vector<1x1x512xf32>
    %203 = vector.shape_cast %202 : vector<1x1x512xf32> to vector<1x512xf32>
    %204 = vector.broadcast %203 : vector<1x512xf32> to vector<3x512xf32>
    %205 = arith.mulf %201, %204 : vector<3x512xf32>
    %c511_i32 = arith.constant 511 : i32
    %206 = tpu.dynamic_rotate %185 by %c511_i32 dim 1 : vector<3x512xf32>, i32 -> vector<3x512xf32>
    %c5_133 = arith.constant 5 : index
    %c0_134 = arith.constant 0 : index
    %c0_135 = arith.constant 0 : index
    %207 = vector.load %arg14[%c5_133, %c0_134, %c0_135] : memref<9x1x512xf32, #tpu.memory_space<vmem>>, vector<1x1x512xf32>
    %208 = vector.shape_cast %207 : vector<1x1x512xf32> to vector<1x512xf32>
    %209 = vector.broadcast %208 : vector<1x512xf32> to vector<3x512xf32>
    %210 = arith.mulf %206, %209 : vector<3x512xf32>
    %c497_i32 = arith.constant 497 : i32
    %211 = tpu.dynamic_rotate %185 by %c497_i32 dim 1 : vector<3x512xf32>, i32 -> vector<3x512xf32>
    %c6_136 = arith.constant 6 : index
    %c0_137 = arith.constant 0 : index
    %c0_138 = arith.constant 0 : index
    %212 = vector.load %arg14[%c6_136, %c0_137, %c0_138] : memref<9x1x512xf32, #tpu.memory_space<vmem>>, vector<1x1x512xf32>
    %213 = vector.shape_cast %212 : vector<1x1x512xf32> to vector<1x512xf32>
    %214 = vector.broadcast %213 : vector<1x512xf32> to vector<3x512xf32>
    %215 = arith.mulf %211, %214 : vector<3x512xf32>
    %c496_i32 = arith.constant 496 : i32
    %216 = tpu.dynamic_rotate %185 by %c496_i32 dim 1 : vector<3x512xf32>, i32 -> vector<3x512xf32>
    %c7_139 = arith.constant 7 : index
    %c0_140 = arith.constant 0 : index
    %c0_141 = arith.constant 0 : index
    %217 = vector.load %arg14[%c7_139, %c0_140, %c0_141] : memref<9x1x512xf32, #tpu.memory_space<vmem>>, vector<1x1x512xf32>
    %218 = vector.shape_cast %217 : vector<1x1x512xf32> to vector<1x512xf32>
    %219 = vector.broadcast %218 : vector<1x512xf32> to vector<3x512xf32>
    %220 = arith.mulf %216, %219 : vector<3x512xf32>
    %c495_i32 = arith.constant 495 : i32
    %221 = tpu.dynamic_rotate %185 by %c495_i32 dim 1 : vector<3x512xf32>, i32 -> vector<3x512xf32>
    %c8_142 = arith.constant 8 : index
    %c0_143 = arith.constant 0 : index
    %c0_144 = arith.constant 0 : index
    %222 = vector.load %arg14[%c8_142, %c0_143, %c0_144] : memref<9x1x512xf32, #tpu.memory_space<vmem>>, vector<1x1x512xf32>
    %223 = vector.shape_cast %222 : vector<1x1x512xf32> to vector<1x512xf32>
    %224 = vector.broadcast %223 : vector<1x512xf32> to vector<3x512xf32>
    %225 = arith.mulf %221, %224 : vector<3x512xf32>
    %226 = tpu.concatenate %190, %195, %200, %205, %185, %210, %215, %220, %225 in 0 : vector<3x512xf32>, vector<3x512xf32>, vector<3x512xf32>, vector<3x512xf32>, vector<3x512xf32>, vector<3x512xf32>, vector<3x512xf32>, vector<3x512xf32>, vector<3x512xf32> -> vector<27x512xf32>
    %227 = arith.truncf %226 : vector<27x512xf32> to vector<27x512xbf16>
    %c0_145 = arith.constant 0 : index
    %c0_146 = arith.constant 0 : index
    %228 = vector.load %arg12[%c0_145, %c0_146] : memref<3x27xbf16, #tpu.memory_space<vmem>>, vector<3x27xbf16>
    %cst_147 = arith.constant dense<0.000000e+00> : vector<3x512xf32>
    %229 = tpu.matmul %228, %227, %cst_147 {dimension_numbers = #tpu.dot_dimension_numbers<[1], [0], [0], [1], [0, 0, 1, 1], [], []>} : vector<3x27xbf16>, vector<27x512xbf16>, vector<3x512xf32> -> vector<3x512xf32>
    %c0_148 = arith.constant 0 : index
    %c0_149 = arith.constant 0 : index
    %230 = vector.load %arg13[%c0_148, %c0_149] : memref<3x1xf32, #tpu.memory_space<vmem>>, vector<3x1xf32>
    %231 = vector.broadcast %230 : vector<3x1xf32> to vector<3x512xf32>
    %232 = arith.addf %229, %231 : vector<3x512xf32>
    %cst_150 = arith.constant 0.000000e+00 : f32
    %233 = vector.broadcast %cst_150 : f32 to vector<3x512xf32>
    %234 = arith.maximumf %232, %233 : vector<3x512xf32>
    %c0_151 = arith.constant 0 : index
    %c0_152 = arith.constant 0 : index
    %235 = vector.load %arg15[%c0_151, %c0_152] : memref<3x3xbf16, #tpu.memory_space<vmem>>, vector<3x3xbf16>
    %236 = arith.truncf %234 : vector<3x512xf32> to vector<3x512xbf16>
    %cst_153 = arith.constant dense<0.000000e+00> : vector<3x512xf32>
    %237 = tpu.matmul %235, %236, %cst_153 {dimension_numbers = #tpu.dot_dimension_numbers<[1], [0], [0], [1], [0, 0, 1, 1], [], []>} : vector<3x3xbf16>, vector<3x512xbf16>, vector<3x512xf32> -> vector<3x512xf32>
    %c0_154 = arith.constant 0 : index
    %c0_155 = arith.constant 0 : index
    %238 = vector.load %arg16[%c0_154, %c0_155] : memref<3x1xf32, #tpu.memory_space<vmem>>, vector<3x1xf32>
    %239 = vector.broadcast %238 : vector<3x1xf32> to vector<3x512xf32>
    %240 = arith.addf %237, %239 : vector<3x512xf32>
    %cst_156 = arith.constant 0.000000e+00 : f32
    %241 = vector.broadcast %cst_156 : f32 to vector<3x512xf32>
    %242 = arith.subf %241, %240 : vector<3x512xf32>
    %243 = math.exp %242 : vector<3x512xf32>
    %cst_157 = arith.constant 1.000000e+00 : f32
    %244 = vector.broadcast %cst_157 : f32 to vector<3x512xf32>
    %245 = arith.addf %244, %243 : vector<3x512xf32>
    %cst_158 = arith.constant 1.000000e+00 : f32
    %246 = vector.broadcast %cst_158 : f32 to vector<3x512xf32>
    %247 = arith.divf %246, %245 : vector<3x512xf32>
    %c0_159 = arith.constant 0 : index
    %c0_160 = arith.constant 0 : index
    %248 = vector.load %arg17[%c0_159, %c0_160] : memref<3x512xf32, #tpu.memory_space<vmem>>, vector<3x512xf32>
    tpu.vector_store %arg17[%c0_159, %c0_160], %247 {strides = array<i32>} : memref<3x512xf32, #tpu.memory_space<vmem>>, vector<3x512xf32>,
    return
  }
}

</mosaic_0001>

<bundles_post_ra>
// kernel: conv_decoder_forward.1
= control target key start
LH: loop header
LB: loop body
LE: loop exit
PB: predicated region body
PF: predicated region fallthrough
CT: control target
= control target key end

     0   :  { %s6278_s0 = inlined_call_operand.hbm [shape: f32[2,8], index: 0, kind: input, shape index: {}]   ;;  %s6279_s1 = inlined_call_operand.hbm [shape: f32[8,16,16], index: 1, kind: input, shape index: {}]   ;;  %s6280_s2 = inlined_call_operand.hbm [shape: f32[16,16], index: 2, kind: input, shape index: {}]   ;;  %s6281_s3 = inlined_call_operand.vmem [shape: bf16[72,16], index: 3, kind: input, shape index: {}]   ;;  %s6282_s4 = inlined_call_operand.hbm [shape: bf16[288,128], index: 4, kind: input, shape index: {}]   ;;  %s6283_s5 = inlined_call_operand.vmem [shape: f32[8,1], index: 5, kind: input, shape index: {}]   ;;  %s6284_s6 = inlined_call_operand.hbm [shape: bf16[8,72], index: 6, kind: input, shape index: {}]   ;;  %s6285_s7 = inlined_call_operand.vmem [shape: f32[8,1], index: 7, kind: input, shape index: {}]   ;;  %s6286_s8 = inlined_call_operand.hbm [shape: f32[9,1,128], index: 8, kind: input, shape index: {}]   ;;  %s6287_s9 = inlined_call_operand.vmem [shape: bf16[27,8], index: 9, kind: input, shape index: {}]   ;;  %s6288_s10 = inlined_call_operand.hbm [shape: bf16[1152,512], index: 10, kind: input, shape index: {}]   ;;  %s6289_s11 = inlined_call_operand.vmem [shape: f32[3,1], index: 11, kind: input, shape index: {}]   ;;  %s6290_s12 = inlined_call_operand.hbm [shape: bf16[3,27], index: 12, kind: input, shape index: {}]   ;;  %s6291_s13 = inlined_call_operand.vmem [shape: f32[3,1], index: 13, kind: input, shape index: {}]   ;;  %s6292_s14 = inlined_call_operand.hbm [shape: f32[9,1,512], index: 14, kind: input, shape index: {}]   ;;  %s6293_s15 = inlined_call_operand.hbm [shape: bf16[3,3], index: 15, kind: input, shape index: {}]   ;;  %s6294_s16 = inlined_call_operand.vmem [shape: f32[3,1], index: 16, kind: input, shape index: {}]   ;;  %s6295_s17 = inlined_call_operand.vmem [shape: f32[3,512], index: 17, kind: output, shape index: {}]  }
   0x1   :  { %6297 = sst [smem:[#allocation24_spill]] %s6278_s0 }
   0x2   :  { %6298 = sst [smem:[#allocation25_spill]] %s6279_s1 }
   0x3   :  { %22 = vsyncpa [#allocation4], 0 }
   0x4   :  { %23 = vsyncpa [#allocation3], 0 }
   0x5   :  { %24 = vsyncpa [#allocation7], 0 }
   0x6   :  { %25 = vsyncpa [#allocation10], 0 }
   0x7   :  { %26 = vsyncpa [#allocation13], 0 }
   0x8   :  { %27 = vsyncpa [#allocation16], 0  ;;  %s54_s26 = sshll.u32 %s6280_s2, 4  ;;  %s5535_s27 = smov [#allocation6]   ;;  %s55_s26 = int_to_ptr.hbm [resolvable:$true] %s54_s26 }
   0x9   :  { %s56_s28 = sshll.u32 %s5535_s27, 4  ;;  %s85_s30 = sshll.u32 %s6284_s6, 4  ;;  %s57_s28 = int_to_ptr.vmem [resolvable:$true] %s56_s28  ;;  %s86_s30 = int_to_ptr.hbm [resolvable:$true] %s85_s30 }
   0xa   :  { %s6296_s18 = smov 128   ;;  %s5537_s19 = smov 8  }
   0xb   :  { %62 = dma.hbm_to_vmem [thread:$0]  %s55_s26, 256, %s57_s28, [#allocation7], %s6296_s18, %s6296_s18, %s5537_s19  }
   0xc   :  { %s5538_s1 = smov [#allocation9]   ;;  %s112_s22 = sshll.u32 %s6288_s10, 4  ;;  %s113_s22 = int_to_ptr.hbm [resolvable:$true] %s112_s22 }
   0xd   :  { %s87_s20 = sshll.u32 %s5538_s1, 4  ;;  %s5539_s23 = smov [#allocation12]   ;;  %s88_s20 = int_to_ptr.vmem [resolvable:$true] %s87_s20 }
   0xe   :  { %90 = dma.hbm_to_vmem [thread:$0]  %s86_s30, 64, %s88_s20, [#allocation10]  }
   0xf   :  { %s114_s24 = sshll.u32 %s5539_s23, 4  ;;  %s5540_s6 = smov 256   ;;  %s115_s24 = int_to_ptr.vmem [resolvable:$true] %s114_s24 }
  0x10   :  { %s5541_s25 = smov 16   ;;  %s140_s26 = sshll.u32 %s6292_s14, 4  ;;  %s141_s26 = int_to_ptr.hbm [resolvable:$true] %s140_s26 }
  0x11   :  { %120 = dma.hbm_to_vmem [thread:$0]  %s113_s22, 36864, %s115_s24, [#allocation13], %s5540_s6, %s5540_s6, %s5541_s25  }
  0x12   :  { %s5542_s28 = smov [#allocation15]   ;;  %s6299_s21 = sld [smem:[#allocation24_spill]] }
  0x13   :  { %s142_s0 = sshll.u32 %s5542_s28, 4  ;;  %s5543_s30 = smov 64   ;;  %s143_s0 = int_to_ptr.vmem [resolvable:$true] %s142_s0 }
  0x14   :  { %s5544_s20 = smov 4   ;;  %s6300_s23 = sld [smem:[#allocation25_spill]] }
  0x15   :  { %148 = dma.hbm_to_vmem [thread:$0]  %s141_s26, 576, %s143_s0, [#allocation16], %s5543_s30, %s5543_s30, %s5544_s20  }
  0x16   :  { %s5545_s6 = smov [#allocation2]   ;;  %s5546_s14 = smov [#allocation5]  }
  0x17   :  { %s43_s27 = sshll.u32 %s5546_s14, 4  ;;  %s69_s18 = sshll.u32 %s6282_s4, 4  ;;  %s44_s27 = int_to_ptr.vmem [resolvable:$true] %s43_s27  ;;  %s70_s18 = int_to_ptr.hbm [resolvable:$true] %s69_s18 }
  0x18   :  { %s33_s10 = sshll.u32 %s6299_s21, 4  ;;  %s6301_s1 = smov 128   ;;  %s34_s10 = int_to_ptr.hbm [resolvable:$true] %s33_s10 }
  0x19   :  { %36 = dma.hbm_to_smem %s34_s10, 32, %s5545_s6, [#allocation4]  }
  0x1a   :  { %s41_s24 = sshll.u32 %s6300_s23, 4  ;;  %s97_s21 = sshll.u32 %s6286_s8, 4  ;;  %s42_s24 = int_to_ptr.hbm [resolvable:$true] %s41_s24  ;;  %s98_s21 = int_to_ptr.hbm [resolvable:$true] %s97_s21 }
  0x1b   :  { %49 = dma.hbm_to_vmem [thread:$0]  %s42_s24, 2048, %s44_s27, [#allocation3], %s6301_s1, %s6301_s1, %s5537_s19  }
  0x1c   :  { %s5547_s2 = smov [#allocation8]   ;;  %s5548_s10 = smov [#allocation11]  }
  0x1d   :  { %s71_s22 = sshll.u32 %s5547_s2, 4  ;;  %s99_s23 = sshll.u32 %s5548_s10, 4  ;;  %s72_s22 = int_to_ptr.vmem [resolvable:$true] %s71_s22  ;;  %s100_s23 = int_to_ptr.vmem [resolvable:$true] %s99_s23 }
  0x1e   :  { %77 = dma.hbm_to_vmem [thread:$0]  %s70_s18, 2304, %s72_s22, [#allocation7], %s5543_s30, %s5543_s30, %s5544_s20  }
  0x1f   :  { %s128_s14 = sshll.u32 %s6290_s12, 4  ;;  %s5549_s29 = smov 1   ;;  %s129_s14 = int_to_ptr.hbm [resolvable:$true] %s128_s14 }
  0x20   :  { %105 = dma.hbm_to_vmem [thread:$0]  %s98_s21, 144, %s100_s23, [#allocation10], %s5541_s25, %s5541_s25, %s5549_s29  }
  0x21   :  { %s5550_s8 = smov [#allocation14]   ;;  %s154_s1 = sshll.u32 %s6293_s15, 4  ;;  %s155_s1 = int_to_ptr.hbm [resolvable:$true] %s154_s1 }
  0x22   :  { %s130_s24 = sshll.u32 %s5550_s8, 4  ;;  %s5551_s20 = smov [#allocation17]   ;;  %s131_s24 = int_to_ptr.vmem [resolvable:$true] %s130_s24 }
  0x23   :  { %133 = dma.hbm_to_vmem [thread:$0]  %s129_s14, 32, %s131_s24, [#allocation13]  }
  0x24   :  { %s156_s18 = sshll.u32 %s5551_s20, 4  ;;  %s157_s18 = int_to_ptr.vmem [resolvable:$true] %s156_s18 }
  0x25   :  { %159 = dma.hbm_to_vmem [thread:$0]  %s155_s1, 32, %s157_s18, [#allocation16]  }
  0x26   :  { %5523 = dma.done.wait [#allocation4], 32  }
  0x27   :  { %5524 = vsyncadd [#allocation4], 4294967264 }
  0x28   :  { %5525 = dma.done.wait [#allocation3], 2048  }
  0x29   :  { %5526 = vsyncadd [#allocation3], 4294965248 }
  0x2a   :  { %5527 = dma.done.wait [#allocation7], 2560  }
  0x2b   :  { %5528 = vsyncadd [#allocation7], 4294964736 }
  0x2c   :  { %5529 = dma.done.wait [#allocation10], 208  }
  0x2d   :  { %5530 = vsyncadd [#allocation10], 4294967088 }
  0x2e   :  { %5531 = dma.done.wait [#allocation13], 36896  }
  0x2f   :  { %5532 = vsyncadd [#allocation13], 4294930400 }
  0x30   :  { %5533 = dma.done.wait [#allocation16], 608  }
  0x31   :  { %5534 = vsyncadd [#allocation16], 4294966688 }
  0x32   :  { %202 = sfence }
  0x33   :  { %s206_s12 = sld [smem:[#allocation2]]  ;;  %v207_v0 = vld [vmem:[#allocation5] sm:$0xff]  ;;  %v208_v1 = vld [vmem:[#allocation5 + $0x8] sm:$0xff]  ;;  %v5707_v9 = vld [vmem:[#allocation5 + $0x10] sm:$0xff]  ;;  %vm333_vm0 = vcmask 130048   ;;  %vm441_vm1 = vcmask 261120  }
  0x34   :  { %v204_v3 = vld [vmem:[#allocation6] sm:$0xff]  ;;  %v205_v4 = vld [vmem:[#allocation6 + $0x8] sm:$0xff]  ;;  %s3636_s15 = sld [smem:[#allocation2 + $0x80]]  ;;  %v5709_v10 = vld [vmem:[#allocation5 + $0x18] sm:$0xff]  ;;  %vm443_vm2 = vcmask 523264   ;;  %vm445_vm3 = vcmask 785408  }
  0x35   :  { %s3637_s26 = sld [smem:[#allocation2 + $0x81]]  ;;  %v5713_v11 = vld [vmem:[#allocation5 + $0x20] sm:$0xff]  ;;  %v5715_v12 = vld [vmem:[#allocation5 + $0x28] sm:$0xff]  ;;  %v5719_v17 = vld [vmem:[#allocation5 + $0x30] sm:$0xff]  ;;  %vm724_vm4 = vcmask 1043456   ;;  %vm720_vm5 = vcmask 588800  }
  0x36   :  { %s3638_s0 = sld [smem:[#allocation2 + $0x82]]  ;;  %v5721_v18 = vld [vmem:[#allocation5 + $0x38] sm:$0xff]  ;;  %v243_v26 = vld [vmem:[#allocation5 + $0x40] sm:$0xff]  ;;  %v244_v27 = vld [vmem:[#allocation5 + $0x48] sm:$0xff]  ;;  %vm757_vm6 = vcmask 64512   ;;  %vm790_vm7 = vcmask 1041408  }
  0x37   :  { %s3639_s21 = sld [smem:[#allocation2 + $0x83]]  ;;  %v252_v34 = vld [vmem:[#allocation5 + $0x50] sm:$0xff]  ;;  %v253_v35 = vld [vmem:[#allocation5 + $0x58] sm:$0xff]  ;;  %v261_v41 = vld [vmem:[#allocation5 + $0x60] sm:$0xff]  ;;  %vm800_vm8 = vcmask 1040384   ;;  %vm3356_vm13 = vcmask 1044480  }
  0x38   :  { %s5705_s2 = sld [smem:[#allocation2 + $0x84]]  ;;  %v262_v42 = vld [vmem:[#allocation5 + $0x68] sm:$0xff]  ;;  %v270_v48 = vld [vmem:[#allocation5 + $0x70] sm:$0xff]  ;;  %v271_v49 = vld [vmem:[#allocation5 + $0x78] sm:$0xff]  ;;  %vm3334_vm14 = vcmask 1045504  }
  0x39   :  { %v209_v2 = vstv %s206_s12  ;;  %s5711_s22 = sld [smem:[#allocation2 + $0x85]] }
  0x3a   :  { %v210_v5 = vmul.f32 %v209_v2, %v207_v0  ;;  %v211_v6 = vmul.f32 %v209_v2, %v208_v1  ;;  %v278_v13 = vstv %s3636_s15  ;;  %s5717_s10 = sld [smem:[#allocation2 + $0x86]] }
  0x3b   :  { %v279_v14 = vmul.f32 %v278_v13, %v207_v0  ;;  %v280_v15 = vmul.f32 %v278_v13, %v208_v1  ;;  %v284_v16 = vstv %s3637_s26  ;;  %s5725_s23 = sld [smem:[#allocation2 + $0x87]]  ;;  %s5562_s26 = smov 112  }
  0x3c   :  { %v5701_v7 = vadd.f32 %v211_v6, %v205_v4  ;;  %v5703_v8 = vadd.f32 %v210_v5, %v204_v3  ;;  %v285_v19 = vmul.f32 %v284_v16, %v5707_v9  ;;  %v286_v20 = vmul.f32 %v284_v16, %v5709_v10  ;;  %s3629_s4 = sld [smem:[#allocation2 + $0x1]] }
  0x3d   :  { %v290_v21 = vstv %s3638_s0  ;;  %v281_v22 = vadd.f32 %v279_v14, %v204_v3  ;;  %v282_v23 = vadd.f32 %v280_v15, %v205_v4  ;;  %v296_v28 = vstv %s3639_s21  ;;  %s3630_s6 = sld [smem:[#allocation2 + $0x2]]  ;;  %s5563_s0 = smov 113  }
  0x3e   :  { %v291_v24 = vmul.f32 %v290_v21, %v5713_v11  ;;  %v292_v25 = vmul.f32 %v290_v21, %v5715_v12  ;;  %v302_v29 = vstv %s5705_s2  ;;  %v297_v32 = vmul.f32 %v296_v28, %v5719_v17  ;;  %s3631_s14 = sld [smem:[#allocation2 + $0x3]]  ;;  %s5564_s21 = smov 15  }
  0x3f   :  { %v287_v30 = vadd.f32 %v285_v19, %v281_v22  ;;  %v288_v31 = vadd.f32 %v286_v20, %v282_v23  ;;  %v298_v33 = vmul.f32 %v296_v28, %v5721_v18  ;;  %v308_v36 = vstv %s5711_s22  ;;  %s3632_s8 = sld [smem:[#allocation2 + $0x4]]  ;;  %s5565_s2 = smov 17  }
  0x40   :  { %v303_v39 = vmul.f32 %v302_v29, %v243_v26  ;;  %v304_v40 = vmul.f32 %v302_v29, %v244_v27  ;;  %v314_v43 = vstv %s5717_s10  ;;  %v309_v46 = vmul.f32 %v308_v36, %v252_v34  ;;  %s3633_s24 = sld [smem:[#allocation2 + $0x5]]  ;;  %s5552_s10 = smov 96  }
  0x41   :  { %v293_v37 = vadd.f32 %v291_v24, %v287_v30  ;;  %v294_v38 = vadd.f32 %v292_v25, %v288_v31  ;;  %v310_v47 = vmul.f32 %v308_v36, %v253_v35  ;;  %v320_v50 = vstv %s5725_s23  ;;  %s3634_s27 = sld [smem:[#allocation2 + $0x6]]  ;;  %s5553_s23 = smov 32  }
  0x42   :  { %v315_v53 = vmul.f32 %v314_v43, %v261_v41  ;;  %v316_v54 = vmul.f32 %v314_v43, %v262_v42  ;;  %v321_v57 = vmul.f32 %v320_v50, %v270_v48  ;;  %v322_v58 = vmul.f32 %v320_v50, %v271_v49  ;;  %s3635_s28 = sld [smem:[#allocation2 + $0x7]]  ;;  %v4911_v43 = vld [vmem:[%s6281_s3 + $0x10] sm:$0xff] }
  0x43   :  { %v299_v44 = vadd.f32 %v297_v32, %v293_v37  ;;  %v300_v45 = vadd.f32 %v298_v33, %v294_v38  ;;  %v218_v0 = vstv %s3629_s4  ;;  %v227_v1 = vstv %s3630_s6  ;;  %s5556_s4 = smov 121   ;;  %s5557_s6 = smov 119  }
  0x44   :  { %v219_v2 = vmul.f32 %v218_v0, %v5707_v9  ;;  %v220_v3 = vmul.f32 %v218_v0, %v5709_v10  ;;  %v236_v4 = vstv %s3631_s14  ;;  %v228_v5 = vmul.f32 %v227_v1, %v5713_v11  ;;  %v4917_v0 = vld [vmem:[#allocation8 + $0x20] sm:$0xff]  ;;  %s5558_s14 = smov 7  }
  0x45   :  { %v305_v51 = vadd.f32 %v303_v39, %v299_v44  ;;  %v306_v52 = vadd.f32 %v304_v40, %v300_v45  ;;  %v229_v6 = vmul.f32 %v227_v1, %v5715_v12  ;;  %v245_v13 = vstv %s3632_s8  ;;  %v4912_v44 = vld [vmem:[%s6281_s3 + $0x18] sm:$0xff]  ;;  %v4916_v1 = vld [vmem:[#allocation8 + $0x18] sm:$0xff]  ;;  %s5559_s8 = smov 127  }
  0x46   :  { %v237_v14 = vmul.f32 %v236_v4, %v5719_v17  ;;  %v238_v15 = vmul.f32 %v236_v4, %v5721_v18  ;;  %v221_v16 = vadd.f32 %v219_v2, %v5703_v8  ;;  %v222_v19 = vadd.f32 %v220_v3, %v5701_v7  ;;  %v4925_v2 = vld [vmem:[#allocation8 + $0x60] sm:$0xff]  ;;  %v4915_v3 = vld [vmem:[#allocation8 + $0x10] sm:$0xff]  ;;  %v4924_v4 = vld [vmem:[#allocation8 + $0x58] sm:$0xff] }
  0x47   :  { %v311_v55 = vadd.f32 %v309_v46, %v305_v51  ;;  %v312_v56 = vadd.f32 %v310_v47, %v306_v52  ;;  %v254_v20 = vstv %s3633_s24  ;;  %v246_v21 = vmul.f32 %v245_v13, %v243_v26  ;;  %v344_v46 = vld [vmem:[%s6281_s3 + $0x20] sm:$0xf] }
  0x48   :  { %v247_v9 = vmul.f32 %v245_v13, %v244_v27  ;;  %v230_v22 = vadd.f32 %v228_v5, %v221_v16  ;;  %v231_v10 = vadd.f32 %v229_v6, %v222_v19  ;;  %v263_v23 = vstv %s3634_s27  ;;  %v4930_v5 = vld [vmem:[#allocation8 + $0x88] sm:$0xff]  ;;  %v4923_v13 = vld [vmem:[#allocation8 + $0x50] sm:$0xff] }
  0x49   :  { %v317_v59 = vadd.f32 %v315_v53, %v311_v55  ;;  %v318_v60 = vadd.f32 %v316_v54, %v312_v56  ;;  %v255_v24 = vmul.f32 %v254_v20, %v252_v34  ;;  %v256_v25 = vmul.f32 %v254_v20, %v253_v35  ;;  %638 = vmatpush.bf16.msra.mxu3 %v4930_v5  ;;  %v4914_v6 = vld [vmem:[#allocation8 + $0x8] sm:$0xff] }
  0x4a   :  { %v239_v11 = vadd.f32 %v237_v14, %v230_v22  ;;  %v240_v28 = vadd.f32 %v238_v15, %v231_v10  ;;  %v272_v12 = vstv %s3635_s28  ;;  %v264_v29 = vmul.f32 %v263_v23, %v261_v41  ;;  %v4909_v41 = vld [vmem:[%s6281_s3] sm:$0xff]  ;;  %v4929_v14 = vld [vmem:[#allocation8 + $0x80] sm:$0xff]  ;;  %v4922_v16 = vld [vmem:[#allocation8 + $0x48] sm:$0xff]  ;;  %s5560_s28 = smov 9  }
  0x4b   :  { %v323_v61 = vadd.f32 %v321_v57, %v317_v59  ;;  %v324_v62 = vadd.f32 %v322_v58, %v318_v60  ;;  %v265_v30 = vmul.f32 %v263_v23, %v262_v42  ;;  %v273_v18 = vmul.f32 %v272_v12, %v270_v48  ;;  %v4910_v42 = vld [vmem:[%s6281_s3 + $0x8] sm:$0xff]  ;;  %v4919_v60 = vld [vmem:[#allocation8 + $0x30] sm:$0xff]  ;;  %v4913_v15 = vld [vmem:[#allocation8] sm:$0xff] }
  0x4c   :  { %v248_v17 = vadd.f32 %v246_v21, %v239_v11  ;;  %v249_v31 = vadd.f32 %v247_v9, %v240_v28  ;;  %v274_v32 = vmul.f32 %v272_v12, %v271_v49  ;;  %v363_v47 = vunpack.c.l.b16 %v344_v46  ;;  %v4920_v58 = vld [vmem:[#allocation8 + $0x38] sm:$0xff]  ;;  %v4921_v21 = vld [vmem:[#allocation8 + $0x40] sm:$0xff]  ;;  %v489_v22 = vld [vmem:[%s6283_s5] sm:$0xff]  ;;  %s5555_s5 = smov 120  }
  0x4d   :  { %v5253_v63 = vpack.i.bf16 %v324_v62, %v323_v61  ;;  %v4928_v59 = vld [vmem:[#allocation8 + $0x78] sm:$0xff]  ;;  %606 = vmatpush.bf16.msra.mxu1 %v4920_v58  ;;  %v4927_v61 = vld [vmem:[#allocation8 + $0x70] sm:$0xff]  ;;  %v4918_v62 = vld [vmem:[#allocation8 + $0x28] sm:$0xff]  ;;  %639 = vmatpush.bf16.msra.mxu3 %v4929_v14  ;;  %v5554_v10 = vmov 0  }
  0x4e   :  { %v257_v8 = vadd.f32 %v255_v24, %v248_v17  ;;  %v258_v33 = vadd.f32 %v256_v25, %v249_v31  ;;  %v368_v49 = vpack.c.b16 %v363_v47, %v363_v47  ;;  %619 = vmatpush.bf16.msra.mxu2 %v4928_v59  ;;  %5268 = vset.pattern.permute.xlu2 %v5554_v10  ;;  %v5273_v46 = vld [vmem:[#allocation11 + $0x6] ss:$0 sm:$0xff] }
  0x4f   :  { %5254 = vrot.lane.b32.xlu0 %v5253_v63, %s5541_s25  ;;  %v4926_v63 = vld [vmem:[#allocation8 + $0x68] sm:$0xff]  ;;  %5270 = vset.pattern.permute.xlu1 %v5554_v10 }
  0x50   :  { %v266_v7 = vadd.f32 %v264_v29, %v257_v8  ;;  %v267_v36 = vadd.f32 %v265_v30, %v258_v33  ;;  %5269 = vset.pattern.permute.xlu0 %v5554_v10  ;;  %v3847_v10 = vld [vmem:[#allocation12 + $0xc0] sm:$0xf] }
  0x51   :  { %607 = vmatpush.bf16.msra.mxu1 %v4919_v60 }
  0x52   :  { %v275_v26 = vadd.f32 %v273_v18, %v266_v7  ;;  %v276_v27 = vadd.f32 %v274_v32, %v267_v36  ;;  %620 = vmatpush.bf16.msra.mxu2 %v4927_v61  ;;  %v5272_v61 = vld [vmem:[#allocation11 + $0x3] ss:$0 sm:$0xff] }
  0x55   :  { %608 = vmatpush.bf16.msra.mxu1 %v4918_v62 }
  0x56   :  { %621 = vmatpush.bf16.msra.mxu2 %v4926_v63 }
  0x59   :  { %609 = vmatpush.bf16.msra.mxu1 %v4917_v0 }
  0x5a   :  { %622 = vmatpush.bf16.msra.mxu2 %v4925_v2  ;;  %v5278_v2 = vld [vmem:[#allocation11] ss:$0 sm:$0xff] }
  0x5d   :  { %610 = vmatpush.bf16.msra.mxu1 %v4916_v1  ;;  %v5277_v1 = vld [vmem:[#allocation11 + $0x1] ss:$0 sm:$0xff] }
  0x5e   :  { %623 = vmatpush.bf16.msra.mxu2 %v4924_v4 }
  0x61   :  { %611 = vmatpush.bf16.msra.mxu1 %v4915_v3 }
  0x62   :  { %624 = vmatpush.bf16.msra.mxu2 %v4923_v13 }
  0x65   :  { %612 = vmatpush.bf16.msra.mxu1 %v4914_v6 }
  0x66   :  { %625 = vmatpush.bf16.msra.mxu2 %v4922_v16  ;;  %v713_v16 = vld [vmem:[#allocation9] sm:$0xf] }
  0x69   :  { %613 = vmatpush.bf16.msra.mxu1 %v4913_v15 }
  0x6a   :  { %626 = vmatpush.bf16.msra.mxu2 %v4921_v21  ;;  %v3991_v21 = vld [vmem:[#allocation12 + $0x1e0] sm:$0xf] }
  0xc1   :  { %v5255_v37 = vpop.permute.xlu0 %5254 }
  0xc2   :  { %v5257_v38 = vunpack.i.h.bf16 %v5255_v37  ;;  %v5256_v34 = vunpack.i.l.bf16 %v5255_v37 }
  0xc4   :  { %v334_v35 = vsel %vm333_vm0, %v275_v26, %v5256_v34  ;;  %v335_v39 = vsel %vm333_vm0, %v276_v27, %v5257_v38 }
  0xc5   :  { %v345_v40 = vpack.c.bf16 %v335_v39, %v334_v35 }
  0xc7   :  { %391 = vmatpush.bf16.msra.mxu0 %v345_v40 }
  0xca   :  { %3660 = vmatmul.msk.bf16.vlgmr.msra.gmra.mxu0 %vm333_vm0, %v4909_v41 }
  0xda   :  { %3661 = vmatmul.msk.bf16.gmra.mxu0 %vm333_vm0, %v4910_v42 }
  0xea   :  { %3662 = vmatmul.msk.bf16.gmra.mxu0 %vm333_vm0, %v4911_v43  ;;  %v714_v43 = vld [vmem:[%s6285_s7] sm:$0xff] }
  0xfa   :  { %3663 = vmatmul.msk.bf16.gmra.mxu0 %vm333_vm0, %v4912_v44  ;;  %v5274_v44 = vld [vmem:[#allocation11 + $0x8] ss:$0 sm:$0xff] }
 0x10a   :  { %3664 = vmatmul.msk.bf16.gmra.mxu0 %vm333_vm0, %v368_v49 }
 0x147   :  { %v5762_v45 = vpop.f32.mrf.mxu0 }
 0x14f   :  { %v395_v48 = vpop.f32.mrf.mxu0 }
 0x157   :  { %v398_v50 = vpop.f32.mrf.mxu0 }
 0x15f   :  { %v400_v51 = vpop.f32.mrf.mxu0 }
 0x160   :  { %426 = vrot.lane.b32.xlu2 %v400_v51, %s5552_s10 }
 0x167   :  { %v5768_v52 = vpop.f32.mrf.mxu0 }
 0x168   :  { %492 = vperm.xlu2 %5268, %v489_v22   ;;  %v4995_v22 = vld [vmem:[#allocation12 + $0x1ec] sm:$0xf0] }
 0x16f   :  { %v405_v53 = vpop.f32.mrf.mxu0 }
 0x170   :  { %v5258_v54 = vpack.i.bf16 %v395_v48, %v405_v53 }
 0x172   :  { %5259 = vrot.lane.b32.xlu0 %v5258_v54, %s5553_s23  ;;  %v5276_v54 = vld [vmem:[#allocation11 + $0x5] ss:$0 sm:$0xff] }
 0x177   :  { %v408_v55 = vpop.f32.mrf.mxu0 }
 0x178   :  { %v5263_v56 = vpack.i.bf16 %v398_v50, %v408_v55  ;;  %v5271_v50 = vld [vmem:[#allocation11 + $0x7] ss:$0 sm:$0xff] }
 0x17a   :  { %5264 = vrot.lane.b32.xlu1 %v5263_v56, %s5543_s30 }
 0x17f   :  { %v410_v57 = vpop.f32.mrf.mxu0 }
 0x182   :  { %438 = vrot.lane.b32.xlu1 %v410_v57, %s5552_s10  ;;  %v5275_v57 = vld [vmem:[#allocation11 + $0x2] ss:$0 sm:$0xff] }
 0x187   :  { %v413_v19 = vpop.f32.mrf.mxu0 }
 0x188   :  { %v452_v20 = vpack.c.bf16 %v413_v19, %v413_v19  ;;  %v3863_v19 = vld [vmem:[#allocation12 + $0xe0] sm:$0xf] }
 0x18a   :  { %3737 = vmatmul.msk.bf16.vlgmr.msra.gmra.mxu3 %vm441_vm1, %v452_v20  ;;  %v4963_v20 = vld [vmem:[#allocation12 + $0xec] sm:$0xf0] }
 0x18f   :  { %v415_v9 = vpop.f32.mrf.mxu0 }
 0x190   :  { %v3864_v9 = vor.u32 %v4963_v20, %v3863_v19 }
 0x192   :  { %2552 = vmatpush.bf16.msrb.mxu1 %v3864_v9  ;;  %v5015_v9 = vld [vmem:[#allocation12 + $0x28c] sm:$0xf0] }
 0x1ba   :  { %v427_v12 = vpop.permute.xlu2 %426 }
 0x1c2   :  { %v493_v38 = vpop.permute.xlu2 %492 }
 0x1e4   :  { %v5260_v23 = vpop.permute.xlu0 %5259 }
 0x1e5   :  { %v5262_v24 = vunpack.i.h.bf16 %v5260_v23  ;;  %v5261_v29 = vunpack.i.l.bf16 %v5260_v23  ;;  %v4959_v23 = vld [vmem:[#allocation12 + $0xcc] sm:$0xf0] }
 0x1e7   :  { %v442_v28 = vsel %vm441_vm1, %v5762_v45, %v5262_v24  ;;  %v447_v32 = vsel %vm441_vm1, %v5768_v52, %v5261_v29  ;;  %v3992_v24 = vor.u32 %v4995_v22, %v3991_v21  ;;  %v4071_v21 = vld [vmem:[#allocation12 + $0x280] sm:$0xf]  ;;  %vm3347_vm1 = vcmask 1046528  }
 0x1e8   :  { %v3767_v22 = vld [vmem:[#allocation12 + $0x20] sm:$0xf] }
 0x1e9   :  { %2565 = vmatpush.bf16.msrb.mxu2 %v3992_v24  ;;  %v4939_v24 = vld [vmem:[#allocation12 + $0x2c] sm:$0xf0] }
 0x1ec   :  { %v5265_v25 = vpop.permute.xlu1 %5264 }
 0x1ed   :  { %v5267_v11 = vunpack.i.h.bf16 %v5265_v25  ;;  %v5266_v17 = vunpack.i.l.bf16 %v5265_v25  ;;  %v3975_v25 = vld [vmem:[#allocation12 + $0x1c0] sm:$0xf] }
 0x1ef   :  { %v444_v30 = vsel %vm443_vm2, %v442_v28, %v5267_v11  ;;  %v448_v33 = vsel %vm443_vm2, %v447_v32, %v5266_v17  ;;  %v4991_v11 = vld [vmem:[#allocation12 + $0x1cc] sm:$0xf0]  ;;  %v3848_v28 = vor.u32 %v4959_v23, %v3847_v10  ;;  %v4247_v17 = vld [vmem:[#allocation12 + $0x3e0] sm:$0xf] }
 0x1f0   :  { %v446_v31 = vsel %vm445_vm3, %v444_v30, %v427_v12  ;;  %v3831_v12 = vld [vmem:[#allocation12 + $0xa0] sm:$0xf]  ;;  %v3976_v29 = vor.u32 %v4991_v11, %v3975_v25  ;;  %v4955_v30 = vld [vmem:[#allocation12 + $0xac] sm:$0xf0] }
 0x1f1   :  { %v450_v18 = vpack.c.bf16 %v446_v31, %v446_v31  ;;  %v5059_v31 = vld [vmem:[#allocation12 + $0x3ec] sm:$0xf0]  ;;  %2553 = vmatpush.bf16.msrb.mxu1 %v3848_v28  ;;  %v4167_v25 = vld [vmem:[#allocation12 + $0x340] sm:$0xf] }
 0x1f2   :  { %2566 = vmatpush.bf16.msrb.mxu2 %v3976_v29  ;;  %v5039_v11 = vld [vmem:[#allocation12 + $0x34c] sm:$0xf0]  ;;  %v3895_v28 = vld [vmem:[#allocation12 + $0x120] sm:$0xf]  ;;  %v4072_v29 = vor.u32 %v5015_v9, %v4071_v21 }
 0x1f3   :  { %614 = vmatmul.bf16.vlgmr.msra.gmra.mxu1 %v450_v18  ;;  %v4327_v21 = vld [vmem:[#allocation12 + $0x480] sm:$0xf] }
 0x1f4   :  { %v439_v8 = vpop.permute.xlu1 %438 }
 0x1f5   :  { %v449_v7 = vsel %vm445_vm3, %v448_v33, %v439_v8  ;;  %v3959_v8 = vld [vmem:[#allocation12 + $0x1a0] sm:$0xf]  ;;  %v4987_v33 = vld [vmem:[#allocation12 + $0x1ac] sm:$0xf0] }
 0x1f6   :  { %v451_v36 = vpack.c.bf16 %v449_v7, %v449_v7  ;;  %v4248_v7 = vor.u32 %v5059_v31, %v4247_v17  ;;  %v3768_v17 = vor.u32 %v4939_v24, %v3767_v22  ;;  %v4055_v31 = vld [vmem:[#allocation12 + $0x260] sm:$0xf]  ;;  %v5079_v22 = vld [vmem:[#allocation12 + $0x48c] sm:$0xf0] }
 0x1f8   :  { %627 = vmatmul.bf16.vlgmr.msra.gmra.mxu2 %v451_v36  ;;  %2591 = vmatpush.bf16.msrb.mxu0 %v4248_v7  ;;  %v4935_v7 = vld [vmem:[#allocation12 + $0xc] sm:$0xf0] }
 0x20d   :  { %v641_v26 = vpop.f32.mrf.mxu3 }
 0x215   :  { %v643_v27 = vpop.f32.mrf.mxu3 }
 0x216   :  { %v3832_v27 = vor.u32 %v4955_v30, %v3831_v12  ;;  %v4971_v12 = vld [vmem:[#allocation12 + $0x12c] sm:$0xf0]  ;;  %v3745_v30 = vld [vmem:[%s6287_s9 + $0x8] sm:$0xf] }
 0x218   :  { %2554 = vmatpush.bf16.msrb.mxu1 %v3832_v27  ;;  %v4932_v27 = vld [vmem:[%s6287_s9 + $0x8] sm:$0x30] }
 0x270   :  { %v615_v37 = vpop.f32.mrf.mxu1 }
 0x271   :  { %v616_v35 = vadd.f32 %v615_v37, %v493_v38  ;;  %v4119_v37 = vld [vmem:[#allocation12 + $0x2e0] sm:$0xf]  ;;  %v5027_v38 = vld [vmem:[#allocation12 + $0x2ec] sm:$0xf0] }
 0x278   :  { %v617_v34 = vpop.f32.mrf.mxu1 }
 0x279   :  { %v5055_v34 = vld [vmem:[#allocation12 + $0x3cc] sm:$0xf0] }
 0x27b   :  { %v628_v39 = vpop.f32.mrf.mxu2 }
 0x27c   :  { %v629_v40 = vadd.f32 %v628_v39, %v616_v35  ;;  %v3960_v39 = vor.u32 %v4987_v33, %v3959_v8  ;;  %v4168_v8 = vor.u32 %v5039_v11, %v4167_v25  ;;  %v3896_v33 = vor.u32 %v4971_v12, %v3895_v28  ;;  %v4455_v28 = vld [vmem:[#allocation12 + $0x580] sm:$0xf]  ;;  %v5111_v12 = vld [vmem:[#allocation12 + $0x58c] sm:$0xf0] }
 0x27e   :  { %v642_v41 = vadd.f32 %v641_v26, %v629_v40  ;;  %v4231_v26 = vld [vmem:[#allocation12 + $0x3c0] sm:$0xf]  ;;  %2567 = vmatpush.bf16.msrb.mxu2 %v3960_v39  ;;  %v4967_v39 = vld [vmem:[#allocation12 + $0x10c] sm:$0xf0] }
 0x27f   :  { %v3815_v40 = vld [vmem:[#allocation12 + $0x80] sm:$0xf] }
 0x280   :  { %692 = vrot.lane.b32.xlu2 %v642_v41, %s5555_s5  ;;  %684 = vrot.lane.b32.xlu1 %v642_v41, %s5556_s4 }
 0x281   :  { %700 = vrot.lane.b32.xlu0 %v642_v41, %s5557_s6 }
 0x283   :  { %v630_v42 = vpop.f32.mrf.mxu2 }
 0x284   :  { %v4232_v42 = vor.u32 %v5055_v34, %v4231_v26  ;;  %v5035_v26 = vld [vmem:[#allocation12 + $0x32c] sm:$0xf0] }
 0x286   :  { %2592 = vmatpush.bf16.msrb.mxu0 %v4232_v42  ;;  %v5007_v42 = vld [vmem:[#allocation12 + $0x24c] sm:$0xf0] }
 0x288   :  { %668 = vrot.lane.b32.xlu2 %v642_v41, %s5549_s29  ;;  %660 = vrot.lane.b32.xlu1 %v642_v41, %s5558_s14 }
 0x289   :  { %676 = vrot.lane.b32.xlu0 %v642_v41, %s5559_s8 }
 0x290   :  { %717 = vperm.xlu2 %5268, %v714_v43   ;;  %652 = vrot.lane.b32.xlu1 %v642_v41, %s5537_s19  ;;  %v3943_v43 = vld [vmem:[#allocation12 + $0x180] sm:$0xf] }
 0x291   :  { %645 = vrot.lane.b32.xlu0 %v642_v41, %s5560_s28 }
 0x2da   :  { %v693_v48 = vpop.permute.xlu2 %692 }
 0x2db   :  { %v699_v55 = vmul.f32 %v5271_v50, %v693_v48  ;;  %v4120_v48 = vor.u32 %v5027_v38, %v4119_v37  ;;  %v4375_v37 = vld [vmem:[#allocation12 + $0x4e0] sm:$0xf]  ;;  %v5091_v38 = vld [vmem:[#allocation12 + $0x4ec] sm:$0xf0] }
 0x2e2   :  { %v669_v62 = vpop.permute.xlu2 %668 }
 0x2e3   :  { %v675_v3 = vmul.f32 %v5272_v61, %v669_v62  ;;  %v4979_v61 = vld [vmem:[#allocation12 + $0x16c] sm:$0xf0] }
 0x2e4   :  { %v5047_v62 = vld [vmem:[#allocation12 + $0x38c] sm:$0xf0] }
 0x2ea   :  { %v718_v18 = vpop.permute.xlu2 %717 }
 0x2f2   :  { %v685_v45 = vpop.permute.xlu1 %684 }
 0x2f3   :  { %v701_v47 = vpop.permute.xlu0 %700  ;;  %v691_v52 = vmul.f32 %v5273_v46, %v685_v45  ;;  %v4215_v45 = vld [vmem:[#allocation12 + $0x3a0] sm:$0xf] }
 0x2f4   :  { %v707_v49 = vmul.f32 %v5274_v44, %v701_v47  ;;  %v4983_v44 = vld [vmem:[#allocation12 + $0x18c] sm:$0xf0] }
 0x2f5   :  { %v711_v59 = vpack.c.bf16 %v699_v55, %v691_v52  ;;  %v4931_v47 = vld [vmem:[%s6287_s9] sm:$0xff] }
 0x2f6   :  { %v712_v51 = vpack.c.bf16 %v707_v49, %v707_v49  ;;  %v5051_v49 = vld [vmem:[#allocation12 + $0x3ac] sm:$0xf0] }
 0x2f7   :  { %v5023_v52 = vld [vmem:[#allocation12 + $0x2cc] sm:$0xf0] }
 0x2f8   :  { %v726_v53 = vsel %vm724_vm4, %v712_v51, 0  ;;  %v4103_v51 = vld [vmem:[#allocation12 + $0x2c0] sm:$0xf] }
 0x2f9   :  { %731 = vmatpush.bf16.msrb.mxu3 %v726_v53  ;;  %v3799_v53 = vld [vmem:[#allocation12 + $0x60] sm:$0xf] }
 0x2fa   :  { %v661_v56 = vpop.permute.xlu1 %660 }
 0x2fb   :  { %v677_v58 = vpop.permute.xlu0 %676  ;;  %v667_v0 = vmul.f32 %v5275_v57, %v661_v56  ;;  %v3944_v56 = vor.u32 %v4983_v44, %v3943_v43  ;;  %v4947_v57 = vld [vmem:[#allocation12 + $0x6c] sm:$0xf0]  ;;  %v4503_v43 = vld [vmem:[#allocation12 + $0x5e0] sm:$0xf] }
 0x2fc   :  { %v683_v60 = vmul.f32 %v5276_v54, %v677_v58  ;;  %v4216_v54 = vor.u32 %v5051_v49, %v4215_v45  ;;  %v4199_v58 = vld [vmem:[#allocation12 + $0x380] sm:$0xf]  ;;  %v5123_v44 = vld [vmem:[#allocation12 + $0x5ec] sm:$0xf0] }
 0x2fd   :  { %732 = vmatpush.bf16.msrb.mxu3 %v711_v59  ;;  %v709_v13 = vpack.c.bf16 %v675_v3, %v667_v0  ;;  %v3800_v0 = vor.u32 %v4947_v57, %v3799_v53  ;;  %v3783_v3 = vld [vmem:[#allocation12 + $0x40] sm:$0xf]  ;;  %2568 = vmatpush.bf16.msrb.mxu2 %v3944_v56  ;;  %v4504_v56 = vor.u32 %v5123_v44, %v4503_v43  ;;  %v5103_v44 = vld [vmem:[#allocation12 + $0x54c] sm:$0xf0] }
 0x2fe   :  { %v710_v63 = vpack.c.bf16 %v683_v60, %v642_v41  ;;  %v4951_v41 = vld [vmem:[#allocation12 + $0x8c] sm:$0xf0]  ;;  %v3927_v60 = vld [vmem:[#allocation12 + $0x160] sm:$0xf]  ;;  %2593 = vmatpush.bf16.msrb.mxu0 %v4216_v54 }
 0x2ff   :  { %v3816_v50 = vor.u32 %v4951_v41, %v3815_v40  ;;  %v4039_v40 = vld [vmem:[#allocation12 + $0x240] sm:$0xf]  ;;  %v5187_v54 = vld [vmem:[#allocation12 + $0x7ec] sm:$0xf0] }
 0x300   :  { %v4135_v49 = vld [vmem:[#allocation12 + $0x300] sm:$0xf] }
 0x301   :  { %733 = vmatpush.bf16.msrb.mxu3 %v710_v63  ;;  %v4104_v63 = vor.u32 %v5023_v52, %v4103_v51  ;;  %2555 = vmatpush.bf16.msrb.mxu1 %v3816_v50  ;;  %v5031_v50 = vld [vmem:[#allocation12 + $0x30c] sm:$0xf0]  ;;  %v4759_v53 = vld [vmem:[#allocation12 + $0x7e0] sm:$0xf] }
 0x302   :  { %v653_v4 = vpop.permute.xlu1 %652  ;;  %v5087_v52 = vld [vmem:[#allocation12 + $0x4cc] sm:$0xf0]  ;;  %v4023_v57 = vld [vmem:[#allocation12 + $0x220] sm:$0xf] }
 0x303   :  { %v659_v5 = vmul.f32 %v5277_v1, %v653_v4  ;;  %v646_v6 = vpop.permute.xlu0 %645  ;;  %v4087_v1 = vld [vmem:[#allocation12 + $0x2a0] sm:$0xf]  ;;  %v4200_v4 = vor.u32 %v5047_v62, %v4199_v58  ;;  %v5003_v58 = vld [vmem:[#allocation12 + $0x22c] sm:$0xf0] }
 0x304   :  { %v651_v14 = vmul.f32 %v5278_v2, %v646_v6  ;;  %v5019_v2 = vld [vmem:[#allocation12 + $0x2ac] sm:$0xf0]  ;;  %v4423_v43 = vld [vmem:[#allocation12 + $0x540] sm:$0xf] }
 0x305   :  { %734 = vmatpush.bf16.msrb.mxu3 %v709_v13  ;;  %v4943_v6 = vld [vmem:[#allocation12 + $0x4c] sm:$0xf0]  ;;  %v4183_v13 = vld [vmem:[#allocation12 + $0x360] sm:$0xf]  ;;  %v4088_v19 = vor.u32 %v5019_v2, %v4087_v1  ;;  %2556 = vmatpush.bf16.msrb.mxu1 %v3800_v0  ;;  %v4760_v0 = vor.u32 %v5187_v54, %v4759_v53 }
 0x306   :  { %v708_v15 = vpack.c.bf16 %v659_v5, %v651_v14  ;;  %v3928_v5 = vor.u32 %v4979_v61, %v3927_v60  ;;  %v5043_v14 = vld [vmem:[#allocation12 + $0x36c] sm:$0xf0]  ;;  %v3784_v20 = vor.u32 %v4943_v6, %v3783_v3  ;;  %2594 = vmatpush.bf16.msrb.mxu0 %v4200_v4  ;;  %v4136_v61 = vor.u32 %v5031_v50, %v4135_v49  ;;  %v4743_v2 = vld [vmem:[#allocation12 + $0x7c0] sm:$0xf] }
 0x307   :  { %v4184_v10 = vor.u32 %v5043_v14, %v4183_v13  ;;  %v5119_v60 = vld [vmem:[#allocation12 + $0x5cc] sm:$0xf0]  ;;  %v4024_v4 = vor.u32 %v5003_v58, %v4023_v57  ;;  %v4007_v6 = vld [vmem:[#allocation12 + $0x200] sm:$0xf]  ;;  %v4424_v50 = vor.u32 %v5103_v44, %v4423_v43  ;;  %v5025_v43 = vld [vmem:[#allocation12 + $0x2e4] sm:$0xf] }
 0x308   :  { %2569 = vmatpush.bf16.msrb.mxu2 %v3928_v5  ;;  %v5083_v1 = vld [vmem:[#allocation12 + $0x4ac] sm:$0xf0]  ;;  %v4471_v14 = vld [vmem:[#allocation12 + $0x5a0] sm:$0xf]  ;;  %v4121_v44 = vld [vmem:[#allocation12 + $0x2f0] sm:$0xf0] }
 0x309   :  { %735 = vmatpush.bf16.msrb.mxu3 %v708_v15  ;;  %v3911_v15 = vld [vmem:[#allocation12 + $0x140] sm:$0xf]  ;;  %2557 = vmatpush.bf16.msrb.mxu1 %v3784_v20  ;;  %v5183_v3 = vld [vmem:[#allocation12 + $0x7cc] sm:$0xf0] }
 0x30a   :  { %2595 = vmatpush.bf16.msrb.mxu0 %v4184_v10  ;;  %v4999_v13 = vld [vmem:[#allocation12 + $0x20c] sm:$0xf0]  ;;  %v4744_v9 = vor.u32 %v5183_v3, %v4743_v2  ;;  %v4727_v10 = vld [vmem:[#allocation12 + $0x7a0] sm:$0xf] }
 0x30b   :  { %v5155_v20 = vld [vmem:[#allocation12 + $0x6ec] sm:$0xf0]  ;;  %v4008_v24 = vor.u32 %v4999_v13, %v4007_v6  ;;  %v4407_v53 = vld [vmem:[#allocation12 + $0x520] sm:$0xf] }
 0x30c   :  { %3738 = vmatmul.msk.bf16.vlgmr.msrb.gmra.mxu3 %vm720_vm5, %v713_v16  ;;  %v4975_v16 = vld [vmem:[#allocation12 + $0x14c] sm:$0xf0]  ;;  %v4567_v58 = vld [vmem:[#allocation12 + $0x660] sm:$0xf]  ;;  %vm3329_vm5 = vcmask 1042432  }
 0x30d   :  { %v3912_v23 = vor.u32 %v4975_v16, %v3911_v15  ;;  %2558 = vmatpush.bf16.msrb.mxu1 %v3768_v17  ;;  %v5115_v15 = vld [vmem:[#allocation12 + $0x5ac] sm:$0xf0]  ;;  %v4679_v3 = vld [vmem:[#allocation12 + $0x740] sm:$0xf] }
 0x30e   :  { %2596 = vmatpush.bf16.msrb.mxu0 %v4168_v8  ;;  %v4472_v25 = vor.u32 %v5115_v15, %v4471_v14  ;;  %v5151_v17 = vld [vmem:[#allocation12 + $0x6cc] sm:$0xf0]  ;;  %v4711_v8 = vld [vmem:[#allocation12 + $0x780] sm:$0xf] }
 0x30f   :  { %2570 = vmatpush.bf16.msrb.mxu2 %v3912_v23  ;;  %v5179_v23 = vld [vmem:[#allocation12 + $0x7ac] sm:$0xf0]  ;;  %v4551_v6 = vld [vmem:[#allocation12 + $0x640] sm:$0xf] }
 0x310   :  { %v5067_v49 = vld [vmem:[#allocation12 + $0x42c] sm:$0xf0] }
 0x311   :  { %v5099_v54 = vld [vmem:[#allocation12 + $0x52c] sm:$0xf0] }
 0x312   :  { %v5171_v57 = vld [vmem:[#allocation12 + $0x76c] sm:$0xf0] }
 0x313   :  { %2571 = vmatpush.bf16.msrb.mxu2 %v3896_v33  ;;  %v5175_v33 = vld [vmem:[#allocation12 + $0x78c] sm:$0xf0] }
 0x314   :  { %v5095_v2 = vld [vmem:[#allocation12 + $0x50c] sm:$0xf0] }
 0x315   :  { %v5135_v13 = vld [vmem:[#allocation12 + $0x64c] sm:$0xf0] }
 0x316   :  { %v4552_v15 = vor.u32 %v5135_v13, %v4551_v6 }
 0x38f   :  { %v737_v32 = vpop.f32.mrf.mxu3 }
 0x390   :  { %v738_v36 = vadd.f32 %v737_v32, %v718_v18  ;;  %v5011_v18 = vld [vmem:[#allocation12 + $0x26c] sm:$0xf0]  ;;  %v3751_v32 = vld [vmem:[#allocation12] sm:$0xf] }
 0x391   :  { %v4056_v34 = vor.u32 %v5011_v18, %v4055_v31  ;;  %v3752_v41 = vor.u32 %v4935_v7, %v3751_v32  ;;  %v4311_v31 = vld [vmem:[#allocation12 + $0x460] sm:$0xf]  ;;  %v4728_v18 = vor.u32 %v5179_v23, %v4727_v10  ;;  %v5075_v32 = vld [vmem:[#allocation12 + $0x46c] sm:$0xf0]  ;;  %v4456_v7 = vor.u32 %v5111_v12, %v4455_v28 }
 0x392   :  { %v741_v35 = vmax.f32 %v738_v36, 0.0  ;;  %v4151_v36 = vld [vmem:[#allocation12 + $0x320] sm:$0xf]  ;;  %v5159_v23 = vld [vmem:[#allocation12 + $0x70c] sm:$0xf0] }
 0x393   :  { %v4152_v45 = vor.u32 %v5035_v26, %v4151_v36  ;;  %2559 = vmatpush.bf16.msrb.mxu1 %v3752_v41  ;;  %v4439_v26 = vld [vmem:[#allocation12 + $0x560] sm:$0xf]  ;;  %v1106_v12 = vld [vmem:[%s6289_s11] sm:$0x7]  ;;  %s5561_s11 = smov 111  }
 0x394   :  { %v746_v46 = vpack.c.bf16 %v741_v35, %v741_v35  ;;  %v3879_v35 = vld [vmem:[#allocation12 + $0x100] sm:$0xf]  ;;  %1109 = vperm.xlu0 %5269, %v1106_v12  }
 0x395   :  { %v3880_v51 = vor.u32 %v4967_v39, %v3879_v35  ;;  %2597 = vmatpush.bf16.msrb.mxu0 %v4152_v45  ;;  %v4712_v35 = vor.u32 %v5175_v33, %v4711_v8  ;;  %v4295_v39 = vld [vmem:[#allocation12 + $0x440] sm:$0xf] }
 0x396   :  { %v765_v55 = vsel %vm724_vm4, %v746_v46, 0  ;;  %v3746_v46 = vor.u32 %v4932_v27, %v3745_v30  ;;  %v4615_v30 = vld [vmem:[#allocation12 + $0x6c0] sm:$0xf]  ;;  %v5107_v27 = vld [vmem:[#allocation12 + $0x56c] sm:$0xf0] }
 0x397   :  { %v739_v59 = vpop.f32.mrf.mxu3  ;;  %774 = vmatpush.bf16.msra.mxu3 %v765_v55  ;;  %v4040_v55 = vor.u32 %v5007_v42, %v4039_v40  ;;  %2572 = vmatpush.bf16.msrb.mxu2 %v3880_v51  ;;  %v4616_v36 = vor.u32 %v5151_v17, %v4615_v30  ;;  %v5071_v40 = vld [vmem:[#allocation12 + $0x44c] sm:$0xf0]  ;;  %v4440_v41 = vor.u32 %v5107_v27, %v4439_v26  ;;  %v4647_v10 = vld [vmem:[#allocation12 + $0x700] sm:$0xf]  ;;  %v4961_v17 = vld [vmem:[#allocation12 + $0xe4] sm:$0xf] }
 0x398   :  { %v4487_v59 = vld [vmem:[#allocation12 + $0x5c0] sm:$0xf]  ;;  %v4296_v45 = vor.u32 %v5071_v40, %v4295_v39  ;;  %v5219_v30 = vld [vmem:[#allocation12 + $0x8ec] sm:$0xf0] }
 0x399   :  { %v4488_v5 = vor.u32 %v5119_v60, %v4487_v59  ;;  %2598 = vmatpush.bf16.msrb.mxu0 %v4136_v61  ;;  %v5139_v59 = vld [vmem:[#allocation12 + $0x66c] sm:$0xf0] }
 0x39a   :  { %3747 = vmatmul.msk.bf16.vlgmr.msra.gmra.mxu3 %vm757_vm6, %v4931_v47  ;;  %v4376_v47 = vor.u32 %v5091_v38, %v4375_v37  ;;  %v4312_v37 = vor.u32 %v5075_v32, %v4311_v31  ;;  %v4599_v38 = vld [vmem:[#allocation12 + $0x6a0] sm:$0xf]  ;;  %v4568_v61 = vor.u32 %v5139_v59, %v4567_v58  ;;  %v3865_v31 = vld [vmem:[#allocation12 + $0xf0] sm:$0xf0]  ;;  %v5211_v39 = vld [vmem:[#allocation12 + $0x8ac] sm:$0xf0] }
 0x39b   :  { %2578 = vmatpush.bf16.msrb.mxu3 %v4120_v48  ;;  %v4359_v48 = vld [vmem:[#allocation12 + $0x4c0] sm:$0xf]  ;;  %2617 = vmatpush.bf16.msra.mxu2 %v4504_v56  ;;  %v4408_v56 = vor.u32 %v5099_v54, %v4407_v53  ;;  %v3868_v26 = vor.u32 %v4961_v17, %v3865_v31  ;;  %v5207_v53 = vld [vmem:[#allocation12 + $0x88c] sm:$0xf0]  ;;  %v3817_v59 = vld [vmem:[#allocation12 + $0x90] sm:$0xf0] }
 0x39c   :  { %2604 = vmatpush.bf16.msra.mxu1 %v4376_v47  ;;  %v4360_v62 = vor.u32 %v5087_v52, %v4359_v48  ;;  %v5143_v47 = vld [vmem:[#allocation12 + $0x68c] sm:$0xf0]  ;;  %v4279_v48 = vld [vmem:[#allocation12 + $0x420] sm:$0xf]  ;;  %v3785_v31 = vld [vmem:[#allocation12 + $0x50] sm:$0xf0] }
 0x39d   :  { %2643 = vmatpush.bf16.msra.mxu0 %v4760_v0  ;;  %v4280_v52 = vor.u32 %v5067_v49, %v4279_v48  ;;  %v3993_v48 = vld [vmem:[#allocation12 + $0x1f0] sm:$0xf0]  ;;  %v4839_v49 = vld [vmem:[#allocation12 + $0x880] sm:$0xf] }
 0x39f   :  { %2579 = vmatpush.bf16.msrb.mxu3 %v4104_v63  ;;  %v4343_v63 = vld [vmem:[#allocation12 + $0x4a0] sm:$0xf]  ;;  %2618 = vmatpush.bf16.msra.mxu2 %v4488_v5  ;;  %v5167_v5 = vld [vmem:[#allocation12 + $0x74c] sm:$0xf0] }
 0x3a0   :  { %2605 = vmatpush.bf16.msra.mxu1 %v4360_v62  ;;  %v4344_v16 = vor.u32 %v5083_v1, %v4343_v63  ;;  %v4263_v62 = vld [vmem:[#allocation12 + $0x400] sm:$0xf]  ;;  %v5063_v63 = vld [vmem:[#allocation12 + $0x40c] sm:$0xf0]  ;;  %v4680_v14 = vor.u32 %v5167_v5, %v4679_v3 }
 0x3a1   :  { %2644 = vmatpush.bf16.msra.mxu0 %v4744_v9  ;;  %v4264_v0 = vor.u32 %v5063_v63, %v4263_v62  ;;  %v4391_v1 = vld [vmem:[#allocation12 + $0x500] sm:$0xf]  ;;  %v5131_v9 = vld [vmem:[#allocation12 + $0x62c] sm:$0xf0] }
 0x3a2   :  { %v5203_v5 = vld [vmem:[#allocation12 + $0x86c] sm:$0xf0] }
 0x3a3   :  { %2580 = vmatpush.bf16.msrb.mxu3 %v4088_v19  ;;  %v4631_v19 = vld [vmem:[#allocation12 + $0x6e0] sm:$0xf]  ;;  %2619 = vmatpush.bf16.msra.mxu2 %v4472_v25 }
 0x3a4   :  { %v4632_v11 = vor.u32 %v5155_v20, %v4631_v19  ;;  %2606 = vmatpush.bf16.msra.mxu1 %v4344_v16  ;;  %v4663_v16 = vld [vmem:[#allocation12 + $0x720] sm:$0xf]  ;;  %v5163_v19 = vld [vmem:[#allocation12 + $0x72c] sm:$0xf0] }
 0x3a5   :  { %2645 = vmatpush.bf16.msra.mxu0 %v4728_v18  ;;  %v4664_v20 = vor.u32 %v5163_v19, %v4663_v16  ;;  %v4519_v25 = vld [vmem:[#allocation12 + $0x600] sm:$0xf]  ;;  %v5017_v16 = vld [vmem:[#allocation12 + $0x2a4] sm:$0xf]  ;;  %v4089_v19 = vld [vmem:[#allocation12 + $0x2b0] sm:$0xf0] }
 0x3a7   :  { %2581 = vmatpush.bf16.msrb.mxu3 %v4072_v29  ;;  %v4328_v29 = vor.u32 %v5079_v22, %v4327_v21  ;;  %2620 = vmatpush.bf16.msra.mxu2 %v4456_v7  ;;  %v4535_v21 = vld [vmem:[#allocation12 + $0x620] sm:$0xf] }
 0x3a8   :  { %v4536_v22 = vor.u32 %v5131_v9, %v4535_v21  ;;  %v4871_v7 = vld [vmem:[#allocation12 + $0x8c0] sm:$0xf] }
 0x3a9   :  { %2607 = vmatpush.bf16.msra.mxu1 %v4328_v29  ;;  %2646 = vmatpush.bf16.msra.mxu0 %v4712_v35  ;;  %v4887_v29 = vld [vmem:[#allocation12 + $0x8e0] sm:$0xf] }
 0x3aa   :  { %3748 = vmatmul.msk.bf16.gmra.mxu3 %vm757_vm6, %v3746_v46  ;;  %v4583_v46 = vld [vmem:[#allocation12 + $0x680] sm:$0xf]  ;;  %v4888_v32 = vor.u32 %v5219_v30, %v4887_v29  ;;  %v4092_v29 = vor.u32 %v5017_v16, %v4089_v19  ;;  %v4941_v30 = vld [vmem:[#allocation12 + $0x44] sm:$0xf]  ;;  %v4233_v19 = vld [vmem:[#allocation12 + $0x3d0] sm:$0xf0] }
 0x3ab   :  { %2582 = vmatpush.bf16.msrb.mxu3 %v4056_v34  ;;  %v5147_v34 = vld [vmem:[#allocation12 + $0x6ac] sm:$0xf0]  ;;  %2621 = vmatpush.bf16.msra.mxu2 %v4440_v41  ;;  %v4584_v51 = vor.u32 %v5143_v47, %v4583_v46  ;;  %v4855_v35 = vld [vmem:[#allocation12 + $0x8a0] sm:$0xf]  ;;  %v4953_v41 = vld [vmem:[#allocation12 + $0xa4] sm:$0xf] }
 0x3ac   :  { %v4600_v42 = vor.u32 %v5147_v34, %v4599_v38  ;;  %v3849_v38 = vld [vmem:[#allocation12 + $0xd0] sm:$0xf0]  ;;  %v4856_v46 = vor.u32 %v5211_v39, %v4855_v35  ;;  %v4993_v47 = vld [vmem:[#allocation12 + $0x1e4] sm:$0xf]  ;;  %v5195_v35 = vld [vmem:[#allocation12 + $0x82c] sm:$0xf0]  ;;  %v3788_v39 = vor.u32 %v4941_v30, %v3785_v31 }
 0x3ad   :  { %2608 = vmatpush.bf16.msra.mxu1 %v4312_v37  ;;  %v4957_v37 = vld [vmem:[#allocation12 + $0xc4] sm:$0xf]  ;;  %v3996_v63 = vor.u32 %v4993_v47, %v3993_v48  ;;  %vm3376_vm6 = vcmask 220160  }
 0x3ae   :  { %v3852_v40 = vor.u32 %v4957_v37, %v3849_v38  ;;  %v3945_v37 = vld [vmem:[#allocation12 + $0x190] sm:$0xf0]  ;;  %v4977_v48 = vld [vmem:[#allocation12 + $0x164] sm:$0xf] }
 0x3af   :  { %2583 = vmatpush.bf16.msrb.mxu3 %v4040_v55  ;;  %2622 = vmatpush.bf16.msra.mxu2 %v4424_v50  ;;  %v4695_v55 = vld [vmem:[#allocation12 + $0x760] sm:$0xf]  ;;  %v5053_v16 = vld [vmem:[#allocation12 + $0x3c4] sm:$0xf] }
 0x3b0   :  { %v4696_v60 = vor.u32 %v5171_v57, %v4695_v55  ;;  %v4124_v55 = vor.u32 %v5025_v43, %v4121_v44  ;;  %v5009_v44 = vld [vmem:[#allocation12 + $0x264] sm:$0xf] }
 0x3b1   :  { %2609 = vmatpush.bf16.msra.mxu1 %v4296_v45  ;;  %v5049_v30 = vld [vmem:[#allocation12 + $0x3a4] sm:$0xf] }
 0x3b2   :  { %2647 = vmatpush.bf16.msra.mxu0 %v4696_v60  ;;  %v5021_v60 = vld [vmem:[#allocation12 + $0x2c4] sm:$0xf] }
 0x3b3   :  { %2584 = vmatpush.bf16.msrb.mxu3 %v4024_v4  ;;  %2623 = vmatpush.bf16.msra.mxu2 %v4408_v56  ;;  %v4392_v4 = vor.u32 %v5095_v2, %v4391_v1  ;;  %v4949_v56 = vld [vmem:[#allocation12 + $0x84] sm:$0xf]  ;;  %v3977_v2 = vld [vmem:[#allocation12 + $0x1d0] sm:$0xf0] }
 0x3b4   :  { %v4989_v1 = vld [vmem:[#allocation12 + $0x1c4] sm:$0xf]  ;;  %v3820_v6 = vor.u32 %v4949_v56, %v3817_v59  ;;  %v4249_v56 = vld [vmem:[#allocation12 + $0x3f0] sm:$0xf0] }
 0x3b5   :  { %2610 = vmatpush.bf16.msra.mxu1 %v4280_v52  ;;  %v3980_v21 = vor.u32 %v4989_v1, %v3977_v2  ;;  %v4997_v31 = vld [vmem:[#allocation12 + $0x204] sm:$0xf] }
 0x3b6   :  { %2648 = vmatpush.bf16.msra.mxu0 %v4680_v14  ;;  %v4945_v14 = vld [vmem:[#allocation12 + $0x64] sm:$0xf] }
 0x3b7   :  { %2585 = vmatpush.bf16.msrb.mxu3 %v4008_v24  ;;  %2624 = vmatpush.bf16.msra.mxu2 %v4392_v4  ;;  %v4648_v24 = vor.u32 %v5159_v23, %v4647_v10  ;;  %v4823_v4 = vld [vmem:[#allocation12 + $0x860] sm:$0xf]  ;;  %v3961_v10 = vld [vmem:[#allocation12 + $0x1b0] sm:$0xf0] }
 0x3b8   :  { %v4824_v9 = vor.u32 %v5203_v5, %v4823_v4  ;;  %v4377_v4 = vld [vmem:[#allocation12 + $0x4f0] sm:$0xf0] }
 0x3b9   :  { %2611 = vmatpush.bf16.msra.mxu1 %v4264_v0  ;;  %v4840_v0 = vor.u32 %v5207_v53, %v4839_v49 }
 0x3ba   :  { %2649 = vmatpush.bf16.msra.mxu0 %v4664_v20 }
 0x3bb   :  { %2630 = vmatpush.bf16.msra.mxu3 %v4632_v11  ;;  %v5127_v11 = vld [vmem:[#allocation12 + $0x60c] sm:$0xf0] }
 0x3bc   :  { %v4520_v28 = vor.u32 %v5127_v11, %v4519_v25  ;;  %v4807_v11 = vld [vmem:[#allocation12 + $0x840] sm:$0xf] }
 0x3be   :  { %2650 = vmatpush.bf16.msra.mxu0 %v4648_v24 }
 0x3bf   :  { %2631 = vmatpush.bf16.msra.mxu3 %v4616_v36  ;;  %v5215_v36 = vld [vmem:[#allocation12 + $0x8cc] sm:$0xf0] }
 0x3c0   :  { %v4872_v34 = vor.u32 %v5215_v36, %v4871_v7 }
 0x3c3   :  { %2632 = vmatpush.bf16.msra.mxu3 %v4600_v42  ;;  %v3833_v42 = vld [vmem:[#allocation12 + $0xb0] sm:$0xf0] }
 0x3c4   :  { %v3836_v54 = vor.u32 %v4953_v41, %v3833_v42  ;;  %v4937_v41 = vld [vmem:[#allocation12 + $0x24] sm:$0xf]  ;;  %v3769_v42 = vld [vmem:[#allocation12 + $0x30] sm:$0xf0] }
 0x3c5   :  { %v3772_v53 = vor.u32 %v4937_v41, %v3769_v42  ;;  %v4505_v42 = vld [vmem:[#allocation12 + $0x5f0] sm:$0xf0] }
 0x3c7   :  { %2633 = vmatpush.bf16.msra.mxu3 %v4584_v51 }
 0x3cb   :  { %2634 = vmatpush.bf16.msra.mxu3 %v4568_v61  ;;  %v4105_v61 = vld [vmem:[#allocation12 + $0x2d0] sm:$0xf0] }
 0x3cc   :  { %v4108_v13 = vor.u32 %v5021_v60, %v4105_v61  ;;  %v3753_v60 = vld [vmem:[#allocation12 + $0x10] sm:$0xf0]  ;;  %v5005_v61 = vld [vmem:[#allocation12 + $0x244] sm:$0xf] }
 0x3cf   :  { %2635 = vmatpush.bf16.msra.mxu3 %v4552_v15  ;;  %v3801_v15 = vld [vmem:[#allocation12 + $0x70] sm:$0xf0] }
 0x3d0   :  { %v3804_v12 = vor.u32 %v4945_v14, %v3801_v15 }
 0x3d3   :  { %2636 = vmatpush.bf16.msra.mxu3 %v4536_v22  ;;  %v4985_v22 = vld [vmem:[#allocation12 + $0x1a4] sm:$0xf] }
 0x3d4   :  { %v3964_v7 = vor.u32 %v4985_v22, %v3961_v10  ;;  %v4025_v22 = vld [vmem:[#allocation12 + $0x230] sm:$0xf0] }
 0x3d7   :  { %2637 = vmatpush.bf16.msra.mxu3 %v4520_v28  ;;  %v5199_v28 = vld [vmem:[#allocation12 + $0x84c] sm:$0xf0] }
 0x3d8   :  { %v4808_v36 = vor.u32 %v5199_v28, %v4807_v11  ;;  %v3897_v11 = vld [vmem:[#allocation12 + $0x130] sm:$0xf0]  ;;  %v5085_v28 = vld [vmem:[#allocation12 + $0x4c4] sm:$0xf] }
 0x41d   :  { %v776_v18 = vpop.f32.mrf.mxu3 }
 0x41e   :  { %v787_v8 = vrot.slane %v776_v18, 3  ;;  %v5801_v33 = vpack.c.bf16 %v776_v18, %v776_v18  ;;  %v791_v50 = vrot.slane %v776_v18, 6  ;;  %v5013_v18 = vld [vmem:[#allocation12 + $0x284] sm:$0xf] }
 0x420   :  { %v5803_v27 = vpack.c.bf16 %v787_v8, %v787_v8  ;;  %2560 = vmatmul.bf16.vlgmr.msrb.gmra.mxu1 %v5801_v33 }
 0x421   :  { %2656 = vmatpush.bf16.msrb.mxu1 %v4888_v32  ;;  %v4073_v32 = vld [vmem:[#allocation12 + $0x290] sm:$0xf0] }
 0x422   :  { %2573 = vmatmul.bf16.vlgmr.msrb.gmra.mxu2 %v5803_v27 }
 0x423   :  { %2669 = vmatpush.bf16.msrb.mxu2 %v3868_v26  ;;  %v4981_v26 = vld [vmem:[#allocation12 + $0x184] sm:$0xf] }
 0x425   :  { %2657 = vmatpush.bf16.msrb.mxu1 %v4872_v34  ;;  %v778_v45 = vpop.f32.mrf.mxu3  ;;  %v4791_v34 = vld [vmem:[#allocation12 + $0x820] sm:$0xf] }
 0x426   :  { %v792_v51 = vrot.slane %v778_v45, 6  ;;  %v795_v52 = vrot.slane %v778_v45, 1  ;;  %v797_v3 = vrot.slane %v778_v45, 4  ;;  %v801_v23 = vrot.slane %v778_v45, 7  ;;  %v4057_v45 = vld [vmem:[#allocation12 + $0x270] sm:$0xf0] }
 0x427   :  { %2670 = vmatpush.bf16.msrb.mxu2 %v3852_v40  ;;  %v4076_v40 = vor.u32 %v5013_v18, %v4073_v32  ;;  %v4792_v47 = vor.u32 %v5195_v35, %v4791_v34  ;;  %v4009_v18 = vld [vmem:[#allocation12 + $0x210] sm:$0xf0]  ;;  %v4965_v32 = vld [vmem:[#allocation12 + $0x104] sm:$0xf] }
 0x428   :  { %v5807_v57 = vpack.c.bf16 %v795_v52, %v795_v52  ;;  %v793_v58 = vsel %vm790_vm7, %v791_v50, %v792_v51  ;;  %v5814_v25 = vpack.c.bf16 %v797_v3, %v797_v3  ;;  %v3929_v50 = vld [vmem:[#allocation12 + $0x170] sm:$0xf0]  ;;  %v4775_v51 = vld [vmem:[#allocation12 + $0x800] sm:$0xf]  ;;  %v5191_v52 = vld [vmem:[#allocation12 + $0x80c] sm:$0xf0]  ;;  %v4012_v41 = vor.u32 %v4997_v31, %v4009_v18 }
 0x429   :  { %2658 = vmatpush.bf16.msrb.mxu1 %v4856_v46  ;;  %v5810_v62 = vpack.c.bf16 %v793_v58, %v793_v58  ;;  %v3948_v46 = vor.u32 %v4981_v26, %v3945_v37  ;;  %v4933_v58 = vld [vmem:[#allocation12 + $0x4] sm:$0xf]  ;;  %v4776_v1 = vor.u32 %v5191_v52, %v4775_v51  ;;  %v3881_v26 = vld [vmem:[#allocation12 + $0x110] sm:$0xf0] }
 0x42a   :  { %2599 = vmatmul.bf16.vlgmr.msrb.gmra.mxu0 %v5807_v57  ;;  %v5089_v3 = vld [vmem:[#allocation12 + $0x4e4] sm:$0xf]  ;;  %v3756_v14 = vor.u32 %v4933_v58, %v3753_v60  ;;  %v4185_v60 = vld [vmem:[#allocation12 + $0x370] sm:$0xf0] }
 0x42b   :  { %2671 = vmatpush.bf16.msrb.mxu2 %v3836_v54  ;;  %2695 = vmatpush.bf16.msrb.mxu0 %v4124_v55  ;;  %v4060_v54 = vor.u32 %v5009_v44, %v4057_v45  ;;  %v5057_v55 = vld [vmem:[#allocation12 + $0x3e4] sm:$0xf]  ;;  %v4201_v44 = vld [vmem:[#allocation12 + $0x390] sm:$0xf0] }
 0x42c   :  { %2586 = vmatmul.bf16.vlgmr.msrb.gmra.mxu3 %v5810_v62  ;;  %v4252_v5 = vor.u32 %v5057_v55, %v4249_v56  ;;  %v5153_v37 = vld [vmem:[#allocation12 + $0x6e4] sm:$0xf]  ;;  %v4489_v56 = vld [vmem:[#allocation12 + $0x5d0] sm:$0xf0] }
 0x42d   :  { %2682 = vmatpush.bf16.msrb.mxu3 %v3996_v63  ;;  %2659 = vmatpush.bf16.msrb.mxu1 %v4840_v0  ;;  %v781_v20 = vpop.f32.mrf.mxu3  ;;  %v4041_v63 = vld [vmem:[#allocation12 + $0x250] sm:$0xf0]  ;;  %v3932_v0 = vor.u32 %v4977_v48, %v3929_v50  ;;  %v5081_v35 = vld [vmem:[#allocation12 + $0x4a4] sm:$0xf] }
 0x42e   :  { %v802_v24 = vrot.slane %v781_v20, 7  ;;  %v807_v38 = vrot.slane %v781_v20, 5  ;;  %v805_v43 = vrot.slane %v781_v20, 2  ;;  %v4044_v15 = vor.u32 %v5005_v61, %v4041_v63  ;;  %v5149_v48 = vld [vmem:[#allocation12 + $0x6c4] sm:$0xf] }
 0x42f   :  { %2672 = vmatpush.bf16.msrb.mxu2 %v3820_v6  ;;  %2696 = vmatpush.bf16.msrb.mxu0 %v4108_v13  ;;  %v4973_v6 = vld [vmem:[#allocation12 + $0x144] sm:$0xf]  ;;  %v3913_v13 = vld [vmem:[#allocation12 + $0x150] sm:$0xf0] }
 0x430   :  { %2612 = vmatmul.bf16.vlgmr.msra.gmra.mxu1 %v5814_v25  ;;  %v803_v17 = vsel %vm800_vm8, %v801_v23, %v802_v24  ;;  %v5821_v49 = vpack.c.bf16 %v807_v38, %v807_v38  ;;  %v5823_v59 = vpack.c.bf16 %v805_v43, %v805_v43  ;;  %v3916_v10 = vor.u32 %v4973_v6, %v3913_v13  ;;  %v4969_v23 = vld [vmem:[#allocation12 + $0x124] sm:$0xf]  ;;  %v4633_v38 = vld [vmem:[#allocation12 + $0x6f0] sm:$0xf0] }
 0x431   :  { %2683 = vmatpush.bf16.msrb.mxu3 %v3980_v21  ;;  %2660 = vmatpush.bf16.msrb.mxu1 %v4824_v9  ;;  %v5818_v8 = vpack.c.bf16 %v803_v17, %v803_v17  ;;  %v4380_v21 = vor.u32 %v5089_v3, %v4377_v4  ;;  %v5001_v9 = vld [vmem:[#allocation12 + $0x224] sm:$0xf]  ;;  %v4236_v24 = vor.u32 %v5053_v16, %v4233_v19  ;;  %v4217_v17 = vld [vmem:[#allocation12 + $0x3b0] sm:$0xf0] }
 0x432   :  { %v4220_v34 = vor.u32 %v5049_v30, %v4217_v17  ;;  %v5045_v43 = vld [vmem:[#allocation12 + $0x384] sm:$0xf]  ;;  %v4636_v45 = vor.u32 %v5153_v37, %v4633_v38  ;;  %v4617_v50 = vld [vmem:[#allocation12 + $0x6d0] sm:$0xf0] }
 0x433   :  { %2673 = vmatpush.bf16.msrb.mxu2 %v3804_v12  ;;  %2697 = vmatpush.bf16.msrb.mxu0 %v4092_v29  ;;  %v4361_v12 = vld [vmem:[#allocation12 + $0x4d0] sm:$0xf0]  ;;  %v4028_v29 = vor.u32 %v5001_v9, %v4025_v22  ;;  %v4204_v52 = vor.u32 %v5045_v43, %v4201_v44  ;;  %v5117_v55 = vld [vmem:[#allocation12 + $0x5c4] sm:$0xf]  ;;  %v4620_v61 = vor.u32 %v5149_v48, %v4617_v50 }
 0x434   :  { %2625 = vmatmul.bf16.vlgmr.msra.gmra.mxu2 %v5818_v8  ;;  %v5041_v58 = vld [vmem:[#allocation12 + $0x364] sm:$0xf]  ;;  %v4473_v13 = vld [vmem:[#allocation12 + $0x5b0] sm:$0xf0] }
 0x435   :  { %2684 = vmatpush.bf16.msrb.mxu3 %v3964_v7  ;;  %2661 = vmatpush.bf16.msrb.mxu1 %v4808_v36  ;;  %v783_v2 = vpop.f32.mrf.mxu3  ;;  %v3900_v7 = vor.u32 %v4969_v23, %v3897_v11  ;;  %v4364_v36 = vor.u32 %v5085_v28, %v4361_v12  ;;  %v4188_v3 = vor.u32 %v5041_v58, %v4185_v60  ;;  %v5073_v4 = vld [vmem:[#allocation12 + $0x464] sm:$0xf]  ;;  %v4585_v9 = vld [vmem:[#allocation12 + $0x690] sm:$0xf0] }
 0x436   :  { %v5827_v20 = vpack.c.bf16 %v783_v2, %v783_v2  ;;  %v4492_v2 = vor.u32 %v5117_v55, %v4489_v56  ;;  %v5113_v6 = vld [vmem:[#allocation12 + $0x5a4] sm:$0xf]  ;;  %v4457_v28 = vld [vmem:[#allocation12 + $0x590] sm:$0xf0] }
 0x437   :  { %2674 = vmatpush.bf16.msrb.mxu2 %v3788_v39  ;;  %2698 = vmatpush.bf16.msrb.mxu0 %v4076_v40  ;;  %v4345_v39 = vld [vmem:[#allocation12 + $0x4b0] sm:$0xf0]  ;;  %v5121_v40 = vld [vmem:[#allocation12 + $0x5e4] sm:$0xf]  ;;  %v4476_v22 = vor.u32 %v5113_v6, %v4473_v13 }
 0x438   :  { %v4508_v51 = vor.u32 %v5121_v40, %v4505_v42  ;;  %v5069_v23 = vld [vmem:[#allocation12 + $0x444] sm:$0xf]  ;;  %v4569_v18 = vld [vmem:[#allocation12 + $0x670] sm:$0xf0] }
 0x439   :  { %2685 = vmatpush.bf16.msrb.mxu3 %v3948_v46  ;;  %2662 = vmatpush.bf16.msrb.mxu1 %v4792_v47  ;;  %v3884_v46 = vor.u32 %v4965_v32, %v3881_v26  ;;  %v4348_v47 = vor.u32 %v5081_v35, %v4345_v39  ;;  %v5109_v11 = vld [vmem:[#allocation12 + $0x584] sm:$0xf]  ;;  %v4281_v26 = vld [vmem:[#allocation12 + $0x430] sm:$0xf0] }
 0x43a   :  { %2651 = vmatmul.bf16.vlgmr.msra.gmra.mxu0 %v5821_v49  ;;  %v5033_v12 = vld [vmem:[#allocation12 + $0x324] sm:$0xf]  ;;  %v4460_v32 = vor.u32 %v5109_v11, %v4457_v28  ;;  %v4441_v38 = vld [vmem:[#allocation12 + $0x570] sm:$0xf0] }
 0x43b   :  { %2675 = vmatpush.bf16.msrb.mxu2 %v3772_v53  ;;  %2699 = vmatpush.bf16.msrb.mxu0 %v4060_v54  ;;  %v5077_v53 = vld [vmem:[#allocation12 + $0x484] sm:$0xf]  ;;  %v4329_v54 = vld [vmem:[#allocation12 + $0x490] sm:$0xf0] }
 0x43c   :  { %2638 = vmatmul.bf16.vlgmr.msra.gmra.mxu3 %v5823_v59  ;;  %v4332_v63 = vor.u32 %v5077_v53, %v4329_v54  ;;  %v5137_v31 = vld [vmem:[#allocation12 + $0x664] sm:$0xf]  ;;  %v4137_v35 = vld [vmem:[#allocation12 + $0x310] sm:$0xf0] }
 0x43d   :  { %2686 = vmatpush.bf16.msrb.mxu3 %v3932_v0  ;;  %2663 = vmatpush.bf16.msrb.mxu1 %v4776_v1  ;;  %v5145_v0 = vld [vmem:[#allocation12 + $0x6a4] sm:$0xf]  ;;  %v4601_v1 = vld [vmem:[#allocation12 + $0x6b0] sm:$0xf0]  ;;  %v4572_v39 = vor.u32 %v5137_v31, %v4569_v18 }
 0x43e   :  { %v4604_v16 = vor.u32 %v5145_v0, %v4601_v1  ;;  %v5105_v37 = vld [vmem:[#allocation12 + $0x564] sm:$0xf]  ;;  %v4553_v44 = vld [vmem:[#allocation12 + $0x650] sm:$0xf0] }
 0x43f   :  { %2676 = vmatpush.bf16.msrb.mxu2 %v3756_v14  ;;  %2700 = vmatpush.bf16.msrb.mxu0 %v4044_v15  ;;  %v5037_v14 = vld [vmem:[#allocation12 + $0x344] sm:$0xf]  ;;  %v4169_v15 = vld [vmem:[#allocation12 + $0x350] sm:$0xf0] }
 0x440   :  { %2664 = vmatmul.bf16.vlgmr.msrb.gmra.mxu1 %v5827_v20  ;;  %v5185_v40 = vld [vmem:[#allocation12 + $0x7e4] sm:$0xf]  ;;  %v4265_v48 = vld [vmem:[#allocation12 + $0x410] sm:$0xf0] }
 0x441   :  { %2708 = vmatpush.bf16.msra.mxu1 %v4252_v5  ;;  %2687 = vmatpush.bf16.msrb.mxu3 %v3916_v10  ;;  %v4313_v5 = vld [vmem:[#allocation12 + $0x470] sm:$0xf0]  ;;  %v4172_v10 = vor.u32 %v5037_v14, %v4169_v15  ;;  %v5133_v43 = vld [vmem:[#allocation12 + $0x644] sm:$0xf] }
 0x442   :  { %v4316_v19 = vor.u32 %v5073_v4, %v4313_v5  ;;  %v5101_v50 = vld [vmem:[#allocation12 + $0x544] sm:$0xf]  ;;  %v4889_v54 = vld [vmem:[#allocation12 + $0x8f0] sm:$0xf0]  ;;  %v4556_v55 = vor.u32 %v5133_v43, %v4553_v44 }
 0x443   :  { %2721 = vmatpush.bf16.msra.mxu2 %v4380_v21  ;;  %2701 = vmatpush.bf16.msrb.mxu0 %v4028_v29  ;;  %v5141_v21 = vld [vmem:[#allocation12 + $0x684] sm:$0xf]  ;;  %v4153_v29 = vld [vmem:[#allocation12 + $0x330] sm:$0xf0] }
 0x444   :  { %2677 = vmatmul.bf16.vlgmr.msrb.gmra.mxu2 %v5801_v33  ;;  %v4588_v30 = vor.u32 %v5141_v21, %v4585_v9  ;;  %v5217_v53 = vld [vmem:[#allocation12 + $0x8e4] sm:$0xf]  ;;  %v4745_v58 = vld [vmem:[#allocation12 + $0x7d0] sm:$0xf0] }
 0x445   :  { %2709 = vmatpush.bf16.msra.mxu1 %v4236_v24  ;;  %2688 = vmatpush.bf16.msrb.mxu3 %v3900_v7  ;;  %v4297_v24 = vld [vmem:[#allocation12 + $0x450] sm:$0xf0]  ;;  %v4156_v7 = vor.u32 %v5033_v12, %v4153_v29  ;;  %v5181_v56 = vld [vmem:[#allocation12 + $0x7c4] sm:$0xf]  ;;  %v4892_v1 = vor.u32 %v5217_v53, %v4889_v54  ;;  %v3839_v53 = vld [vmem:[#allocation12 + $0xa8] sm:$0xf] }
 0x446   :  { %v4300_v17 = vor.u32 %v5069_v23, %v4297_v24  ;;  %v4409_v4 = vld [vmem:[#allocation12 + $0x530] sm:$0xf0]  ;;  %v5213_v5 = vld [vmem:[#allocation12 + $0x8c4] sm:$0xf]  ;;  %v4996_v23 = vld [vmem:[#allocation12 + $0x1f4] sm:$0xf0] }
 0x447   :  { %2722 = vmatpush.bf16.msra.mxu2 %v4364_v36  ;;  %2702 = vmatpush.bf16.msrb.mxu0 %v4012_v41  ;;  %v5065_v36 = vld [vmem:[#allocation12 + $0x424] sm:$0xf]  ;;  %v4761_v41 = vld [vmem:[#allocation12 + $0x7f0] sm:$0xf0]  ;;  %v4956_v54 = vld [vmem:[#allocation12 + $0xb4] sm:$0xf0] }
 0x448   :  { %v4284_v42 = vor.u32 %v5065_v36, %v4281_v26  ;;  %v4873_v6 = vld [vmem:[#allocation12 + $0x8d0] sm:$0xf0]  ;;  %v5177_v14 = vld [vmem:[#allocation12 + $0x7a4] sm:$0xf]  ;;  %v3983_v26 = vld [vmem:[#allocation12 + $0x1c8] sm:$0xf] }
 0x449   :  { %2710 = vmatpush.bf16.msra.mxu1 %v4220_v34  ;;  %2689 = vmatpush.bf16.msrb.mxu3 %v3884_v46  ;;  %v5029_v34 = vld [vmem:[#allocation12 + $0x304] sm:$0xf]  ;;  %v4729_v15 = vld [vmem:[#allocation12 + $0x7b0] sm:$0xf0]  ;;  %v4876_v9 = vor.u32 %v5213_v5, %v4873_v6  ;;  %v4952_v5 = vld [vmem:[#allocation12 + $0x94] sm:$0xf0] }
 0x44a   :  { %2703 = vmatmul.bf16.vlgmr.msrb.gmra.mxu0 %v5810_v62  ;;  %v4140_v46 = vor.u32 %v5029_v34, %v4137_v35  ;;  %v4732_v24 = vor.u32 %v5177_v14, %v4729_v15  ;;  %v4393_v11 = vld [vmem:[#allocation12 + $0x510] sm:$0xf0]  ;;  %v5209_v28 = vld [vmem:[#allocation12 + $0x8a4] sm:$0xf] }
 0x44b   :  { %2747 = vmatpush.bf16.msra.mxu0 %v4636_v45  ;;  %2723 = vmatpush.bf16.msra.mxu2 %v4348_v47  ;;  %v4444_v45 = vor.u32 %v5105_v37, %v4441_v38  ;;  %v5061_v47 = vld [vmem:[#allocation12 + $0x404] sm:$0xf]  ;;  %v4857_v12 = vld [vmem:[#allocation12 + $0x8b0] sm:$0xf0]  ;;  %v4992_v37 = vld [vmem:[#allocation12 + $0x1d4] sm:$0xf0] }
 0x44c   :  { %2690 = vmatmul.bf16.vlgmr.msrb.gmra.mxu3 %v5803_v27  ;;  %v4268_v60 = vor.u32 %v5061_v47, %v4265_v48  ;;  %v5173_v18 = vld [vmem:[#allocation12 + $0x784] sm:$0xf]  ;;  %v4860_v36 = vor.u32 %v5209_v28, %v4857_v12  ;;  %v4841_v35 = vld [vmem:[#allocation12 + $0x890] sm:$0xf0]  ;;  %v4988_v47 = vld [vmem:[#allocation12 + $0x1b4] sm:$0xf0] }
 0x44d   :  { %2734 = vmatpush.bf16.msra.mxu3 %v4508_v51  ;;  %2711 = vmatpush.bf16.msra.mxu1 %v4204_v52  ;;  %v4764_v51 = vor.u32 %v5185_v40, %v4761_v41  ;;  %v4425_v52 = vld [vmem:[#allocation12 + $0x550] sm:$0xf0]  ;;  %v5205_v34 = vld [vmem:[#allocation12 + $0x884] sm:$0xf]  ;;  %v3855_v40 = vld [vmem:[#allocation12 + $0xc8] sm:$0xf] }
 0x44e   :  { %v4428_v0 = vor.u32 %v5101_v50, %v4425_v52  ;;  %v4960_v41 = vld [vmem:[#allocation12 + $0xd4] sm:$0xf0]  ;;  %v5169_v43 = vld [vmem:[#allocation12 + $0x764] sm:$0xf]  ;;  %v4697_v44 = vld [vmem:[#allocation12 + $0x770] sm:$0xf0] }
 0x44f   :  { %2748 = vmatpush.bf16.msra.mxu0 %v4620_v61  ;;  %2724 = vmatpush.bf16.msra.mxu2 %v4332_v63  ;;  %v5129_v61 = vld [vmem:[#allocation12 + $0x624] sm:$0xf]  ;;  %v4537_v63 = vld [vmem:[#allocation12 + $0x630] sm:$0xf0]  ;;  %v3856_v48 = vor.u32 %v4960_v41, %v3855_v40  ;;  %v4700_v52 = vor.u32 %v5169_v43, %v4697_v44  ;;  %v5060_v40 = vld [vmem:[#allocation12 + $0x3f4] sm:$0xf0] }
 0x450   :  { %v4540_v13 = vor.u32 %v5129_v61, %v4537_v63  ;;  %v5201_v50 = vld [vmem:[#allocation12 + $0x864] sm:$0xf]  ;;  %v3951_v61 = vld [vmem:[#allocation12 + $0x188] sm:$0xf]  ;;  %v4984_v63 = vld [vmem:[#allocation12 + $0x194] sm:$0xf0] }
 0x451   :  { %2735 = vmatpush.bf16.msra.mxu3 %v4492_v2  ;;  %2712 = vmatpush.bf16.msra.mxu1 %v4188_v3  ;;  %v5097_v2 = vld [vmem:[#allocation12 + $0x524] sm:$0xf]  ;;  %v4748_v3 = vor.u32 %v5181_v56, %v4745_v58  ;;  %v4681_v58 = vld [vmem:[#allocation12 + $0x750] sm:$0xf0]  ;;  %v3952_v6 = vor.u32 %v4984_v63, %v3951_v61  ;;  %v5024_v43 = vld [vmem:[#allocation12 + $0x2d4] sm:$0xf0] }
 0x452   :  { %v4412_v21 = vor.u32 %v5097_v2, %v4409_v4  ;;  %v5165_v56 = vld [vmem:[#allocation12 + $0x744] sm:$0xf]  ;;  %v4809_v2 = vld [vmem:[#allocation12 + $0x850] sm:$0xf0]  ;;  %v3823_v4 = vld [vmem:[#allocation12 + $0x88] sm:$0xf] }
 0x453   :  { %2749 = vmatpush.bf16.msra.mxu0 %v4604_v16  ;;  %2725 = vmatpush.bf16.msra.mxu2 %v4316_v19  ;;  %v5125_v16 = vld [vmem:[#allocation12 + $0x604] sm:$0xf]  ;;  %v4521_v19 = vld [vmem:[#allocation12 + $0x610] sm:$0xf0]  ;;  %v4968_v61 = vld [vmem:[#allocation12 + $0x114] sm:$0xf0] }
 0x454   :  { %v4524_v29 = vor.u32 %v5125_v16, %v4521_v19  ;;  %v4665_v14 = vld [vmem:[#allocation12 + $0x730] sm:$0xf0]  ;;  %v3935_v16 = vld [vmem:[#allocation12 + $0x168] sm:$0xf]  ;;  %v4980_v19 = vld [vmem:[#allocation12 + $0x174] sm:$0xf0] }
 0x455   :  { %2736 = vmatpush.bf16.msra.mxu3 %v4476_v22  ;;  %2713 = vmatpush.bf16.msra.mxu1 %v4172_v10  ;;  %v5093_v22 = vld [vmem:[#allocation12 + $0x504] sm:$0xf]  ;;  %v3999_v10 = vld [vmem:[#allocation12 + $0x1e8] sm:$0xf]  ;;  %v4649_v12 = vld [vmem:[#allocation12 + $0x710] sm:$0xf0] }
 0x456   :  { %v4000_v31 = vor.u32 %v4996_v23, %v3999_v10  ;;  %v3807_v23 = vld [vmem:[#allocation12 + $0x68] sm:$0xf]  ;;  %v5157_v28 = vld [vmem:[#allocation12 + $0x704] sm:$0xf] }
 0x457   :  { %2750 = vmatpush.bf16.msra.mxu0 %v4588_v30  ;;  %2726 = vmatpush.bf16.msra.mxu2 %v4300_v17  ;;  %v3871_v30 = vld [vmem:[#allocation12 + $0xe8] sm:$0xf]  ;;  %v4964_v17 = vld [vmem:[#allocation12 + $0xf4] sm:$0xf0] }
 0x458   :  { %v3872_v38 = vor.u32 %v4964_v17, %v3871_v30  ;;  %v5028_v17 = vld [vmem:[#allocation12 + $0x2f4] sm:$0xf0]  ;;  %v3759_v63 = vld [vmem:[#allocation12 + $0x8] sm:$0xf] }
 0x459   :  { %2737 = vmatpush.bf16.msra.mxu3 %v4460_v32  ;;  %2714 = vmatpush.bf16.msra.mxu1 %v4156_v7  ;;  %v4713_v32 = vld [vmem:[#allocation12 + $0x790] sm:$0xf0]  ;;  %v4396_v7 = vor.u32 %v5093_v22, %v4393_v11  ;;  %v3936_v11 = vor.u32 %v4980_v19, %v3935_v16  ;;  %v4079_v16 = vld [vmem:[#allocation12 + $0x288] sm:$0xf]  ;;  %v5016_v19 = vld [vmem:[#allocation12 + $0x294] sm:$0xf0] }
 0x45a   :  { %v4793_v22 = vld [vmem:[#allocation12 + $0x830] sm:$0xf0] }
 0x45b   :  { %2751 = vmatpush.bf16.msra.mxu0 %v4572_v39  ;;  %2727 = vmatpush.bf16.msra.mxu2 %v4284_v42  ;;  %v4716_v39 = vor.u32 %v5173_v18, %v4713_v32  ;;  %v3984_v42 = vor.u32 %v4992_v37, %v3983_v26  ;;  %v4976_v18 = vld [vmem:[#allocation12 + $0x154] sm:$0xf0]  ;;  %v4652_v26 = vor.u32 %v5157_v28, %v4649_v12  ;;  %v3791_v37 = vld [vmem:[#allocation12 + $0x48] sm:$0xf] }
 0x45c   :  { %v4080_v28 = vor.u32 %v5016_v19, %v4079_v16  ;;  %v5048_v12 = vld [vmem:[#allocation12 + $0x394] sm:$0xf0]  ;;  %v4431_v19 = vld [vmem:[#allocation12 + $0x548] sm:$0xf] }
 0x45d   :  { %2738 = vmatpush.bf16.msra.mxu3 %v4444_v45  ;;  %2715 = vmatpush.bf16.msra.mxu1 %v4140_v46  ;;  %v4844_v45 = vor.u32 %v5205_v34, %v4841_v35  ;;  %v3967_v46 = vld [vmem:[#allocation12 + $0x1a8] sm:$0xf] }
 0x45f   :  { %2752 = vmatpush.bf16.msra.mxu0 %v4556_v55  ;;  %2728 = vmatpush.bf16.msra.mxu2 %v4268_v60  ;;  %v3968_v55 = vor.u32 %v4988_v47, %v3967_v46  ;;  %v4972_v46 = vld [vmem:[#allocation12 + $0x134] sm:$0xf0] }
 0x460   :  { %2716 = vmatmul.bf16.vlgmr.msra.gmra.mxu1 %v5807_v57 }
 0x461   :  { %2760 = vmatpush.bf16.msrb.mxu1 %v4764_v51  ;;  %2739 = vmatpush.bf16.msra.mxu3 %v4428_v0  ;;  %v4825_v51 = vld [vmem:[#allocation12 + $0x870] sm:$0xf0]  ;;  %v3840_v0 = vor.u32 %v4956_v54, %v3839_v53  ;;  %v5056_v53 = vld [vmem:[#allocation12 + $0x3d4] sm:$0xf0] }
 0x462   :  { %2729 = vmatmul.bf16.vlgmr.msra.gmra.mxu2 %v5814_v25  ;;  %v4828_v60 = vor.u32 %v5201_v50, %v4825_v51  ;;  %v4940_v50 = vld [vmem:[#allocation12 + $0x34] sm:$0xf0] }
 0x463   :  { %2773 = vmatpush.bf16.msrb.mxu2 %v4892_v1  ;;  %2753 = vmatpush.bf16.msra.mxu0 %v4540_v13  ;;  %v5197_v1 = vld [vmem:[#allocation12 + $0x844] sm:$0xf] }
 0x464   :  { %v5161_v13 = vld [vmem:[#allocation12 + $0x724] sm:$0xf]  ;;  %v4812_v15 = vor.u32 %v5197_v1, %v4809_v2  ;;  %v4223_v2 = vld [vmem:[#allocation12 + $0x3a8] sm:$0xf] }
 0x465   :  { %2761 = vmatpush.bf16.msrb.mxu1 %v4748_v3  ;;  %2740 = vmatpush.bf16.msra.mxu3 %v4412_v21  ;;  %v4684_v3 = vor.u32 %v5165_v56, %v4681_v58  ;;  %v3824_v21 = vor.u32 %v4952_v5, %v3823_v4  ;;  %v4668_v10 = vor.u32 %v5161_v13, %v4665_v14  ;;  %v5020_v56 = vld [vmem:[#allocation12 + $0x2b4] sm:$0xf0]  ;;  %v3887_v58 = vld [vmem:[#allocation12 + $0x108] sm:$0xf] }
 0x466   :  { %v5124_v4 = vld [vmem:[#allocation12 + $0x5f4] sm:$0xf0]  ;;  %v4383_v13 = vld [vmem:[#allocation12 + $0x4e8] sm:$0xf] }
 0x467   :  { %2774 = vmatpush.bf16.msrb.mxu2 %v4876_v9  ;;  %2754 = vmatpush.bf16.msra.mxu0 %v4524_v29  ;;  %v5193_v9 = vld [vmem:[#allocation12 + $0x824] sm:$0xf]  ;;  %v4127_v29 = vld [vmem:[#allocation12 + $0x2e8] sm:$0xf]  ;;  %v5092_v14 = vld [vmem:[#allocation12 + $0x4f4] sm:$0xf0] }
 0x468   :  { %v4796_v30 = vor.u32 %v5193_v9, %v4793_v22  ;;  %v4128_v34 = vor.u32 %v5028_v17, %v4127_v29  ;;  %v4367_v29 = vld [vmem:[#allocation12 + $0x4c8] sm:$0xf] }
 0x469   :  { %2762 = vmatpush.bf16.msrb.mxu1 %v4732_v24  ;;  %2741 = vmatpush.bf16.msra.mxu3 %v4396_v7  ;;  %v4948_v24 = vld [vmem:[#allocation12 + $0x74] sm:$0xf0]  ;;  %v5189_v7 = vld [vmem:[#allocation12 + $0x804] sm:$0xf]  ;;  %v4063_v17 = vld [vmem:[#allocation12 + $0x268] sm:$0xf] }
 0x46a   :  { %2755 = vmatmul.bf16.vlgmr.msra.gmra.mxu0 %v5823_v59  ;;  %v3808_v32 = vor.u32 %v4948_v24, %v3807_v23  ;;  %v4207_v23 = vld [vmem:[#allocation12 + $0x388] sm:$0xf] }
 0x46b   :  { %2799 = vmatpush.bf16.msrb.mxu0 %v4000_v31  ;;  %2775 = vmatpush.bf16.msrb.mxu2 %v4860_v36  ;;  %v3919_v31 = vld [vmem:[#allocation12 + $0x148] sm:$0xf]  ;;  %v4777_v36 = vld [vmem:[#allocation12 + $0x810] sm:$0xf0] }
 0x46c   :  { %2742 = vmatmul.bf16.vlgmr.msra.gmra.mxu3 %v5818_v8  ;;  %v3920_v35 = vor.u32 %v4976_v18, %v3919_v31  ;;  %v4780_v41 = vor.u32 %v5189_v7, %v4777_v36  ;;  %v4495_v24 = vld [vmem:[#allocation12 + $0x5c8] sm:$0xf]  ;;  %v5012_v31 = vld [vmem:[#allocation12 + $0x274] sm:$0xf0] }
 0x46d   :  { %2786 = vmatpush.bf16.msrb.mxu3 %v3872_v38  ;;  %2763 = vmatpush.bf16.msrb.mxu1 %v4716_v39  ;;  %v4944_v38 = vld [vmem:[#allocation12 + $0x54] sm:$0xf0]  ;;  %v4255_v39 = vld [vmem:[#allocation12 + $0x3e8] sm:$0xf] }
 0x46e   :  { %v3792_v44 = vor.u32 %v4944_v38, %v3791_v37  ;;  %v4256_v47 = vor.u32 %v5060_v40, %v4255_v39  ;;  %v4191_v36 = vld [vmem:[#allocation12 + $0x368] sm:$0xf]  ;;  %v5116_v37 = vld [vmem:[#allocation12 + $0x5b4] sm:$0xf0]  ;;  %v4064_v38 = vor.u32 %v5012_v31, %v4063_v17 }
 0x46f   :  { %2800 = vmatpush.bf16.msrb.mxu0 %v3984_v42  ;;  %2776 = vmatpush.bf16.msrb.mxu2 %v4844_v45  ;;  %v4111_v42 = vld [vmem:[#allocation12 + $0x2c8] sm:$0xf]  ;;  %v5084_v39 = vld [vmem:[#allocation12 + $0x4b4] sm:$0xf0] }
 0x470   :  { %v3903_v45 = vld [vmem:[#allocation12 + $0x128] sm:$0xf]  ;;  %v4112_v51 = vor.u32 %v5024_v43, %v4111_v42  ;;  %v5152_v17 = vld [vmem:[#allocation12 + $0x6d4] sm:$0xf0] }
 0x471   :  { %2787 = vmatpush.bf16.msrb.mxu3 %v3856_v48  ;;  %2764 = vmatpush.bf16.msrb.mxu1 %v4700_v52  ;;  %v3775_v48 = vld [vmem:[#allocation12 + $0x28] sm:$0xf]  ;;  %v3904_v54 = vor.u32 %v4972_v46, %v3903_v45 }
 0x472   :  { %v4239_v52 = vld [vmem:[#allocation12 + $0x3c8] sm:$0xf] }
 0x473   :  { %2801 = vmatpush.bf16.msrb.mxu0 %v3968_v55  ;;  %2777 = vmatpush.bf16.msrb.mxu2 %v4828_v60  ;;  %v4095_v55 = vld [vmem:[#allocation12 + $0x2a8] sm:$0xf]  ;;  %v3776_v60 = vor.u32 %v4940_v50, %v3775_v48  ;;  %v4240_v1 = vor.u32 %v5056_v53, %v4239_v52  ;;  %v5040_v50 = vld [vmem:[#allocation12 + $0x354] sm:$0xf0] }
 0x474   :  { %v4096_v5 = vor.u32 %v5020_v56, %v4095_v55  ;;  %v4047_v40 = vld [vmem:[#allocation12 + $0x248] sm:$0xf]  ;;  %v5080_v52 = vld [vmem:[#allocation12 + $0x494] sm:$0xf0] }
 0x475   :  { %2788 = vmatpush.bf16.msrb.mxu3 %v3840_v0  ;;  %2765 = vmatpush.bf16.msrb.mxu1 %v4684_v3  ;;  %v4936_v0 = vld [vmem:[#allocation12 + $0x14] sm:$0xf0]  ;;  %v4511_v3 = vld [vmem:[#allocation12 + $0x5e8] sm:$0xf] }
 0x476   :  { %v4512_v9 = vor.u32 %v5124_v4, %v4511_v3  ;;  %v4175_v45 = vld [vmem:[#allocation12 + $0x348] sm:$0xf]  ;;  %v5076_v3 = vld [vmem:[#allocation12 + $0x474] sm:$0xf0] }
 0x477   :  { %2802 = vmatpush.bf16.msrb.mxu0 %v3952_v6  ;;  %2778 = vmatpush.bf16.msrb.mxu2 %v4812_v15  ;;  %v5052_v6 = vld [vmem:[#allocation12 + $0x3b4] sm:$0xf0]  ;;  %v3888_v15 = vor.u32 %v4968_v61, %v3887_v58  ;;  %v4463_v46 = vld [vmem:[#allocation12 + $0x588] sm:$0xf]  ;;  %v4176_v56 = vor.u32 %v5040_v50, %v4175_v45 }
 0x478   :  { %v4224_v22 = vor.u32 %v5052_v6, %v4223_v2  ;;  %v4031_v53 = vld [vmem:[#allocation12 + $0x228] sm:$0xf] }
 0x479   :  { %2789 = vmatpush.bf16.msrb.mxu3 %v3824_v21  ;;  %2766 = vmatpush.bf16.msrb.mxu1 %v4668_v10  ;;  %v3760_v21 = vor.u32 %v4936_v0, %v3759_v63  ;;  %v4384_v10 = vor.u32 %v5092_v14, %v4383_v13  ;;  %v4447_v61 = vld [vmem:[#allocation12 + $0x568] sm:$0xf]  ;;  %v5108_v63 = vld [vmem:[#allocation12 + $0x574] sm:$0xf0] }
 0x47a   :  { %v4319_v2 = vld [vmem:[#allocation12 + $0x468] sm:$0xf]  ;;  %v4448_v6 = vor.u32 %v5108_v63, %v4447_v61  ;;  %v5156_v14 = vld [vmem:[#allocation12 + $0x6f4] sm:$0xf0] }
 0x47b   :  { %2803 = vmatpush.bf16.msrb.mxu0 %v3936_v11  ;;  %2779 = vmatpush.bf16.msrb.mxu2 %v4796_v30  ;;  %v5120_v11 = vld [vmem:[#allocation12 + $0x5d4] sm:$0xf0]  ;;  %v4015_v4 = vld [vmem:[#allocation12 + $0x208] sm:$0xf]  ;;  %v4320_v16 = vor.u32 %v5076_v3, %v4319_v2  ;;  %v4958_v2 = vld [vmem:[#allocation12 + $0xcc] sm:$0xf] }
 0x47c   :  { %v5088_v30 = vld [vmem:[#allocation12 + $0x4d4] sm:$0xf0]  ;;  %v4496_v18 = vor.u32 %v5120_v11, %v4495_v24  ;;  %v4639_v13 = vld [vmem:[#allocation12 + $0x6e8] sm:$0xf]  ;;  %v3857_v3 = vld [vmem:[#allocation12 + $0xd8] sm:$0xf0] }
 0x47d   :  { %2790 = vmatpush.bf16.msrb.mxu3 %v3808_v32  ;;  %2767 = vmatpush.bf16.msrb.mxu1 %v4652_v26  ;;  %v4208_v32 = vor.u32 %v5048_v12, %v4207_v23  ;;  %v4368_v7 = vor.u32 %v5088_v30, %v4367_v29  ;;  %v4479_v26 = vld [vmem:[#allocation12 + $0x5a8] sm:$0xf]  ;;  %v4640_v24 = vor.u32 %v5156_v14, %v4639_v13  ;;  %v5072_v11 = vld [vmem:[#allocation12 + $0x454] sm:$0xf0] }
 0x47e   :  { %v4480_v42 = vor.u32 %v5116_v37, %v4479_v26  ;;  %v4303_v23 = vld [vmem:[#allocation12 + $0x448] sm:$0xf]  ;;  %v5188_v12 = vld [vmem:[#allocation12 + $0x7f4] sm:$0xf0] }
 0x47f   :  { %2804 = vmatpush.bf16.msrb.mxu0 %v3920_v35  ;;  %2780 = vmatpush.bf16.msrb.mxu2 %v4780_v41  ;;  %v4351_v35 = vld [vmem:[#allocation12 + $0x4a8] sm:$0xf]  ;;  %v5008_v41 = vld [vmem:[#allocation12 + $0x254] sm:$0xf0] }
 0x480   :  { %2768 = vmatmul.bf16.vlgmr.msrb.gmra.mxu1 %v5821_v49  ;;  %v4048_v48 = vor.u32 %v5008_v41, %v4047_v40  ;;  %v4623_v30 = vld [vmem:[#allocation12 + $0x6c8] sm:$0xf]  ;;  %v5148_v41 = vld [vmem:[#allocation12 + $0x6b4] sm:$0xf0] }
 0x481   :  { %2812 = vmatpush.bf16.msra.mxu1 %v4128_v34  ;;  %2791 = vmatpush.bf16.msrb.mxu3 %v3792_v44  ;;  %v5044_v34 = vld [vmem:[#allocation12 + $0x374] sm:$0xf0]  ;;  %v4352_v44 = vor.u32 %v5084_v39, %v4351_v35  ;;  %v4287_v26 = vld [vmem:[#allocation12 + $0x428] sm:$0xf]  ;;  %v4624_v37 = vor.u32 %v5152_v17, %v4623_v30 }
 0x482   :  { %2781 = vmatmul.bf16.vlgmr.msrb.gmra.mxu2 %v5827_v20  ;;  %v4192_v43 = vor.u32 %v5044_v34, %v4191_v36  ;;  %v4751_v34 = vld [vmem:[#allocation12 + $0x7c8] sm:$0xf]  ;;  %v5184_v35 = vld [vmem:[#allocation12 + $0x7d4] sm:$0xf0] }
 0x483   :  { %2825 = vmatpush.bf16.msra.mxu2 %v4256_v47  ;;  %2805 = vmatpush.bf16.msrb.mxu0 %v3904_v54  ;;  %v5112_v47 = vld [vmem:[#allocation12 + $0x594] sm:$0xf0]  ;;  %v4607_v40 = vld [vmem:[#allocation12 + $0x6a8] sm:$0xf]  ;;  %v4752_v45 = vor.u32 %v5184_v35, %v4751_v34 }
 0x484   :  { %v5004_v54 = vld [vmem:[#allocation12 + $0x234] sm:$0xf0]  ;;  %v4464_v55 = vor.u32 %v5112_v47, %v4463_v46  ;;  %v4271_v46 = vld [vmem:[#allocation12 + $0x408] sm:$0xf]  ;;  %v4962_v47 = vld [vmem:[#allocation12 + $0xec] sm:$0xf]  ;;  %v4608_v50 = vor.u32 %v5148_v41, %v4607_v40 }
 0x485   :  { %2813 = vmatpush.bf16.msra.mxu1 %v4112_v51  ;;  %2792 = vmatpush.bf16.msrb.mxu3 %v3776_v60  ;;  %v4335_v51 = vld [vmem:[#allocation12 + $0x488] sm:$0xf]  ;;  %v4032_v0 = vor.u32 %v5004_v54, %v4031_v53  ;;  %v5180_v53 = vld [vmem:[#allocation12 + $0x7b4] sm:$0xf0] }
 0x486   :  { %v4336_v58 = vor.u32 %v5080_v52, %v4335_v51  ;;  %v4159_v60 = vld [vmem:[#allocation12 + $0x328] sm:$0xf]  ;;  %v5064_v51 = vld [vmem:[#allocation12 + $0x414] sm:$0xf0] }
 0x487   :  { %2826 = vmatpush.bf16.msra.mxu2 %v4240_v1  ;;  %2806 = vmatpush.bf16.msrb.mxu0 %v3888_v15  ;;  %v5036_v1 = vld [vmem:[#allocation12 + $0x334] sm:$0xf0]  ;;  %v4735_v52 = vld [vmem:[#allocation12 + $0x7a8] sm:$0xf] }
 0x488   :  { %v4160_v15 = vor.u32 %v5036_v1, %v4159_v60  ;;  %v4591_v60 = vld [vmem:[#allocation12 + $0x688] sm:$0xf]  ;;  %v5144_v61 = vld [vmem:[#allocation12 + $0x694] sm:$0xf0]  ;;  %v4736_v1 = vor.u32 %v5180_v53, %v4735_v52 }
 0x489   :  { %2814 = vmatpush.bf16.msra.mxu1 %v4096_v5  ;;  %2793 = vmatpush.bf16.msrb.mxu3 %v3760_v21  ;;  %v5000_v5 = vld [vmem:[#allocation12 + $0x214] sm:$0xf0]  ;;  %v4592_v13 = vor.u32 %v5144_v61, %v4591_v60  ;;  %v4879_v14 = vld [vmem:[#allocation12 + $0x8c8] sm:$0xf]  ;;  %v4994_v61 = vld [vmem:[#allocation12 + $0x1ec] sm:$0xf] }
 0x48a   :  { %2807 = vmatmul.bf16.vlgmr.msrb.gmra.mxu0 %v5803_v27  ;;  %v5104_v21 = vld [vmem:[#allocation12 + $0x554] sm:$0xf0]  ;;  %v4559_v17 = vld [vmem:[#allocation12 + $0x648] sm:$0xf] }
 0x48b   :  { %2851 = vmatpush.bf16.msra.mxu0 %v4512_v9  ;;  %2827 = vmatpush.bf16.msra.mxu2 %v4224_v22  ;;  %v4016_v9 = vor.u32 %v5000_v5, %v4015_v4  ;;  %v4143_v22 = vld [vmem:[#allocation12 + $0x308] sm:$0xf]  ;;  %v4432_v29 = vor.u32 %v5104_v21, %v4431_v19  ;;  %v5140_v21 = vld [vmem:[#allocation12 + $0x674] sm:$0xf0] }
 0x48c   :  { %2794 = vmatmul.bf16.vlgmr.msrb.gmra.mxu3 %v5801_v33  ;;  %v4719_v5 = vld [vmem:[#allocation12 + $0x788] sm:$0xf]  ;;  %v5168_v34 = vld [vmem:[#allocation12 + $0x754] sm:$0xf0] }
 0x48d   :  { %2838 = vmatpush.bf16.msra.mxu3 %v4384_v10  ;;  %2815 = vmatpush.bf16.msra.mxu1 %v4080_v28  ;;  %v5032_v10 = vld [vmem:[#allocation12 + $0x314] sm:$0xf0]  ;;  %v4767_v28 = vld [vmem:[#allocation12 + $0x7e8] sm:$0xf] }
 0x48e   :  { %v4144_v31 = vor.u32 %v5032_v10, %v4143_v22  ;;  %v4768_v36 = vor.u32 %v5188_v12, %v4767_v28  ;;  %v4575_v19 = vld [vmem:[#allocation12 + $0x668] sm:$0xf]  ;;  %v4954_v22 = vld [vmem:[#allocation12 + $0xac] sm:$0xf]  ;;  %v3841_v10 = vld [vmem:[#allocation12 + $0xb8] sm:$0xf0] }
 0x48f   :  { %2852 = vmatpush.bf16.msra.mxu0 %v4496_v18  ;;  %2828 = vmatpush.bf16.msra.mxu2 %v4208_v32  ;;  %v4415_v18 = vld [vmem:[#allocation12 + $0x528] sm:$0xf]  ;;  %v5100_v32 = vld [vmem:[#allocation12 + $0x534] sm:$0xf0]  ;;  %v4576_v28 = vor.u32 %v5140_v21, %v4575_v19  ;;  %v3844_v30 = vor.u32 %v4954_v22, %v3841_v10 }
 0x490   :  { %v4416_v39 = vor.u32 %v5100_v32, %v4415_v18  ;;  %v4863_v12 = vld [vmem:[#allocation12 + $0x8a8] sm:$0xf]  ;;  %v5208_v41 = vld [vmem:[#allocation12 + $0x894] sm:$0xf0] }
 0x491   :  { %2839 = vmatpush.bf16.msra.mxu3 %v4368_v7  ;;  %2816 = vmatpush.bf16.msra.mxu1 %v4064_v38  ;;  %v4304_v7 = vor.u32 %v5072_v11, %v4303_v23  ;;  %v5068_v38 = vld [vmem:[#allocation12 + $0x434] sm:$0xf0]  ;;  %v4847_v40 = vld [vmem:[#allocation12 + $0x888] sm:$0xf] }
 0x492   :  { %v5172_v11 = vld [vmem:[#allocation12 + $0x774] sm:$0xf0]  ;;  %v4831_v53 = vld [vmem:[#allocation12 + $0x868] sm:$0xf] }
 0x493   :  { %2853 = vmatpush.bf16.msra.mxu0 %v4480_v42  ;;  %2829 = vmatpush.bf16.msra.mxu2 %v4192_v43  ;;  %v4399_v42 = vld [vmem:[#allocation12 + $0x508] sm:$0xf]  ;;  %v5096_v43 = vld [vmem:[#allocation12 + $0x514] sm:$0xf0] }
 0x494   :  { %v4400_v54 = vor.u32 %v5096_v43, %v4399_v42  ;;  %v4543_v43 = vld [vmem:[#allocation12 + $0x628] sm:$0xf]  ;;  %v5128_v60 = vld [vmem:[#allocation12 + $0x614] sm:$0xf0] }
 0x495   :  { %2840 = vmatpush.bf16.msra.mxu3 %v4352_v44  ;;  %2817 = vmatpush.bf16.msra.mxu1 %v4048_v48  ;;  %v4288_v44 = vor.u32 %v5068_v38, %v4287_v26  ;;  %v3873_v48 = vld [vmem:[#allocation12 + $0xf8] sm:$0xf0]  ;;  %v4687_v38 = vld [vmem:[#allocation12 + $0x748] sm:$0xf] }
 0x496   :  { %v3825_v26 = vld [vmem:[#allocation12 + $0x98] sm:$0xf0]  ;;  %v4815_v21 = vld [vmem:[#allocation12 + $0x848] sm:$0xf] }
 0x497   :  { %2854 = vmatpush.bf16.msra.mxu0 %v4464_v55  ;;  %2830 = vmatpush.bf16.msra.mxu2 %v4176_v56  ;;  %v4895_v55 = vld [vmem:[#allocation12 + $0x8e8] sm:$0xf]  ;;  %v5220_v56 = vld [vmem:[#allocation12 + $0x8f4] sm:$0xf0] }
 0x498   :  { %v4896_v4 = vor.u32 %v5220_v56, %v4895_v55  ;;  %v5849_v55 = vpop.permute.xlu0 %1109 }
 0x499   :  { %2841 = vmatpush.bf16.msra.mxu3 %v4336_v58  ;;  %2818 = vmatpush.bf16.msra.mxu1 %v4032_v0  ;;  %v3876_v58 = vor.u32 %v4962_v47, %v3873_v48  ;;  %v4272_v0 = vor.u32 %v5064_v51, %v4271_v46  ;;  %v4946_v46 = vld [vmem:[#allocation12 + $0x6c] sm:$0xf]  ;;  %v3809_v47 = vld [vmem:[#allocation12 + $0x78] sm:$0xf0]  ;;  %v4848_v48 = vor.u32 %v5208_v41, %v4847_v40  ;;  %v5164_v51 = vld [vmem:[#allocation12 + $0x734] sm:$0xf0] }
 0x49a   :  { %v3812_v56 = vor.u32 %v4946_v46, %v3809_v47  ;;  %v4986_v41 = vld [vmem:[#allocation12 + $0x1ac] sm:$0xf]  ;;  %v5192_v46 = vld [vmem:[#allocation12 + $0x814] sm:$0xf0] }
 0x49b   :  { %2855 = vmatpush.bf16.msra.mxu0 %v4448_v6  ;;  %2831 = vmatpush.bf16.msra.mxu2 %v4160_v15  ;;  %v5176_v6 = vld [vmem:[#allocation12 + $0x794] sm:$0xf0] }
 0x49c   :  { %v5216_v15 = vld [vmem:[#allocation12 + $0x8d4] sm:$0xf0] }
 0x49d   :  { %2842 = vmatpush.bf16.msra.mxu3 %v4320_v16  ;;  %2819 = vmatpush.bf16.msra.mxu1 %v4016_v9  ;;  %v5843_v63 = vpop.f32.mrf.mxu1  ;;  %v3860_v16 = vor.u32 %v4958_v2, %v3857_v3  ;;  %v4720_v9 = vor.u32 %v5176_v6, %v4719_v5  ;;  %v4880_v23 = vor.u32 %v5216_v15, %v4879_v14  ;;  %v4001_v3 = vld [vmem:[#allocation12 + $0x1f8] sm:$0xf0]  ;;  %v5160_v14 = vld [vmem:[#allocation12 + $0x714] sm:$0xf0] }
 0x49e   :  { %v3793_v5 = vld [vmem:[#allocation12 + $0x58] sm:$0xf0]  ;;  %v2562_v22 = vadd.f32 %v5843_v63, %v5849_v55  ;;  %v4004_v10 = vor.u32 %v4994_v61, %v4001_v3  ;;  %v5058_v61 = vld [vmem:[#allocation12 + $0x3ec] sm:$0xf] }
 0x49f   :  { %2856 = vmatpush.bf16.msra.mxu0 %v4432_v29  ;;  %2832 = vmatpush.bf16.msra.mxu2 %v4144_v31  ;;  %v5212_v29 = vld [vmem:[#allocation12 + $0x8b4] sm:$0xf0]  ;;  %v4982_v3 = vld [vmem:[#allocation12 + $0x18c] sm:$0xf] }
 0x4a0   :  { %2820 = vmatmul.bf16.vlgmr.msra.gmra.mxu1 %v5810_v62  ;;  %v5136_v31 = vld [vmem:[#allocation12 + $0x654] sm:$0xf0] }
 0x4a1   :  { %2864 = vmatpush.bf16.msrb.mxu1 %v4640_v24  ;;  %2843 = vmatpush.bf16.msra.mxu3 %v4304_v7  ;;  %v4703_v24 = vld [vmem:[#allocation12 + $0x768] sm:$0xf] }
 0x4a2   :  { %2833 = vmatmul.bf16.vlgmr.msra.gmra.mxu2 %v5807_v57  ;;  %v4704_v7 = vor.u32 %v5172_v11, %v4703_v24  ;;  %v5026_v24 = vld [vmem:[#allocation12 + $0x2ec] sm:$0xf]  ;;  %v4129_v11 = vld [vmem:[#allocation12 + $0x2f8] sm:$0xf0] }
 0x4a3   :  { %2877 = vmatpush.bf16.msrb.mxu2 %v4768_v36  ;;  %2857 = vmatpush.bf16.msra.mxu0 %v4416_v39  ;;  %v4950_v36 = vld [vmem:[#allocation12 + $0x8c] sm:$0xf]  ;;  %v4560_v39 = vor.u32 %v5136_v31, %v4559_v17 }
 0x4a4   :  { %v3828_v42 = vor.u32 %v4950_v36, %v3825_v26  ;;  %v4938_v31 = vld [vmem:[#allocation12 + $0x2c] sm:$0xf]  ;;  %v4799_v36 = vld [vmem:[#allocation12 + $0x828] sm:$0xf]  ;;  %v5196_v26 = vld [vmem:[#allocation12 + $0x834] sm:$0xf0] }
 0x4a5   :  { %2865 = vmatpush.bf16.msrb.mxu1 %v4624_v37  ;;  %2844 = vmatpush.bf16.msra.mxu3 %v4288_v44  ;;  %v2563_v18 = vpop.f32.mrf.mxu1  ;;  %v2574_v32 = vpop.f32.mrf.mxu2  ;;  %v4864_v37 = vor.u32 %v5212_v29, %v4863_v12  ;;  %v5132_v44 = vld [vmem:[#allocation12 + $0x634] sm:$0xf0]  ;;  %v4990_v12 = vld [vmem:[#allocation12 + $0x1cc] sm:$0xf]  ;;  %v3985_v29 = vld [vmem:[#allocation12 + $0x1d8] sm:$0xf0] }
 0x4a6   :  { %v4544_v52 = vor.u32 %v5132_v44, %v4543_v43  ;;  %v3777_v18 = vld [vmem:[#allocation12 + $0x38] sm:$0xf0]  ;;  %v3988_v63 = vor.u32 %v4990_v12, %v3985_v29  ;;  %v4800_v43 = vor.u32 %v5196_v26, %v4799_v36 }
 0x4a7   :  { %2878 = vmatpush.bf16.msrb.mxu2 %v4752_v45  ;;  %2858 = vmatpush.bf16.msra.mxu0 %v4400_v54  ;;  %v5847_v35 = vpop.f32.mrf.mxu0  ;;  %v4688_v45 = vor.u32 %v5168_v34, %v4687_v38  ;;  %v5204_v54 = vld [vmem:[#allocation12 + $0x874] sm:$0xf0]  ;;  %v5022_v38 = vld [vmem:[#allocation12 + $0x2cc] sm:$0xf]  ;;  %v4113_v34 = vld [vmem:[#allocation12 + $0x2d8] sm:$0xf0]  ;;  %v3780_v40 = vor.u32 %v4938_v31, %v3777_v18 }
 0x4a8   :  { %v4832_v6 = vor.u32 %v5204_v54, %v4831_v53  ;;  %v3761_v44 = vld [vmem:[#allocation12 + $0x18] sm:$0xf0]  ;;  %v5082_v18 = vld [vmem:[#allocation12 + $0x4ac] sm:$0xf] }
 0x4a9   :  { %2866 = vmatpush.bf16.msrb.mxu1 %v4608_v50  ;;  %2845 = vmatpush.bf16.msra.mxu3 %v4272_v0  ;;  %v4671_v50 = vld [vmem:[#allocation12 + $0x728] sm:$0xf]  ;;  %v4385_v53 = vld [vmem:[#allocation12 + $0x4f8] sm:$0xf0] }
 0x4aa   :  { %2859 = vmatmul.bf16.vlgmr.msra.gmra.mxu0 %v5818_v8  ;;  %v4672_v2 = vor.u32 %v5164_v51, %v4671_v50  ;;  %v4116_v50 = vor.u32 %v5022_v38, %v4113_v34  ;;  %v5018_v51 = vld [vmem:[#allocation12 + $0x2ac] sm:$0xf]  ;;  %v4225_v34 = vld [vmem:[#allocation12 + $0x3b8] sm:$0xf0] }
 0x4ab   :  { %2903 = vmatpush.bf16.msrb.mxu0 %v3876_v58  ;;  %2879 = vmatpush.bf16.msrb.mxu2 %v4736_v1  ;;  %v4527_v58 = vld [vmem:[#allocation12 + $0x608] sm:$0xf]  ;;  %v5050_v38 = vld [vmem:[#allocation12 + $0x3ac] sm:$0xf] }
 0x4ac   :  { %2846 = vmatmul.bf16.vlgmr.msra.gmra.mxu3 %v5814_v25  ;;  %v4528_v19 = vor.u32 %v5128_v60, %v4527_v58  ;;  %v4097_v60 = vld [vmem:[#allocation12 + $0x2b8] sm:$0xf0] }
 0x4ad   :  { %2890 = vmatpush.bf16.msrb.mxu3 %v4896_v4  ;;  %2867 = vmatpush.bf16.msrb.mxu1 %v4592_v13  ;;  %v2576_v0 = vpop.f32.mrf.mxu2  ;;  %v5851_v1 = vpop.f32.mrf.mxu1  ;;  %v4942_v4 = vld [vmem:[#allocation12 + $0x4c] sm:$0xf]  ;;  %v4655_v13 = vld [vmem:[#allocation12 + $0x708] sm:$0xf] }
 0x4ae   :  { %v4257_v0 = vld [vmem:[#allocation12 + $0x3f8] sm:$0xf0] }
 0x4af   :  { %2904 = vmatpush.bf16.msrb.mxu0 %v3860_v16  ;;  %2880 = vmatpush.bf16.msrb.mxu2 %v4720_v9  ;;  %v2587_v15 = vpop.f32.mrf.mxu3  ;;  %v2602_v16 = vpop.f32.mrf.mxu0  ;;  %v5200_v9 = vld [vmem:[#allocation12 + $0x854] sm:$0xf0] }
 0x4b0   :  { %v4816_v17 = vor.u32 %v5200_v9, %v4815_v21  ;;  %v4369_v16 = vld [vmem:[#allocation12 + $0x4d8] sm:$0xf0] }
 0x4b1   :  { %2891 = vmatpush.bf16.msrb.mxu3 %v4880_v23  ;;  %2868 = vmatpush.bf16.msrb.mxu1 %v4576_v28  ;;  %v3796_v23 = vor.u32 %v4942_v4, %v3793_v5  ;;  %v4656_v28 = vor.u32 %v5160_v14, %v4655_v13  ;;  %v3953_v4 = vld [vmem:[#allocation12 + $0x198] sm:$0xf0]  ;;  %v4100_v13 = vor.u32 %v5018_v51, %v4097_v60 }
 0x4b2   :  { %v4260_v14 = vor.u32 %v5058_v61, %v4257_v0  ;;  %v3956_v21 = vor.u32 %v4982_v3, %v3953_v4  ;;  %v4081_v9 = vld [vmem:[#allocation12 + $0x298] sm:$0xf0]  ;;  %v5074_v3 = vld [vmem:[#allocation12 + $0x46c] sm:$0xf] }
 0x4b3   :  { %2905 = vmatpush.bf16.msrb.mxu0 %v3844_v30  ;;  %2881 = vmatpush.bf16.msrb.mxu2 %v4704_v7  ;;  %v2575_v30 = vadd.f32 %v2574_v32, %v2562_v22  ;;  %v4132_v7 = vor.u32 %v5026_v24, %v4129_v11  ;;  %v4934_v32 = vld [vmem:[#allocation12 + $0xc] sm:$0xf]  ;;  %v3937_v11 = vld [vmem:[#allocation12 + $0x178] sm:$0xf0] }
 0x4b4   :  { %v5054_v22 = vld [vmem:[#allocation12 + $0x3cc] sm:$0xf]  ;;  %v4209_v51 = vld [vmem:[#allocation12 + $0x398] sm:$0xf0] }
 0x4b5   :  { %2892 = vmatpush.bf16.msrb.mxu3 %v4864_v37  ;;  %2869 = vmatpush.bf16.msrb.mxu1 %v4560_v39  ;;  %v2588_v37 = vadd.f32 %v2587_v15, %v2575_v30  ;;  %v2615_v39 = vpop.f32.mrf.mxu1  ;;  %v5014_v15 = vld [vmem:[#allocation12 + $0x28c] sm:$0xf]  ;;  %v4321_v4 = vld [vmem:[#allocation12 + $0x478] sm:$0xf0] }
 0x4b6   :  { %v4978_v24 = vld [vmem:[#allocation12 + $0x16c] sm:$0xf] }
 0x4b7   :  { %2906 = vmatpush.bf16.msrb.mxu0 %v3828_v42  ;;  %2882 = vmatpush.bf16.msrb.mxu2 %v4688_v45  ;;  %v3969_v42 = vld [vmem:[#allocation12 + $0x1b8] sm:$0xf0]  ;;  %v4783_v45 = vld [vmem:[#allocation12 + $0x808] sm:$0xf]  ;;  %v2589_v47 = vpop.f32.mrf.mxu3  ;;  %v2601_v54 = vadd.f32 %v5847_v35, %v2588_v37  ;;  %v5086_v35 = vld [vmem:[#allocation12 + $0x4cc] sm:$0xf]  ;;  %v3940_v37 = vor.u32 %v4978_v24, %v3937_v11 }
 0x4b8   :  { %v3972_v58 = vor.u32 %v4986_v41, %v3969_v42  ;;  %v4784_v5 = vor.u32 %v5192_v46, %v4783_v45  ;;  %v4372_v12 = vor.u32 %v5086_v35, %v4369_v16  ;;  %v4974_v39 = vld [vmem:[#allocation12 + $0x14c] sm:$0xf]  ;;  %v4337_v45 = vld [vmem:[#allocation12 + $0x498] sm:$0xf0] }
 0x4b9   :  { %2893 = vmatpush.bf16.msrb.mxu3 %v4848_v48  ;;  %2870 = vmatpush.bf16.msrb.mxu1 %v4544_v52  ;;  %v2626_v48 = vpop.f32.mrf.mxu2  ;;  %v5090_v52 = vld [vmem:[#allocation12 + $0x4ec] sm:$0xf]  ;;  %v3889_v16 = vld [vmem:[#allocation12 + $0x118] sm:$0xf0] }
 0x4ba   :  { %v4966_v35 = vld [vmem:[#allocation12 + $0x10c] sm:$0xf]  ;;  %v4305_v24 = vld [vmem:[#allocation12 + $0x458] sm:$0xf0] }
 0x4bb   :  { %2907 = vmatpush.bf16.msrb.mxu0 %v3812_v56  ;;  %2883 = vmatpush.bf16.msrb.mxu2 %v4672_v2  ;;  %v2652_v56 = vpop.f32.mrf.mxu0  ;;  %v3764_v2 = vor.u32 %v4934_v32, %v3761_v44  ;;  %v5006_v44 = vld [vmem:[#allocation12 + $0x24c] sm:$0xf]  ;;  %v3892_v11 = vor.u32 %v4966_v35, %v3889_v16  ;;  %v4465_v35 = vld [vmem:[#allocation12 + $0x598] sm:$0xf0] }
 0x4bd   :  { %2894 = vmatpush.bf16.msrb.mxu3 %v4832_v6  ;;  %2871 = vmatpush.bf16.msrb.mxu1 %v4528_v19  ;;  %v4388_v6 = vor.u32 %v5090_v52, %v4385_v53  ;;  %v2614_v19 = vadd.f32 %v5851_v1, %v2601_v54  ;;  %v5010_v1 = vld [vmem:[#allocation12 + $0x26c] sm:$0xf]  ;;  %v3905_v54 = vld [vmem:[#allocation12 + $0x138] sm:$0xf0] }
 0x4be   :  { %v4970_v53 = vld [vmem:[#allocation12 + $0x12c] sm:$0xf] }
 0x4bf   :  { %2908 = vmatpush.bf16.msrb.mxu0 %v3796_v23  ;;  %2884 = vmatpush.bf16.msrb.mxu2 %v4656_v28  ;;  %v2665_v23 = vpop.f32.mrf.mxu1  ;;  %v2627_v28 = vadd.f32 %v2626_v48, %v2614_v19  ;;  %v2639_v30 = vpop.f32.mrf.mxu3  ;;  %v4049_v48 = vld [vmem:[#allocation12 + $0x258] sm:$0xf0]  ;;  %v4324_v19 = vor.u32 %v5074_v3, %v4321_v4 }
 0x4c0   :  { %2872 = vmatmul.bf16.vlgmr.msrb.gmra.mxu1 %v5823_v59  ;;  %v4052_v61 = vor.u32 %v5006_v44, %v4049_v48  ;;  %v5150_v44 = vld [vmem:[#allocation12 + $0x6cc] sm:$0xf]  ;;  %v4481_v48 = vld [vmem:[#allocation12 + $0x5b8] sm:$0xf0] }
 0x4c1   :  { %2916 = vmatpush.bf16.msra.mxu1 %v4004_v10  ;;  %2895 = vmatpush.bf16.msrb.mxu3 %v4816_v17  ;;  %v4241_v10 = vld [vmem:[#allocation12 + $0x3d8] sm:$0xf0]  ;;  %v2628_v29 = vpop.f32.mrf.mxu2  ;;  %v4084_v17 = vor.u32 %v5014_v15, %v4081_v9  ;;  %v2640_v36 = vadd.f32 %v2639_v30, %v2627_v28  ;;  %v4998_v28 = vld [vmem:[#allocation12 + $0x20c] sm:$0xf] }
 0x4c2   :  { %2885 = vmatmul.bf16.vlgmr.msrb.gmra.mxu2 %v5821_v49  ;;  %v4244_v31 = vor.u32 %v5054_v22, %v4241_v10  ;;  %v4193_v15 = vld [vmem:[#allocation12 + $0x378] sm:$0xf0]  ;;  %v5038_v29 = vld [vmem:[#allocation12 + $0x34c] sm:$0xf] }
 0x4c3   :  { %2929 = vmatpush.bf16.msra.mxu2 %v4132_v7  ;;  %2909 = vmatpush.bf16.msrb.mxu0 %v3780_v40  ;;  %v4353_v7 = vld [vmem:[#allocation12 + $0x4b8] sm:$0xf0]  ;;  %v2654_v26 = vpop.f32.mrf.mxu0  ;;  %v2653_v41 = vadd.f32 %v2652_v56, %v2640_v36 }
 0x4c4   :  { %v3921_v40 = vld [vmem:[#allocation12 + $0x158] sm:$0xf0]  ;;  %v4356_v42 = vor.u32 %v5082_v18, %v4353_v7  ;;  %v5118_v7 = vld [vmem:[#allocation12 + $0x5cc] sm:$0xf] }
 0x4c5   :  { %2917 = vmatpush.bf16.msra.mxu1 %v3988_v63  ;;  %2896 = vmatpush.bf16.msrb.mxu3 %v4800_v43  ;;  %v4065_v63 = vld [vmem:[#allocation12 + $0x278] sm:$0xf0]  ;;  %v4228_v43 = vor.u32 %v5050_v38, %v4225_v34  ;;  %v5861_v46 = vadd.f32 %v2665_v23, %v2653_v41  ;;  %v3924_v47 = vor.u32 %v4974_v39, %v3921_v40  ;;  %v5070_v23 = vld [vmem:[#allocation12 + $0x44c] sm:$0xf] }
 0x4c6   :  { %v4068_v32 = vor.u32 %v5010_v1, %v4065_v63  ;;  %v4513_v9 = vld [vmem:[#allocation12 + $0x5f8] sm:$0xf0]  ;;  %v4308_v18 = vor.u32 %v5070_v23, %v4305_v24  ;;  %v5066_v38 = vld [vmem:[#allocation12 + $0x42c] sm:$0xf] }
 0x4c7   :  { %2930 = vmatpush.bf16.msra.mxu2 %v4116_v50  ;;  %2910 = vmatpush.bf16.msrb.mxu0 %v3764_v2  ;;  %v5046_v50 = vld [vmem:[#allocation12 + $0x38c] sm:$0xf]  ;;  %v2667_v52 = vpop.f32.mrf.mxu1  ;;  %v4641_v1 = vld [vmem:[#allocation12 + $0x6f8] sm:$0xf0] }
 0x4c8   :  { %3217 = vrot.lane.b32.xlu2 %v5861_v46, %s5561_s11  ;;  %v4212_v0 = vor.u32 %v5046_v50, %v4209_v51  ;;  %v5002_v2 = vld [vmem:[#allocation12 + $0x22c] sm:$0xf]  ;;  %3189 = vrot.lane.b32.xlu0 %v5861_v46, %s5562_s26  ;;  %v4497_v36 = vld [vmem:[#allocation12 + $0x5d8] sm:$0xf0] }
 0x4c9   :  { %2918 = vmatpush.bf16.msra.mxu1 %v3972_v58  ;;  %2897 = vmatpush.bf16.msrb.mxu3 %v4784_v5  ;;  %v2641_v58 = vpop.f32.mrf.mxu3  ;;  %v5865_v60 = vpop.f32.mrf.mxu2  ;;  %v4289_v34 = vld [vmem:[#allocation12 + $0x438] sm:$0xf0]  ;;  %v5062_v50 = vld [vmem:[#allocation12 + $0x40c] sm:$0xf] }
 0x4ca   :  { %2911 = vmatmul.bf16.vlgmr.msrb.gmra.mxu0 %v5801_v33  ;;  %v5078_v33 = vld [vmem:[#allocation12 + $0x48c] sm:$0xf]  ;;  %3133 = vrot.lane.b32.xlu1 %v5861_v46, %s5559_s8  ;;  %v4273_v51 = vld [vmem:[#allocation12 + $0x418] sm:$0xf0] }
 0x4cb   :  { %2955 = vmatpush.bf16.msra.mxu0 %v4388_v6  ;;  %2931 = vmatpush.bf16.msra.mxu2 %v4100_v13  ;;  %v4340_v56 = vor.u32 %v5078_v33, %v4337_v45  ;;  %v5869_v5 = vpop.f32.mrf.mxu0  ;;  %v3908_v6 = vor.u32 %v4970_v53, %v3905_v54  ;;  %v4033_v13 = vld [vmem:[#allocation12 + $0x238] sm:$0xf0]  ;;  %v4292_v45 = vor.u32 %v5066_v38, %v4289_v34  ;;  %v5030_v54 = vld [vmem:[#allocation12 + $0x30c] sm:$0xf] }
 0x4cc   :  { %2898 = vmatmul.bf16.vlgmr.msrb.gmra.mxu3 %v5827_v20  ;;  %v4036_v22 = vor.u32 %v5002_v2, %v4033_v13  ;;  %v4625_v33 = vld [vmem:[#allocation12 + $0x6d8] sm:$0xf0]  ;;  %v5146_v2 = vld [vmem:[#allocation12 + $0x6ac] sm:$0xf]  ;;  %v4276_v4 = vor.u32 %v5062_v50, %v4273_v51 }
 0x4cd   :  { %2942 = vmatpush.bf16.msra.mxu3 %v4260_v14  ;;  %2919 = vmatpush.bf16.msra.mxu1 %v3956_v21  ;;  %v5042_v14 = vld [vmem:[#allocation12 + $0x36c] sm:$0xf]  ;;  %v4628_v53 = vor.u32 %v5150_v44, %v4625_v33  ;;  %v4897_v58 = vld [vmem:[#allocation12 + $0x8f8] sm:$0xf0] }
 0x4ce   :  { %v5122_v21 = vld [vmem:[#allocation12 + $0x5ec] sm:$0xf]  ;;  %v4196_v10 = vor.u32 %v5042_v14, %v4193_v15  ;;  %v4609_v3 = vld [vmem:[#allocation12 + $0x6b8] sm:$0xf0] }
 0x4cf   :  { %2956 = vmatpush.bf16.msra.mxu0 %v4372_v12  ;;  %2932 = vmatpush.bf16.msra.mxu2 %v4084_v17  ;;  %v4017_v12 = vld [vmem:[#allocation12 + $0x218] sm:$0xf0]  ;;  %v4516_v30 = vor.u32 %v5122_v21, %v4513_v9  ;;  %v5110_v15 = vld [vmem:[#allocation12 + $0x58c] sm:$0xf] }
 0x4d0   :  { %v4177_v17 = vld [vmem:[#allocation12 + $0x358] sm:$0xf0]  ;;  %3049 = vrot.lane.b32.xlu2 %v5861_v46, %s5541_s25  ;;  %v4020_v63 = vor.u32 %v4998_v28, %v4017_v12  ;;  %3105 = vrot.lane.b32.xlu0 %v5861_v46, %s5549_s29  ;;  %v5214_v21 = vld [vmem:[#allocation12 + $0x8cc] sm:$0xf]  ;;  %v4468_v24 = vor.u32 %v5110_v15, %v4465_v35 }
 0x4d1   :  { %2943 = vmatpush.bf16.msra.mxu3 %v4244_v31  ;;  %2920 = vmatpush.bf16.msra.mxu1 %v3940_v37  ;;  %v5154_v31 = vld [vmem:[#allocation12 + $0x6ec] sm:$0xf]  ;;  %v2680_v26 = vpop.f32.mrf.mxu2  ;;  %v5875_v37 = vpop.f32.mrf.mxu3  ;;  %v4180_v40 = vor.u32 %v5038_v29, %v4177_v17  ;;  %v4881_v9 = vld [vmem:[#allocation12 + $0x8d8] sm:$0xf0] }
 0x4d2   :  { %v4644_v41 = vor.u32 %v5154_v31, %v4641_v1  ;;  %3161 = vrot.lane.b32.xlu1 %v5861_v46, %s5563_s0  ;;  %v4753_v28 = vld [vmem:[#allocation12 + $0x7d8] sm:$0xf0]  ;;  %v4884_v12 = vor.u32 %v5214_v21, %v4881_v9  ;;  %v5106_v29 = vld [vmem:[#allocation12 + $0x56c] sm:$0xf] }
 0x4d3   :  { %2957 = vmatpush.bf16.msra.mxu0 %v4356_v42  ;;  %2933 = vmatpush.bf16.msra.mxu2 %v4068_v32  ;;  %v2706_v39 = vpop.f32.mrf.mxu0  ;;  %v5034_v42 = vld [vmem:[#allocation12 + $0x32c] sm:$0xf]  ;;  %v4500_v32 = vor.u32 %v5118_v7, %v4497_v36  ;;  %v4865_v1 = vld [vmem:[#allocation12 + $0x8b8] sm:$0xf0] }
 0x4d4   :  { %v5210_v31 = vld [vmem:[#allocation12 + $0x8ac] sm:$0xf]  ;;  %v4577_v36 = vld [vmem:[#allocation12 + $0x678] sm:$0xf0] }
 0x4d5   :  { %2944 = vmatpush.bf16.msra.mxu3 %v4228_v43  ;;  %2921 = vmatpush.bf16.msra.mxu1 %v3924_v47  ;;  %v4161_v43 = vld [vmem:[#allocation12 + $0x338] sm:$0xf0]  ;;  %v5114_v47 = vld [vmem:[#allocation12 + $0x5ac] sm:$0xf]  ;;  %v4868_v34 = vor.u32 %v5210_v31, %v4865_v1  ;;  %v2679_v31 = vadd.f32 %v5865_v60, %v5849_v55 }
 0x4d6   :  { %v4164_v52 = vor.u32 %v5034_v42, %v4161_v43  ;;  %v5138_v7 = vld [vmem:[#allocation12 + $0x66c] sm:$0xf]  ;;  %v4737_v38 = vld [vmem:[#allocation12 + $0x7b8] sm:$0xf0] }
 0x4d7   :  { %2958 = vmatpush.bf16.msra.mxu0 %v4340_v56  ;;  %2934 = vmatpush.bf16.msra.mxu2 %v4052_v61  ;;  %v5218_v56 = vld [vmem:[#allocation12 + $0x8ec] sm:$0xf]  ;;  %v4484_v61 = vor.u32 %v5114_v47, %v4481_v48  ;;  %v4561_v44 = vld [vmem:[#allocation12 + $0x658] sm:$0xf0] }
 0x4d8   :  { %v4900_v14 = vor.u32 %v5218_v56, %v4897_v58  ;;  %v5102_v39 = vld [vmem:[#allocation12 + $0x54c] sm:$0xf]  ;;  %v4721_v47 = vld [vmem:[#allocation12 + $0x798] sm:$0xf0] }
 0x4d9   :  { %2945 = vmatpush.bf16.msra.mxu3 %v4212_v0  ;;  %2922 = vmatpush.bf16.msra.mxu1 %v3908_v6  ;;  %v4145_v0 = vld [vmem:[#allocation12 + $0x318] sm:$0xf0]  ;;  %v5186_v6 = vld [vmem:[#allocation12 + $0x7ec] sm:$0xf]  ;;  %v2693_v13 = vpop.f32.mrf.mxu3 }
 0x4da   :  { %v4148_v16 = vor.u32 %v5030_v54, %v4145_v0  ;;  %3077 = vrot.lane.b32.xlu1 %v5861_v46, %s5564_s21  ;;  %v5206_v42 = vld [vmem:[#allocation12 + $0x88c] sm:$0xf]  ;;  %v4833_v58 = vld [vmem:[#allocation12 + $0x878] sm:$0xf0] }
 0x4db   :  { %2959 = vmatpush.bf16.msra.mxu0 %v4324_v19  ;;  %2935 = vmatpush.bf16.msra.mxu2 %v4036_v22  ;;  %v4612_v19 = vor.u32 %v5146_v2, %v4609_v3  ;;  %v5142_v22 = vld [vmem:[#allocation12 + $0x68c] sm:$0xf]  ;;  %v4545_v2 = vld [vmem:[#allocation12 + $0x638] sm:$0xf0] }
 0x4dc   :  { %v5134_v43 = vld [vmem:[#allocation12 + $0x64c] sm:$0xf]  ;;  %v4529_v9 = vld [vmem:[#allocation12 + $0x618] sm:$0xf0] }
 0x4dd   :  { %2946 = vmatpush.bf16.msra.mxu3 %v4196_v10  ;;  %2923 = vmatpush.bf16.msra.mxu1 %v3892_v11  ;;  %v4593_v10 = vld [vmem:[#allocation12 + $0x698] sm:$0xf0]  ;;  %v5885_v23 = vpop.f32.mrf.mxu1  ;;  %v5182_v11 = vld [vmem:[#allocation12 + $0x7cc] sm:$0xf]  ;;  %v4564_v54 = vor.u32 %v5134_v43, %v4561_v44 }
 0x4de   :  { %v4596_v17 = vor.u32 %v5142_v22, %v4593_v10  ;;  %v5098_v51 = vld [vmem:[#allocation12 + $0x52c] sm:$0xf]  ;;  %v4689_v10 = vld [vmem:[#allocation12 + $0x758] sm:$0xf0] }
 0x4df   :  { %2960 = vmatpush.bf16.msra.mxu0 %v4308_v18  ;;  %2936 = vmatpush.bf16.msra.mxu2 %v4020_v63  ;;  %v4756_v18 = vor.u32 %v5182_v11, %v4753_v28  ;;  %v5178_v63 = vld [vmem:[#allocation12 + $0x7ac] sm:$0xf] }
 0x4e0   :  { %2924 = vmatmul.bf16.vlgmr.msra.gmra.mxu1 %v5803_v27  ;;  %v4769_v27 = vld [vmem:[#allocation12 + $0x7f8] sm:$0xf0]  ;;  %v5202_v56 = vld [vmem:[#allocation12 + $0x86c] sm:$0xf] }
 0x4e1   :  { %2968 = vmatpush.bf16.msrb.mxu1 %v4516_v30  ;;  %2947 = vmatpush.bf16.msra.mxu3 %v4180_v40  ;;  %v4449_v30 = vld [vmem:[#allocation12 + $0x578] sm:$0xf0]  ;;  %v5130_v0 = vld [vmem:[#allocation12 + $0x62c] sm:$0xf] }
 0x4e2   :  { %2937 = vmatmul.bf16.vlgmr.msra.gmra.mxu2 %v5810_v62  ;;  %v4772_v62 = vor.u32 %v5186_v6, %v4769_v27  ;;  %v4452_v26 = vor.u32 %v5106_v29, %v4449_v30  ;;  %v4433_v40 = vld [vmem:[#allocation12 + $0x558] sm:$0xf0]  ;;  %3020 = vrot.lane.b32.xlu1 %v5861_v46, %s5565_s2  ;;  %v4836_v27 = vor.u32 %v5202_v56, %v4833_v58  ;;  %v5094_v13 = vld [vmem:[#allocation12 + $0x50c] sm:$0xf] }
 0x4e3   :  { %2981 = vmatpush.bf16.msrb.mxu2 %v4644_v41  ;;  %2961 = vmatpush.bf16.msra.mxu0 %v4292_v45  ;;  %v4580_v41 = vor.u32 %v5138_v7, %v4577_v36  ;;  %v4436_v45 = vor.u32 %v5102_v39, %v4433_v40  ;;  %v4705_v6 = vld [vmem:[#allocation12 + $0x778] sm:$0xf0]  ;;  %v4548_v15 = vor.u32 %v5130_v0, %v4545_v2  ;;  %v5198_v35 = vld [vmem:[#allocation12 + $0x84c] sm:$0xf] }
 0x4e4   :  { %v5126_v21 = vld [vmem:[#allocation12 + $0x60c] sm:$0xf]  ;;  %v4673_v7 = vld [vmem:[#allocation12 + $0x738] sm:$0xf0]  ;;  %v2692_v36 = vadd.f32 %v5875_v37, %v2679_v31 }
 0x4e5   :  { %2969 = vmatpush.bf16.msrb.mxu1 %v4500_v32  ;;  %2948 = vmatpush.bf16.msra.mxu3 %v4164_v52  ;;  %v4849_v32 = vld [vmem:[#allocation12 + $0x898] sm:$0xf0]  ;;  %v2719_v33 = vpop.f32.mrf.mxu1  ;;  %v5891_v48 = vpop.f32.mrf.mxu2  ;;  %v5166_v22 = vld [vmem:[#allocation12 + $0x74c] sm:$0xf]  ;;  %v4532_v29 = vor.u32 %v5126_v21, %v4529_v9 }
 0x4e6   :  { %v4852_v50 = vor.u32 %v5206_v42, %v4849_v32  ;;  %v4417_v52 = vld [vmem:[#allocation12 + $0x538] sm:$0xf0]  ;;  %v5194_v30 = vld [vmem:[#allocation12 + $0x82c] sm:$0xf]  ;;  %v4692_v1 = vor.u32 %v5166_v22, %v4689_v10  ;;  %v2705_v60 = vadd.f32 %v5869_v5, %v2692_v36 }
 0x4e7   :  { %2982 = vmatpush.bf16.msrb.mxu2 %v4628_v53  ;;  %2962 = vmatpush.bf16.msra.mxu0 %v4276_v4  ;;  %v5893_v53 = vpop.f32.mrf.mxu0  ;;  %v4420_v3 = vor.u32 %v5098_v51, %v4417_v52  ;;  %v5170_v4 = vld [vmem:[#allocation12 + $0x76c] sm:$0xf]  ;;  %v4657_v40 = vld [vmem:[#allocation12 + $0x718] sm:$0xf0] }
 0x4e8   :  { %v5158_v39 = vld [vmem:[#allocation12 + $0x70c] sm:$0xf]  ;;  %v2718_v37 = vadd.f32 %v5885_v23, %v2705_v60 }
 0x4e9   :  { %2970 = vmatpush.bf16.msrb.mxu1 %v4484_v61  ;;  %2949 = vmatpush.bf16.msra.mxu3 %v4148_v16  ;;  %v4817_v16 = vld [vmem:[#allocation12 + $0x858] sm:$0xf0]  ;;  %v4660_v32 = vor.u32 %v5158_v39, %v4657_v40 }
 0x4ea   :  { %2963 = vmatmul.bf16.vlgmr.msra.gmra.mxu0 %v5814_v25  ;;  %v4740_v25 = vor.u32 %v5178_v63, %v4737_v38  ;;  %v4820_v11 = vor.u32 %v5198_v35, %v4817_v16  ;;  %v5190_v63 = vld [vmem:[#allocation12 + $0x80c] sm:$0xf]  ;;  %v4785_v38 = vld [vmem:[#allocation12 + $0x818] sm:$0xf0] }
 0x4eb   :  { %3007 = vmatpush.bf16.msrb.mxu0 %v4900_v14  ;;  %2983 = vmatpush.bf16.msrb.mxu2 %v4612_v19  ;;  %v4401_v14 = vld [vmem:[#allocation12 + $0x518] sm:$0xf0]  ;;  %v4708_v19 = vor.u32 %v5170_v4, %v4705_v6 }
 0x4ec   :  { %2950 = vmatmul.bf16.vlgmr.msra.gmra.mxu3 %v5807_v57  ;;  %v5174_v57 = vld [vmem:[#allocation12 + $0x78c] sm:$0xf]  ;;  %v5955_v40 = vld [vmem:[#allocation15 + $0x18] sm:$0xf] }
 0x4ed   :  { %2994 = vmatpush.bf16.msrb.mxu3 %v4772_v62  ;;  %2971 = vmatpush.bf16.msrb.mxu1 %v4468_v24  ;;  %v4724_v61 = vor.u32 %v5174_v57, %v4721_v47  ;;  %v4404_v62 = vor.u32 %v5094_v13, %v4401_v14  ;;  %v2732_v24 = vpop.f32.mrf.mxu2 }
 0x4ef   :  { %3008 = vmatpush.bf16.msrb.mxu0 %v4884_v12  ;;  %2984 = vmatpush.bf16.msrb.mxu2 %v4596_v17  ;;  %v2743_v28 = vpop.f32.mrf.mxu3  ;;  %v2758_v12 = vpop.f32.mrf.mxu0  ;;  %v4801_v17 = vld [vmem:[#allocation12 + $0x838] sm:$0xf0] }
 0x4f1   :  { %2995 = vmatpush.bf16.msrb.mxu3 %v4756_v18  ;;  %2972 = vmatpush.bf16.msrb.mxu1 %v4452_v26  ;;  %v5162_v18 = vld [vmem:[#allocation12 + $0x72c] sm:$0xf]  ;;  %v4804_v26 = vor.u32 %v5194_v30, %v4801_v17 }
 0x4f3   :  { %3009 = vmatpush.bf16.msrb.mxu0 %v4868_v34  ;;  %2985 = vmatpush.bf16.msrb.mxu2 %v4580_v41  ;;  %v4676_v34 = vor.u32 %v5162_v18, %v4673_v7  ;;  %v4788_v41 = vor.u32 %v5190_v63, %v4785_v38  ;;  %v3028_v63 = vlaneseq }
 0x4f5   :  { %2996 = vmatpush.bf16.msrb.mxu3 %v4740_v25  ;;  %2973 = vmatpush.bf16.msrb.mxu1 %v4436_v45  ;;  %v2731_v25 = vadd.f32 %v5891_v48, %v2718_v37  ;;  %v5962_v37 = vld [vmem:[#allocation15 + $0x14] sm:$0xf] }
 0x4f7   :  { %3010 = vmatpush.bf16.msrb.mxu0 %v4852_v50  ;;  %2986 = vmatpush.bf16.msrb.mxu2 %v4564_v54  ;;  %v2745_v42 = vpop.f32.mrf.mxu3 }
 0x4f9   :  { %2997 = vmatpush.bf16.msrb.mxu3 %v4724_v61  ;;  %2974 = vmatpush.bf16.msrb.mxu1 %v4420_v3 }
 0x4fb   :  { %3011 = vmatpush.bf16.msrb.mxu0 %v4836_v27  ;;  %2987 = vmatpush.bf16.msrb.mxu2 %v4548_v15 }
 0x4fd   :  { %2998 = vmatpush.bf16.msrb.mxu3 %v4708_v19  ;;  %2975 = vmatpush.bf16.msrb.mxu1 %v4404_v62  ;;  %v2769_v43 = vpop.f32.mrf.mxu1 }
 0x4ff   :  { %3012 = vmatpush.bf16.msrb.mxu0 %v4820_v11  ;;  %2988 = vmatpush.bf16.msrb.mxu2 %v4532_v29 }
 0x500   :  { %2976 = vmatmul.bf16.vlgmr.msrb.gmra.mxu1 %v5818_v8  ;;  %v2744_v8 = vadd.f32 %v2743_v28, %v2731_v25  ;;  %v3177_v25 = vperm.slane %v5955_v40, 0 }
 0x501   :  { %2999 = vmatpush.bf16.msrb.mxu3 %v4692_v1 }
 0x502   :  { %2989 = vmatmul.bf16.vlgmr.msrb.gmra.mxu2 %v5823_v59  ;;  %v2757_v5 = vadd.f32 %v5893_v53, %v2744_v8 }
 0x503   :  { %3013 = vmatpush.bf16.msrb.mxu0 %v4804_v26 }
 0x504   :  { %v2770_v59 = vadd.f32 %v2769_v43, %v2757_v5  ;;  %v3149_v5 = vperm.slane %v5962_v37, 0 }
 0x505   :  { %3000 = vmatpush.bf16.msrb.mxu3 %v4676_v34  ;;  %v2771_v44 = vpop.f32.mrf.mxu1  ;;  %v2782_v33 = vpop.f32.mrf.mxu2  ;;  %v5951_v34 = vand.u32 127, %v3028_v63 }
 0x506   :  { %v5906_v45 = vadd.f32 %v2782_v33, %v2770_v59  ;;  %v5972_v59 = vld [vmem:[#allocation15 + $0x1c] sm:$0xf] }
 0x507   :  { %3014 = vmatpush.bf16.msrb.mxu0 %v4788_v41  ;;  %v2808_v23 = vpop.f32.mrf.mxu0  ;;  %vm3169_vm9 = vcmp.lt.s32.totalorder %v5951_v34, 113  ;;  %vm3141_vm10 = vcmp.lt.s32.totalorder %v5951_v34, 127  ;;  %vm3197_vm11 = vcmp.lt.s32.totalorder %v5951_v34, 112  ;;  %vm3225_vm12 = vcmp.lt.s32.totalorder %v5951_v34, 111 }
 0x508   :  { %3135 = vrot.lane.b32.xlu2 %v5906_v45, %s5559_s8  ;;  %3219 = vrot.lane.b32.xlu0 %v5906_v45, %s5561_s11  ;;  %vm3085_vm15 = vcmp.lt.s32.totalorder %v5951_v34, 15  ;;  %vm3113_vm0 = vcmp.lt.s32.totalorder %v5951_v34, 1  ;;  %vm3057_vm2 = vcmp.lt.s32.totalorder %v5951_v34, 16  ;;  %vm3030_vm3 = vcmp.lt.s32.totalorder %v5951_v34, 17 }
 0x509   :  { %3001 = vmatpush.bf16.msrb.mxu3 %v4660_v32  ;;  %3191 = vrot.lane.b32.xlu1 %v5906_v45, %s5562_s26 }
 0x50a   :  { %3015 = vmatmul.bf16.vlgmr.msrb.gmra.mxu0 %v5827_v20 }
 0x50c   :  { %3002 = vmatmul.bf16.vlgmr.msrb.gmra.mxu3 %v5821_v49 }
 0x50d   :  { %v2784_v20 = vpop.f32.mrf.mxu2 }
 0x50f   :  { %v2795_v57 = vpop.f32.mrf.mxu3  ;;  %v2810_v49 = vpop.f32.mrf.mxu0 }
 0x510   :  { %3163 = vrot.lane.b32.xlu2 %v5906_v45, %s5563_s0  ;;  %3051 = vrot.lane.b32.xlu0 %v5906_v45, %s5541_s25  ;;  %v2796_v61 = vadd.f32 %v2795_v57, %v5849_v55  ;;  %v3205_v57 = vperm.slane %v5972_v59, 0 }
 0x511   :  { %3107 = vrot.lane.b32.xlu1 %v5906_v45, %s5549_s29 }
 0x512   :  { %v2809_v2 = vadd.f32 %v2808_v23, %v2796_v61  ;;  %v5978_v23 = vld [vmem:[#allocation15 + $0x20] sm:$0xf] }
 0x517   :  { %v2797_v47 = vpop.f32.mrf.mxu3 }
 0x518   :  { %3079 = vrot.lane.b32.xlu2 %v5906_v45, %s5564_s21 }
 0x51d   :  { %v2821_v48 = vpop.f32.mrf.mxu1 }
 0x51e   :  { %v2822_v3 = vadd.f32 %v2821_v48, %v2809_v2 }
 0x522   :  { %v5937_v11 = vpop.permute.xlu2 %3217 }
 0x525   :  { %v2823_v50 = vpop.f32.mrf.mxu1  ;;  %v2834_v51 = vpop.f32.mrf.mxu2 }
 0x526   :  { %v2835_v4 = vadd.f32 %v2834_v51, %v2822_v3  ;;  %v5566_v3 = vmov 65535  }
 0x527   :  { %v2860_v52 = vpop.f32.mrf.mxu0 }
 0x52a   :  { %v5943_v17 = vpop.permute.xlu2 %3049 }
 0x52d   :  { %v2836_v53 = vpop.f32.mrf.mxu2 }
 0x52f   :  { %v2847_v54 = vpop.f32.mrf.mxu3  ;;  %v2862_v56 = vpop.f32.mrf.mxu0 }
 0x530   :  { %v2848_v6 = vadd.f32 %v2847_v54, %v2835_v4  ;;  %v3233_v54 = vperm.slane %v5978_v23, 0  ;;  %v3380_v4 = vsel %vm3356_vm13, 4294967295, %v5566_v3 }
 0x532   :  { %v2861_v15 = vadd.f32 %v2860_v52, %v2848_v6 }
 0x537   :  { %v2849_v58 = vpop.f32.mrf.mxu3 }
 0x53a   :  { %v5945_v7 = vpop.permute.xlu0 %3189 }
 0x53c   :  { %v5935_v24 = vpop.permute.xlu1 %3133 }
 0x53d   :  { %v2873_v0 = vpop.f32.mrf.mxu1 }
 0x53e   :  { %v2874_v35 = vadd.f32 %v2873_v0, %v2861_v15 }
 0x542   :  { %v5953_v39 = vpop.permute.xlu0 %3105 }
 0x544   :  { %v5941_v30 = vpop.permute.xlu1 %3161 }
 0x545   :  { %v2875_v27 = vpop.f32.mrf.mxu1  ;;  %v2886_v13 = vpop.f32.mrf.mxu2 }
 0x546   :  { %v2887_v16 = vadd.f32 %v2886_v13, %v2874_v35  ;;  %v6003_v35 = vsel %vm3334_vm14, %v3380_v4, 0 }
 0x547   :  { %v2912_v14 = vpop.f32.mrf.mxu0 }
 0x548   :  { %v2913_v32 = vadd.f32 %v2912_v14, %v5849_v55 }
 0x54c   :  { %v5949_v26 = vpop.permute.xlu1 %3077 }
 0x54d   :  { %v2888_v19 = vpop.f32.mrf.mxu2 }
 0x54f   :  { %v2899_v21 = vpop.f32.mrf.mxu3  ;;  %v2914_v62 = vpop.f32.mrf.mxu0 }
 0x550   :  { %v5923_v9 = vadd.f32 %v2899_v21, %v2887_v16 }
 0x552   :  { %3193 = vrot.lane.b32.xlu2 %v5923_v9, %s5562_s26  ;;  %3165 = vrot.lane.b32.xlu0 %v5923_v9, %s5563_s0 }
 0x553   :  { %3137 = vrot.lane.b32.xlu1 %v5923_v9, %s5559_s8 }
 0x554   :  { %v5960_v42 = vpop.permute.xlu1 %3020 }
 0x557   :  { %v2901_v22 = vpop.f32.mrf.mxu3 }
 0x55a   :  { %3109 = vrot.lane.b32.xlu2 %v5923_v9, %s5549_s29  ;;  %3221 = vrot.lane.b32.xlu0 %v5923_v9, %s5561_s11 }
 0x55d   :  { %v2925_v10 = vpop.f32.mrf.mxu1 }
 0x55e   :  { %v2926_v8 = vadd.f32 %v2925_v10, %v2913_v32  ;;  %v3150_v32 = vperm.slane %v5962_v37, 1 }
 0x562   :  { %3081 = vrot.lane.b32.xlu0 %v5923_v9, %s5564_s21  ;;  %v5947_v36 = vpop.permute.xlu2 %3135 }
 0x563   :  { %v3144_v44 = vsel %vm3141_vm10, %v5935_v24, %v5947_v36 }
 0x564   :  { %v5984_v49 = vmul.f32 %v3149_v5, %v3144_v44 }
 0x565   :  { %v2927_v28 = vpop.f32.mrf.mxu1  ;;  %v2938_v12 = vpop.f32.mrf.mxu2 }
 0x566   :  { %v2939_v55 = vadd.f32 %v2938_v12, %v2926_v8  ;;  %v3297_v0 = vrot.slane %v5984_v49, 1 }
 0x567   :  { %v2964_v29 = vpop.f32.mrf.mxu0 }
 0x56a   :  { %v5958_v60 = vpop.permute.xlu2 %3163 }
 0x56b   :  { %v3172_v43 = vsel %vm3169_vm9, %v5941_v30, %v5958_v60 }
 0x56c   :  { %v3185_v33 = vmul.f32 %v3177_v25, %v3172_v43  ;;  %v3206_v43 = vperm.slane %v5972_v59, 1 }
 0x56d   :  { %v2940_v31 = vpop.f32.mrf.mxu2 }
 0x56e   :  { %v3309_v53 = vrot.slane %v3185_v33, 6  ;;  %v3455_v31 = vld [vmem:[%s6294_s16] sm:$0x7] }
 0x56f   :  { %v2951_v1 = vpop.f32.mrf.mxu3  ;;  %v2966_v18 = vpop.f32.mrf.mxu0 }
 0x570   :  { %v2952_v47 = vadd.f32 %v2951_v1, %v2939_v55  ;;  %v3352_v27 = vsel %vm790_vm7, %v3297_v0, %v3309_v53 }
 0x572   :  { %v2965_v2 = vadd.f32 %v2964_v29, %v2952_v47  ;;  %v3080_v1 = vpop.permute.xlu2 %3079 }
 0x577   :  { %v2953_v38 = vpop.f32.mrf.mxu3 }
 0x578   :  { %v3178_v38 = vperm.slane %v5955_v40, 1 }
 0x57a   :  { %v5980_v20 = vpop.permute.xlu0 %3219 }
 0x57b   :  { %v3192_v51 = vpop.permute.xlu1 %3191  ;;  %v3228_v58 = vsel %vm3225_vm12, %v5937_v11, %v5980_v20 }
 0x57c   :  { %v3200_v56 = vsel %vm3197_vm11, %v5945_v7, %v3192_v51  ;;  %v3241_v14 = vmul.f32 %v3233_v54, %v3228_v58 }
 0x57d   :  { %v2977_v41 = vpop.f32.mrf.mxu1  ;;  %v3213_v61 = vmul.f32 %v3205_v57, %v3200_v56 }
 0x57e   :  { %v2978_v13 = vadd.f32 %v2977_v41, %v2965_v2 }
 0x57f   :  { %v3321_v6 = vrot.slane %v3213_v61, 3 }
 0x581   :  { %v3357_v15 = vsel %vm3356_vm13, %v3352_v27, %v3321_v6  ;;  %v6071_v6 = vld [vmem:[#allocation15 + $0x8] sm:$0xf] }
 0x582   :  { %v3365_v19 = vpack.c.bf16 %v3241_v14, %v3357_v15  ;;  %v6033_v18 = vpop.permute.xlu0 %3051  ;;  %v3095_v27 = vperm.slane %v6071_v6, 2 }
 0x583   :  { %v3108_v63 = vpop.permute.xlu1 %3107 }
 0x584   :  { %v3383_v28 = vand.u32 %v6003_v35, %v3365_v19 }
 0x585   :  { %v2979_v48 = vpop.f32.mrf.mxu1  ;;  %v2990_v50 = vpop.f32.mrf.mxu2 }
 0x586   :  { %v2991_v16 = vadd.f32 %v2990_v50, %v2978_v13  ;;  %3400 = vmatpush.bf16.msra.mxu1 %v3383_v28  ;;  %v6075_v13 = vld [vmem:[#allocation15 + $0xc] sm:$0xf] }
 0x587   :  { %v3016_v52 = vpop.f32.mrf.mxu0  ;;  %v3123_v14 = vperm.slane %v6075_v13, 2 }
 0x58d   :  { %v2992_v21 = vpop.f32.mrf.mxu2 }
 0x58f   :  { %v3003_v62 = vpop.f32.mrf.mxu3  ;;  %v3018_v10 = vpop.f32.mrf.mxu0 }
 0x590   :  { %v3004_v22 = vadd.f32 %v3003_v62, %v2991_v16 }
 0x592   :  { %v6006_v12 = vadd.f32 %v3016_v52, %v3004_v22  ;;  %v3234_v52 = vperm.slane %v5978_v23, 1  ;;  %v3151_v22 = vperm.slane %v5962_v37, 2 }
 0x594   :  { %3083 = vrot.lane.b32.xlu2 %v6006_v12, %s5564_s21  ;;  %3055 = vrot.lane.b32.xlu0 %v6006_v12, %s5541_s25 }
 0x595   :  { %3111 = vrot.lane.b32.xlu1 %v6006_v12, %s5549_s29 }
 0x597   :  { %v3005_v29 = vpop.f32.mrf.mxu3 }
 0x59c   :  { %3139 = vrot.lane.b32.xlu2 %v6006_v12, %s5559_s8  ;;  %3195 = vrot.lane.b32.xlu0 %v6006_v12, %s5562_s26 }
 0x59d   :  { %3167 = vrot.lane.b32.xlu1 %v6006_v12, %s5563_s0 }
 0x5a4   :  { %3026 = vrot.lane.b32.xlu2 %v6006_v12, %s5565_s2  ;;  %3024 = vrot.lane.b32.xlu0 %v5923_v9, %s5565_s2 }
 0x5a5   :  { %3223 = vrot.lane.b32.xlu1 %v6006_v12, %s5561_s11 }
 0x5ac   :  { %3022 = vrot.lane.b32.xlu2 %v5906_v45, %s5565_s2  ;;  %v6036_v41 = vpop.permute.xlu2 %3193 }
 0x5ad   :  { %3053 = vrot.lane.b32.xlu1 %v5923_v9, %s5541_s25  ;;  %v3199_v44 = vsel %vm3197_vm11, %v3192_v51, %v6036_v41 }
 0x5ae   :  { %v3214_v48 = vmul.f32 %v3206_v43, %v3199_v44  ;;  %v3122_v43 = vperm.slane %v6075_v13, 1  ;;  %v3094_v44 = vperm.slane %v6071_v6, 1 }
 0x5b0   :  { %v3322_v51 = vrot.slane %v3214_v48, 3 }
 0x5b4   :  { %3458 = vperm.xlu2 %5268, %v3455_v31   ;;  %v6067_v2 = vpop.permute.xlu2 %3109 }
 0x5b5   :  { %v3115_v16 = vsel %vm3113_vm0, %v3108_v63, %v6067_v2 }
 0x5b6   :  { %v3131_v21 = vmul.f32 %v3123_v14, %v3115_v16  ;;  %v3121_v16 = vperm.slane %v6075_v13, 0 }
 0x5b8   :  { %v3275_v10 = vrot.slane %v3131_v21, 7 }
 0x5c4   :  { %v6039_v25 = vpop.permute.xlu0 %3165 }
 0x5c5   :  { %v3171_v8 = vsel %vm3169_vm9, %v5958_v60, %v6039_v25  ;;  %v3138_v5 = vpop.permute.xlu1 %3137 }
 0x5c6   :  { %v3186_v55 = vmul.f32 %v3178_v38, %v3171_v8  ;;  %v3143_v33 = vsel %vm3141_vm10, %v5947_v36, %v3138_v5 }
 0x5c7   :  { %v6052_v57 = vmul.f32 %v3150_v32, %v3143_v33  ;;  %v3287_v32 = vrot.slane %v5923_v9, 4  ;;  %v3088_v33 = vsel %vm3085_vm15, %v5949_v26, %v3080_v1 }
 0x5c8   :  { %v3310_v47 = vrot.slane %v3186_v55, 6  ;;  %v3116_v55 = vsel %vm3113_vm0, %v5953_v39, %v3108_v63  ;;  %v3102_v63 = vmul.f32 %v3094_v44, %v3088_v33 }
 0x5c9   :  { %v3298_v50 = vrot.slane %v6052_v57, 1  ;;  %v3130_v48 = vmul.f32 %v3122_v43, %v3116_v55 }
 0x5cb   :  { %v3353_v60 = vsel %vm790_vm7, %v3298_v50, %v3310_v47  ;;  %v6112_v47 = vld [vmem:[#allocation15 + $0x4] sm:$0xf] }
 0x5cc   :  { %v6059_v53 = vpop.permute.xlu0 %3221  ;;  %v3358_v56 = vsel %vm3356_vm13, %v3353_v60, %v3322_v51  ;;  %v3066_v60 = vperm.slane %v6112_v47, 1  ;;  %v3370_v51 = vld [vmem:[%s6291_s13] sm:$0x7]  ;;  %v3065_v14 = vperm.slane %v6112_v47, 0 }
 0x5cd   :  { %v3227_v36 = vsel %vm3225_vm12, %v5980_v20, %v6059_v53  ;;  %3373 = vperm.xlu1 %5270, %v3370_v51  }
 0x5ce   :  { %v3242_v54 = vmul.f32 %v3234_v52, %v3227_v36  ;;  %v3274_v36 = vrot.slane %v3130_v48, 7 }
 0x5d0   :  { %v3366_v58 = vpack.c.bf16 %v3242_v54, %v3358_v56  ;;  %v3262_v54 = vrot.slane %v3102_v63, 2 }
 0x5d2   :  { %v3386_v61 = vand.u32 %v6003_v35, %v3366_v58  ;;  %v3093_v58 = vperm.slane %v6071_v6, 0  ;;  %v3340_v21 = vsel %vm800_vm8, %v3262_v54, %v3274_v36 }
 0x5d4   :  { %3413 = vmatpush.bf16.msra.mxu2 %v3386_v61  ;;  %v6069_v4 = vpop.permute.xlu0 %3081  ;;  %v6131_v61 = vld [vmem:[#allocation15] sm:$0xf] }
 0x5d5   :  { %v3087_v20 = vsel %vm3085_vm15, %v3080_v1, %v6069_v4  ;;  %v3060_v1 = vsel %vm3057_vm2, %v5943_v17, %v6033_v18 }
 0x5d6   :  { %v6087_v19 = vmul.f32 %v3095_v27, %v3087_v20  ;;  %v3074_v56 = vmul.f32 %v3066_v60, %v3060_v1  ;;  %v3038_v20 = vperm.slane %v6131_v61, 1  ;;  %v3285_v60 = vrot.slane %v5861_v46, 4 }
 0x5d8   :  { %v3263_v62 = vrot.slane %v6087_v19, 2 }
 0x5da   :  { %v3341_v31 = vsel %vm800_vm8, %v3263_v62, %v3275_v10 }
 0x5ee   :  { %v6082_v15 = vpop.permute.xlu2 %3083 }
 0x5ef   :  { %v3089_v27 = vsel %vm3085_vm15, %v6082_v15, %v5949_v26 }
 0x5f0   :  { %v3101_v26 = vmul.f32 %v3093_v58, %v3089_v27 }
 0x5f2   :  { %v3261_v58 = vrot.slane %v3101_v26, 2  ;;  %v6183_v26 = vld [vmem:[#allocation14] sm:$0x3] }
 0x5f6   :  { %v6091_v28 = vpop.permute.xlu2 %3139 }
 0x5f7   :  { %v3142_v29 = vsel %vm3141_vm10, %v3138_v5, %v6091_v28  ;;  %v3345_v5 = vsel %vm724_vm4, %v3341_v31, %v3287_v32  ;;  %v3286_v31 = vrot.slane %v5906_v45, 4  ;;  %v3145_v57 = vsel %vm3141_vm10, %v6091_v28, %v5935_v24 }
 0x5f8   :  { %v6099_v38 = vmul.f32 %v3151_v22, %v3142_v29  ;;  %v3037_v22 = vperm.slane %v6131_v61, 0 }
 0x5f9   :  { %v3344_v36 = vsel %vm724_vm4, %v3340_v21, %v3286_v31  ;;  %v3179_v21 = vperm.slane %v5955_v40, 2  ;;  %v3180_v31 = vperm.slane %v5955_v40, 3 }
 0x5fa   :  { %v3299_v8 = vrot.slane %v6099_v38, 1 }
 0x5fc   :  { %v6117_v9 = vsel %vm3347_vm1, %v3345_v5, %v3299_v8  ;;  %v3250_v5 = vrot.slane %v3074_v56, 5  ;;  %v3349_v56 = vsel %vm3347_vm1, %v3344_v36, %v3298_v50 }
 0x5fe   :  { %v6120_v52 = vpop.permute.xlu2 %3026 }
 0x5ff   :  { %v3034_v32 = vsel %vm3030_vm3, %v6120_v52, %v5960_v42 }
 0x600   :  { %v3045_v1 = vmul.f32 %v3037_v22, %v3034_v32  ;;  %v3208_v22 = vperm.slane %v5972_v59, 3 }
 0x606   :  { %v6143_v10 = vpop.permute.xlu2 %3022  ;;  %v6145_v29 = vpop.permute.xlu0 %3055 }
 0x607   :  { %v3033_v43 = vsel %vm3030_vm3, %v5960_v42, %v6143_v10  ;;  %v3061_v44 = vsel %vm3057_vm2, %v6145_v29, %v5943_v17  ;;  %v3112_v55 = vpop.permute.xlu1 %3111 }
 0x608   :  { %v3046_v45 = vmul.f32 %v3038_v20, %v3033_v43  ;;  %v3073_v33 = vmul.f32 %v3065_v14, %v3061_v44  ;;  %v3117_v48 = vsel %vm3113_vm0, %v3112_v55, %v5953_v39  ;;  %v3152_v20 = vperm.slane %v5962_v37, 3 }
 0x609   :  { %v3129_v63 = vmul.f32 %v3121_v16, %v3117_v48  ;;  %v3207_v39 = vperm.slane %v5972_v59, 2 }
 0x60a   :  { %v3249_v51 = vrot.slane %v3073_v33, 5  ;;  %v3331_v42 = vsel %vm3329_vm5, %v3046_v45, %v3250_v5  ;;  %v6200_v44 = vmul.f32 %v3152_v20, %v3145_v57 }
 0x60b   :  { %v3273_v27 = vrot.slane %v3129_v63, 7  ;;  %v3336_v17 = vsel %vm3334_vm14, %v3331_v42, %v3262_v54  ;;  %v3086_v63 = vsel %vm3085_vm15, %v6069_v4, %v6082_v15 }
 0x60c   :  { %v3362_v14 = vpack.c.bf16 %v3349_v56, %v3336_v17  ;;  %v3330_v46 = vsel %vm3329_vm5, %v3045_v1, %v3249_v51  ;;  %v3235_v1 = vperm.slane %v5978_v23, 2 }
 0x60d   :  { %v3339_v16 = vsel %vm800_vm8, %v3261_v58, %v3273_v27  ;;  %v3335_v37 = vsel %vm3334_vm14, %v3330_v46, %v3261_v58 }
 0x60e   :  { %v3196_v50 = vpop.permute.xlu0 %3195  ;;  %3414 = vmatpush.bf16.msra.mxu2 %v3362_v14  ;;  %v3343_v54 = vsel %vm724_vm4, %v3339_v16, %v3285_v60  ;;  %v3300_v60 = vrot.slane %v6200_v44, 1 }
 0x60f   :  { %v3198_v59 = vsel %vm3197_vm11, %v6036_v41, %v3196_v50  ;;  %v3201_v40 = vsel %vm3197_vm11, %v3196_v50, %v5945_v7  ;;  %v3168_v32 = vpop.permute.xlu1 %3167  ;;  %v3348_v24 = vsel %vm3347_vm1, %v3343_v54, %v3297_v0  ;;  %v3124_v0 = vperm.slane %v6075_v13, 3 }
 0x610   :  { %v3170_v28 = vsel %vm3169_vm9, %v6039_v25, %v3168_v32  ;;  %v3173_v43 = vsel %vm3169_vm9, %v3168_v32, %v5941_v30  ;;  %v3361_v45 = vpack.c.bf16 %v3348_v24, %v3335_v37  ;;  %v3215_v7 = vmul.f32 %v3207_v39, %v3198_v59 }
 0x611   :  { %v3187_v41 = vmul.f32 %v3179_v21, %v3170_v28  ;;  %v3188_v5 = vmul.f32 %v3180_v31, %v3173_v43  ;;  %4902 = vmatmul.msk.bf16.vlgmr.msra.gmra.mxu2 %vm3376_vm6, %v6183_v26  ;;  %v3216_v49 = vmul.f32 %v3208_v22, %v3201_v40  ;;  %v3096_v25 = vperm.slane %v6071_v6, 3 }
 0x612   :  { %3401 = vmatpush.bf16.msra.mxu1 %v3361_v45  ;;  %v3114_v30 = vsel %vm3113_vm0, %v6067_v2, %v3112_v55  ;;  %v3236_v13 = vperm.slane %v5978_v23, 3  ;;  %v3323_v51 = vrot.slane %v3215_v7, 3  ;;  %v3068_v22 = vperm.slane %v6112_v47, 3 }
 0x613   :  { %v3311_v33 = vrot.slane %v3187_v41, 6  ;;  %v3312_v48 = vrot.slane %v3188_v5, 6  ;;  %v3324_v42 = vrot.slane %v3216_v49, 3  ;;  %v3132_v6 = vmul.f32 %v3124_v0, %v3114_v30 }
 0x614   :  { %v3104_v4 = vmul.f32 %v3096_v25, %v3086_v63  ;;  %v3039_v21 = vperm.slane %v6131_v61, 2  ;;  %v3040_v31 = vperm.slane %v6131_v61, 3  ;;  %v3288_v50 = vrot.slane %v6006_v12, 4 }
 0x615   :  { %4901 = vmatmul.msk.bf16.vlgmr.msra.gmra.mxu1 %vm3376_vm6, %v6183_v26  ;;  %v3354_v2 = vsel %vm790_vm7, %v3299_v8, %v3311_v33  ;;  %v3355_v55 = vsel %vm790_vm7, %v3300_v60, %v3312_v48  ;;  %v3276_v56 = vrot.slane %v3132_v6, 7  ;;  %vm3461_vm9 = vcmask 23552  }
 0x616   :  { %v3359_v17 = vsel %vm3356_vm13, %v3354_v2, %v3323_v51  ;;  %v3360_v38 = vsel %vm3356_vm13, %v3355_v55, %v3324_v42  ;;  %v3264_v39 = vrot.slane %v3104_v4, 2  ;;  %v3025_v14 = vpop.permute.xlu0 %3024 }
 0x617   :  { %v3224_v36 = vpop.permute.xlu1 %3223  ;;  %v3031_v37 = vsel %vm3030_vm3, %v3025_v14, %v6120_v52 }
 0x618   :  { %v3226_v15 = vsel %vm3225_vm12, %v6059_v53, %v3224_v36  ;;  %v3229_v23 = vsel %vm3225_vm12, %v3224_v36, %v5937_v11  ;;  %v3067_v53 = vperm.slane %v6112_v47, 2  ;;  %v3342_v11 = vsel %vm800_vm8, %v3264_v39, %v3276_v56 }
 0x619   :  { %v3243_v58 = vmul.f32 %v3235_v1, %v3226_v15  ;;  %v3244_v27 = vmul.f32 %v3236_v13, %v3229_v23  ;;  %v3346_v12 = vsel %vm724_vm4, %v3342_v11, %v3288_v50  ;;  %v3048_v32 = vmul.f32 %v3040_v31, %v3031_v37 }
 0x61a   :  { %v3351_v34 = vsel %vm3347_vm1, %v3346_v12, %v3300_v60  ;;  %v3450_v60 = vld [vmem:[#allocation17] sm:$0x3] }
 0x61b   :  { %v3367_v8 = vpack.c.bf16 %v3243_v58, %v3359_v17  ;;  %v3368_v20 = vpack.c.bf16 %v3244_v27, %v3360_v38  ;;  %v3459_v58 = vpop.permute.xlu2 %3458 }
 0x61d   :  { %v3389_v46 = vand.u32 %v6003_v35, %v3367_v8  ;;  %v3392_v16 = vand.u32 %v6003_v35, %v3368_v20  ;;  %v3032_v35 = vsel %vm3030_vm3, %v6143_v10, %v3025_v14 }
 0x61e   :  { %v3047_v40 = vmul.f32 %v3039_v21, %v3032_v35 }
 0x61f   :  { %3426 = vmatpush.bf16.msra.mxu3 %v3389_v46  ;;  %v3054_v57 = vpop.permute.xlu1 %3053  ;;  %3439 = vmatpush.bf16.msrb.mxu1 %v3392_v16 }
 0x620   :  { %v3058_v47 = vsel %vm3057_vm2, %v3054_v57, %v6145_v29  ;;  %v3059_v61 = vsel %vm3057_vm2, %v6033_v18, %v3054_v57 }
 0x621   :  { %v3075_v54 = vmul.f32 %v3067_v53, %v3059_v61  ;;  %v3076_v59 = vmul.f32 %v3068_v22, %v3058_v47 }
 0x623   :  { %v3251_v24 = vrot.slane %v3075_v54, 5  ;;  %v3252_v52 = vrot.slane %v3076_v59, 5 }
 0x625   :  { %v3332_v28 = vsel %vm3329_vm5, %v3047_v40, %v3251_v24  ;;  %v3333_v10 = vsel %vm3329_vm5, %v3048_v32, %v3252_v52 }
 0x626   :  { %v3337_v29 = vsel %vm3334_vm14, %v3332_v28, %v3263_v62  ;;  %v3338_v43 = vsel %vm3334_vm14, %v3333_v10, %v3264_v39  ;;  %v3465_v62 = vsel %vm800_vm8, 4294967295, %v5566_v3 }
 0x627   :  { %v3363_v18 = vpack.c.bf16 %v6117_v9, %v3337_v29  ;;  %v3364_v44 = vpack.c.bf16 %v3351_v34, %v3338_v43  ;;  %v3466_v9 = vsel %vm790_vm7, %v3465_v62, 0 }
 0x629   :  { %3427 = vmatpush.bf16.msra.mxu3 %v3363_v18  ;;  %3440 = vmatpush.bf16.msrb.mxu1 %v3364_v44 }
 0x62c   :  { %4903 = vmatmul.msk.bf16.vlgmr.msra.gmra.mxu3 %vm3376_vm6, %v6183_v26  ;;  %4904 = vmatmul.msk.bf16.vlgmr.msrb.gmra.mxu1 %vm3376_vm6, %v6183_v26 }
 0x63f   :  { %v3374_v41 = vpop.permute.xlu1 %3373 }
 0x692   :  { %v3403_v5 = vpop.f32.mrf.mxu1 }
 0x693   :  { %v3404_v19 = vadd.f32 %v3403_v5, %v3374_v41 }
 0x694   :  { %v3416_v45 = vpop.f32.mrf.mxu2 }
 0x695   :  { %v3417_v7 = vadd.f32 %v3416_v45, %v3374_v41  ;;  %v3446_v49 = vmax.f32 %v3404_v19, 0.0 }
 0x697   :  { %v3447_v0 = vmax.f32 %v3417_v7, 0.0  ;;  %v3451_v33 = vpack.c.bf16 %v3446_v49, %v3446_v49 }
 0x699   :  { %v3452_v48 = vpack.c.bf16 %v3447_v0, %v3447_v0  ;;  %v3468_v25 = vand.u32 %v3466_v9, %v3451_v33 }
 0x69a   :  { %v3405_v63 = vpop.f32.mrf.mxu1 }
 0x69b   :  { %v3471_v30 = vand.u32 %v3466_v9, %v3452_v48  ;;  %3486 = vmatpush.bf16.msrb.mxu2 %v3468_v25 }
 0x69c   :  { %v3418_v26 = vpop.f32.mrf.mxu2 }
 0x69d   :  { %3499 = vmatpush.bf16.msra.mxu0 %v3471_v30 }
 0x69e   :  { %4905 = vmatmul.msk.bf16.vlgmr.msrb.gmra.mxu2 %vm3461_vm9, %v3450_v60 }
 0x6a0   :  { %4906 = vmatmul.msk.bf16.vlgmr.msra.gmra.mxu0 %vm3461_vm9, %v3450_v60 }
 0x6a9   :  { %v3442_v3 = vpop.f32.mrf.mxu1 }
 0x6aa   :  { %v3443_v1 = vadd.f32 %v3442_v3, %v3374_v41 }
 0x6ac   :  { %v3449_v13 = vmax.f32 %v3443_v1, 0.0 }
 0x6ae   :  { %v3454_v51 = vpack.c.bf16 %v3449_v13, %v3449_v13 }
 0x6af   :  { %v3429_v42 = vpop.f32.mrf.mxu3 }
 0x6b0   :  { %v3477_v6 = vand.u32 %v3466_v9, %v3454_v51  ;;  %v3430_v2 = vadd.f32 %v3429_v42, %v3374_v41 }
 0x6b1   :  { %v3444_v55 = vpop.f32.mrf.mxu1 }
 0x6b2   :  { %v3448_v36 = vmax.f32 %v3430_v2, 0.0  ;;  %3525 = vmatpush.bf16.msra.mxu1 %v3477_v6 }
 0x6b4   :  { %v3453_v4 = vpack.c.bf16 %v3448_v36, %v3448_v36 }
 0x6b5   :  { %4908 = vmatmul.msk.bf16.vlgmr.msra.gmra.mxu1 %vm3461_vm9, %v3450_v60 }
 0x6b6   :  { %v3474_v15 = vand.u32 %v3466_v9, %v3453_v4 }
 0x6b7   :  { %v3431_v23 = vpop.f32.mrf.mxu3 }
 0x6b8   :  { %3512 = vmatpush.bf16.msrb.mxu3 %v3474_v15 }
 0x6bb   :  { %4907 = vmatmul.msk.bf16.vlgmr.msrb.gmra.mxu3 %vm3461_vm9, %v3450_v60 }
 0x71d   :  { %v3501_v27 = vpop.f32.mrf.mxu0 }
 0x71e   :  { %v3502_v17 = vadd.f32 %v3501_v27, %v3459_v58 }
 0x720   :  { %v3532_v38 = vsub.f32 0.0, %v3502_v17 }
 0x721   :  { %v3488_v8 = vpop.f32.mrf.mxu2 }
 0x722   :  { %v3537_v56 = vmul.f32 1.442695, %v3532_v38  ;;  %v3489_v20 = vadd.f32 %v3488_v8, %v3459_v58 }
 0x724   :  { %5279 = vpow2.f32 %v3537_v56  ;;  %v3531_v39 = vsub.f32 0.0, %v3489_v20 }
 0x725   :  { %v3503_v14 = vpop.f32.mrf.mxu0 }
 0x726   :  { %v3535_v46 = vmul.f32 1.442695, %v3531_v39 }
 0x728   :  { %5281 = vpow2.f32 %v3535_v46 }
 0x729   :  { %v3490_v53 = vpop.f32.mrf.mxu2 }
 0x72a   :  { %v5280_v16 = vpop.eup %5279 }
 0x72b   :  { %v3544_v22 = vadd.f32 1.0, %v5280_v16 }
 0x72d   :  { %5283 = vrcp.f32 %v3544_v22  ;;  %v3573_v61 = vand.u32 2147483648, %v3544_v22  ;;  %v3571_v40 = vand.u32 2147483647, %v3544_v22  ;;  %vm3567_vm8 = vweird.f32 %v3544_v22 }
 0x72e   :  { %v5282_v11 = vpop.eup %5281 }
 0x72f   :  { %v3543_v21 = vadd.f32 1.0, %v5282_v11  ;;  %v3574_v28 = vor.u32 1.1754944e-38, %v3573_v61  ;;  %vm3572_vm11 = vcmp.eq.f32.partialorder %v3571_v40, 8.507059e+37 }
 0x731   :  { %5285 = vrcp.f32 %v3543_v21  ;;  %v3558_v43 = vand.u32 2147483648, %v3543_v21  ;;  %v3556_v44 = vand.u32 2147483647, %v3543_v21  ;;  %vm3552_vm13 = vweird.f32 %v3543_v21 }
 0x732   :  { %v3527_v31 = vpop.f32.mrf.mxu1 }
 0x733   :  { %v5284_v57 = vpop.eup %5283  ;;  %v3528_v50 = vadd.f32 %v3527_v31, %v3459_v58  ;;  %v3559_v7 = vor.u32 1.1754944e-38, %v3558_v43  ;;  %vm3557_vm15 = vcmp.eq.f32.partialorder %v3556_v44, 8.507059e+37 }
 0x734   :  { %v3563_v37 = vmul.f32 %v5284_v57, %v3544_v22  ;;  %vm3568_vm7 = vweird.f32 %v5284_v57 }
 0x735   :  { %v3534_v35 = vsub.f32 0.0, %v3528_v50  ;;  %vm3569_vm10 = vmor %vm3567_vm8, %vm3568_vm7 }
 0x736   :  { %v3564_v47 = vsub.f32 1.0, %v3563_v37 }
 0x737   :  { %v3541_v54 = vmul.f32 1.442695, %v3534_v35  ;;  %v5286_v59 = vpop.eup %5285 }
 0x738   :  { %v3565_v12 = vmul.f32 %v5284_v57, %v3564_v47  ;;  %v3548_v32 = vmul.f32 %v5286_v59, %v3543_v21  ;;  %vm3553_vm12 = vweird.f32 %v5286_v59 }
 0x739   :  { %5287 = vpow2.f32 %v3541_v54  ;;  %vm3554_vm14 = vmor %vm3552_vm13, %vm3553_vm12 }
 0x73a   :  { %v3566_v24 = vadd.f32 %v5284_v57, %v3565_v12  ;;  %v3529_v52 = vpop.f32.mrf.mxu1  ;;  %v3549_v10 = vsub.f32 1.0, %v3548_v32 }
 0x73c   :  { %v3570_v29 = vsel %vm3569_vm10, %v5284_v57, %v3566_v24  ;;  %v3550_v18 = vmul.f32 %v5286_v59, %v3549_v10 }
 0x73d   :  { %v3575_v34 = vsel %vm3572_vm11, %v3574_v28, %v3570_v29 }
 0x73e   :  { %v3514_v41 = vpop.f32.mrf.mxu3  ;;  %v3611_v19 = vrot.slane %v3575_v34, 4  ;;  %v3551_v62 = vadd.f32 %v5286_v59, %v3550_v18 }
 0x73f   :  { %v5288_v5 = vpop.eup %5287  ;;  %v3515_v45 = vadd.f32 %v3514_v41, %v3459_v58 }
 0x740   :  { %v3546_v49 = vadd.f32 1.0, %v5288_v5  ;;  %v3555_v9 = vsel %vm3554_vm14, %v5286_v59, %v3551_v62 }
 0x741   :  { %v3533_v0 = vsub.f32 0.0, %v3515_v45  ;;  %v3560_v33 = vsel %vm3557_vm15, %v3559_v7, %v3555_v9 }
 0x742   :  { %5289 = vrcp.f32 %v3546_v49  ;;  %v3613_v48 = vsel %vm724_vm4, %v3560_v33, %v3611_v19  ;;  %v3603_v6 = vand.u32 2147483648, %v3546_v49  ;;  %vm3597_vm1 = vweird.f32 %v3546_v49 }
 0x743   :  { %v3539_v25 = vmul.f32 1.442695, %v3533_v0  ;;  %3617 = vst [vmem:[%s6295_s17] sm:$0x77] %v3613_v48  ;;  %v3601_v2 = vand.u32 2147483647, %v3546_v49 }
 0x744   :  { %v3604_v15 = vor.u32 1.1754944e-38, %v3603_v6 }
 0x745   :  { %5291 = vpow2.f32 %v3539_v25  ;;  %vm3602_vm3 = vcmp.eq.f32.partialorder %v3601_v2, 8.507059e+37 }
 0x746   :  { %v3516_v30 = vpop.f32.mrf.mxu3 }
 0x748   :  { %v5290_v63 = vpop.eup %5289 }
 0x749   :  { %v3593_v60 = vmul.f32 %v5290_v63, %v3546_v49  ;;  %vm3598_vm0 = vweird.f32 %v5290_v63 }
 0x74a   :  { %vm3599_vm2 = vmor %vm3597_vm1, %vm3598_vm0 }
 0x74b   :  { %v5292_v26 = vpop.eup %5291  ;;  %v3594_v3 = vsub.f32 1.0, %v3593_v60 }
 0x74c   :  { %v3545_v1 = vadd.f32 1.0, %v5292_v26 }
 0x74d   :  { %v3595_v13 = vmul.f32 %v5290_v63, %v3594_v3 }
 0x74e   :  { %5293 = vrcp.f32 %v3545_v1  ;;  %v3588_v23 = vand.u32 2147483648, %v3545_v1  ;;  %v3586_v27 = vand.u32 2147483647, %v3545_v1  ;;  %vm3582_vm6 = vweird.f32 %v3545_v1 }
 0x74f   :  { %v3596_v51 = vadd.f32 %v5290_v63, %v3595_v13 }
 0x750   :  { %v3589_v56 = vor.u32 1.1754944e-38, %v3588_v23  ;;  %vm3587_vm7 = vcmp.eq.f32.partialorder %v3586_v27, 8.507059e+37 }
 0x751   :  { %v3600_v36 = vsel %vm3599_vm2, %v5290_v63, %v3596_v51 }
 0x752   :  { %v3605_v17 = vsel %vm3602_vm3, %v3604_v15, %v3600_v36 }
 0x753   :  { %v3612_v8 = vrot.slane %v3605_v17, 4 }
 0x754   :  { %v5294_v42 = vpop.eup %5293 }
 0x755   :  { %v3578_v55 = vmul.f32 %v5294_v42, %v3545_v1  ;;  %vm3583_vm5 = vweird.f32 %v5294_v42 }
 0x756   :  { %vm3584_vm9 = vmor %vm3582_vm6, %vm3583_vm5 }
 0x757   :  { %v3579_v4 = vsub.f32 1.0, %v3578_v55 }
 0x759   :  { %v3580_v58 = vmul.f32 %v5294_v42, %v3579_v4 }
 0x75b   :  { %v3581_v38 = vadd.f32 %v5294_v42, %v3580_v58 }
 0x75d   :  { %v3585_v20 = vsel %vm3584_vm9, %v5294_v42, %v3581_v38 }
 0x75e   :  { %v3590_v39 = vsel %vm3587_vm7, %v3589_v56, %v3585_v20 }
 0x75f   :  { %v3614_v14 = vsel %vm724_vm4, %v3590_v39, %v3612_v8 }
 0x760   :  { %3618 = vst [vmem:[%s6295_s17 + $0x8] sm:$0x77] %v3614_v14 }
 0x761   :  { %3623 = vsyncpa [#allocation3], 1 }
 0x762   :  { %3624 = vsyncpa [#allocation7], 1 }
 0x763   :  { %3625 = vsyncpa [#allocation10], 1 }
 0x764   :  { %3626 = vsyncpa [#allocation13], 1 }
 0x765   :  { %3627 = vsyncpa [#allocation16], 1 }
 0x766   :  { %3628 = vsyncpa [#allocation4], 1 }

</bundles_post_ra>
